<compile_context>
chip_gen: v7x
topology: tpu7x:2x2x1
jax: 0.10.0
libtpu: 0.0.40
codegen_flags: <defaults>
</compile_context>

<pallas_src>
import jax
import jax.numpy as jnp
from jax.experimental import pallas as pl
from jax.experimental.pallas import tpu as pltpu

E = 300    # GRU input size (embedding dim)
H = 150    # GRU hidden size
C = 3      # fc output classes
B = 2      # batch
T = 8      # sequence length
V = 50     # vocab size


def bigru_fc_kernel(ids_ref,                                  # (B, T) int32, SMEM
                    emb_ref,                                  # (V, 1, E)
                    wih_f_ref, whh_f_ref, bih_f_ref, bhh_f_ref,  # (3,E,H) (3,H,H) (3,1,H) (3,1,H)
                    wih_b_ref, bih_b_ref, bhh_b_ref,             # (3,E,H) (3,1,H) (3,1,H)
                    wfc_ref, bfc_ref,                         # (2, H, C), (1, C)
                    out_ref):                                 # (B, C)
    f32 = jnp.float32

    # ---- In-kernel embedding gather (rows ordered t-major, b-minor) ----
    rows = []
    for t in range(T):
        for b in range(B):
            rows.append(emb_ref[ids_ref[b, t]])               # (1, E) dynamic row load
    x_all = jnp.concatenate(rows, axis=0)                     # (T*B, E)
    x_last = jnp.concatenate(rows[(T - 1) * B:], axis=0)      # (B, E) last timestep

    # ---- Hoisted input projection: one 16-row matmul per gate [r, z, n] ----
    gi = [jnp.dot(x_all, wih_f_ref[g], preferred_element_type=f32) + bih_f_ref[g]
          for g in range(3)]                                  # 3 x (T*B, H)

    # ---- Forward recurrence, fully unrolled; only h @ whh is serial ----
    h = jnp.zeros((B, H), f32)
    for t in range(T):
        lo = t * B
        gh_r = jnp.dot(h, whh_f_ref[0], preferred_element_type=f32) + bhh_f_ref[0]
        gh_z = jnp.dot(h, whh_f_ref[1], preferred_element_type=f32) + bhh_f_ref[1]
        gh_n = jnp.dot(h, whh_f_ref[2], preferred_element_type=f32) + bhh_f_ref[2]
        r = jax.nn.sigmoid(gi[0][lo:lo + B] + gh_r)
        z = jax.nn.sigmoid(gi[1][lo:lo + B] + gh_z)
        n = jnp.tanh(gi[2][lo:lo + B] + r * gh_n)
        h = (1.0 - z) * n + z * h

    # ---- Backward direction: single step on the last token with h0 = 0 ----
    # (h0 @ whh_b vanishes, so the hidden-side gate pre-activation is just bhh_b.)
    gib = [jnp.dot(x_last, wih_b_ref[g], preferred_element_type=f32) + bih_b_ref[g]
           for g in range(3)]
    r_b = jax.nn.sigmoid(gib[0] + bhh_b_ref[0])
    z_b = jax.nn.sigmoid(gib[1] + bhh_b_ref[1])
    n_b = jnp.tanh(gib[2] + r_b * bhh_b_ref[2])
    h_b = (1.0 - z_b) * n_b

    # ---- fc([h_fwd ; h_bwd]) without a lane concat: two small matmuls ----
    out = (jnp.dot(h, wfc_ref[0], preferred_element_type=f32)
           + jnp.dot(h_b, wfc_ref[1], preferred_element_type=f32)
           + bfc_ref[...])
    out_ref[...] = out.astype(out_ref.dtype)


def prepare_kernel_params(p):
    """One-time restructure of PyTorch-layout params into the kernel layout."""
    def gates(w):        # (3H, X) -> (3, X, H): per-gate split, pre-transposed
        return jnp.stack([w[g * H:(g + 1) * H, :].T for g in range(3)], axis=0)

    def gate_bias(b):    # (3H,) -> (3, 1, H)
        return b.reshape(3, 1, H)

    return {
        "emb":   p["emb"].astype(jnp.float32).reshape(V, 1, E),
        "wih_f": gates(p["wih_f"]), "whh_f": gates(p["whh_f"]),
        "bih_f": gate_bias(p["bih_f"]), "bhh_f": gate_bias(p["bhh_f"]),
        "wih_b": gates(p["wih_b"]),
        "bih_b": gate_bias(p["bih_b"]), "bhh_b": gate_bias(p["bhh_b"]),
        # fc weight split into forward / backward halves: (2, H, C)
        "wfc":   jnp.stack([p["wfc"][:, :H].T, p["wfc"][:, H:].T], axis=0),
        "bfc":   p["bfc"][None, :],
    }


def lstm_network_forward(ids, kp):
    """ids: (B, T) int32 token ids; kp: prepare_kernel_params output. -> (B, 3)."""
    smem = pl.BlockSpec(memory_space=pltpu.MemorySpace.SMEM)
    vmem = pl.BlockSpec(memory_space=pltpu.MemorySpace.VMEM)
    inputs = (ids.astype(jnp.int32), kp["emb"],
              kp["wih_f"], kp["whh_f"], kp["bih_f"], kp["bhh_f"],
              kp["wih_b"], kp["bih_b"], kp["bhh_b"],
              kp["wfc"], kp["bfc"])
    return pl.pallas_call(
        bigru_fc_kernel,
        out_shape=jax.ShapeDtypeStruct((B, C), jnp.float32),
        in_specs=[smem] + [vmem] * (len(inputs) - 1),
        out_specs=vmem,
    )(*inputs)


def init_params(key):
    """Deterministic synthetic parameters in the PyTorch layout."""
    ks = jax.random.split(key, 12)
    s = 1.0 / jnp.sqrt(H)
    u = lambda k, shape, lim: jax.random.uniform(k, shape, jnp.float32, -lim, lim)
    return {
        "emb":   jax.random.normal(ks[0], (V, E), jnp.float32),
        # forward GRU direction (stacked gates [r, z, n])
        "wih_f": u(ks[1], (3 * H, E), s), "whh_f": u(ks[2], (3 * H, H), s),
        "bih_f": u(ks[3], (3 * H,), s),   "bhh_f": u(ks[4], (3 * H,), s),
        # backward GRU direction
        "wih_b": u(ks[5], (3 * H, E), s), "whh_b": u(ks[6], (3 * H, H), s),
        "bih_b": u(ks[7], (3 * H,), s),   "bhh_b": u(ks[8], (3 * H,), s),
        # fc: Linear(300 -> 3)
        "wfc":   u(ks[9], (C, 2 * H), 1.0 / jnp.sqrt(2 * H)),
        "bfc":   u(ks[10], (C,), 1.0 / jnp.sqrt(2 * H)),
    }


def reference_forward(ids, p):
    """Pure-JAX reference implementing the full PyTorch forward pass."""
    x = jnp.take(p["emb"], ids, axis=0)                      # (B, T, E)

    def cell(x_t, h, wih, whh, bih, bhh):
        gi = x_t @ wih.T + bih
        gh = h @ whh.T + bhh
        r = jax.nn.sigmoid(gi[:, :H] + gh[:, :H])
        z = jax.nn.sigmoid(gi[:, H:2 * H] + gh[:, H:2 * H])
        n = jnp.tanh(gi[:, 2 * H:] + r * gh[:, 2 * H:])
        return (1.0 - z) * n + z * h

    h = jnp.zeros((B, H), jnp.float32)
    fwd_outs = []
    for t in range(T):
        h = cell(x[:, t], h, p["wih_f"], p["whh_f"], p["bih_f"], p["bhh_f"])
        fwd_outs.append(h)
    hb = jnp.zeros((B, H), jnp.float32)
    bwd_outs = [None] * T
    for t in range(T - 1, -1, -1):
        hb = cell(x[:, t], hb, p["wih_b"], p["whh_b"], p["bih_b"], p["bhh_b"])
        bwd_outs[t] = hb
    out = jnp.stack([jnp.concatenate([f, b], -1)
                     for f, b in zip(fwd_outs, bwd_outs)], axis=1)  # (B, T, 2H)
    return out[:, -1, :] @ p["wfc"].T + p["bfc"]


if __name__ == "__main__":
    key = jax.random.PRNGKey(0)
    k_ids, k_params = jax.random.split(key)
    params = init_params(k_params)
    kparams = jax.tree_util.tree_map(jax.block_until_ready,
                                     prepare_kernel_params(params))
    ids = jax.random.randint(k_ids, (B, T), 0, V, dtype=jnp.int32)

    y = jax.block_until_ready(lstm_network_forward(ids, kparams))
    y_ref = reference_forward(ids, params)

    assert y.shape == (B, C)
    assert jnp.allclose(y, y_ref, atol=1e-4, rtol=1e-4), (y, y_ref)
    print("KERNEL_OK")
</pallas_src>

<mosaic_0001>
module attributes {stable_mosaic.version = 11 : i64} {
  func.func @bigru_fc_kernel(%arg0: memref<2x8xi32, #tpu.memory_space<smem>>, %arg1: memref<50x1x300xf32, #tpu.memory_space<vmem>>, %arg2: memref<3x300x150xf32, #tpu.memory_space<vmem>>, %arg3: memref<3x150x150xf32, #tpu.memory_space<vmem>>, %arg4: memref<3x1x150xf32, #tpu.memory_space<vmem>>, %arg5: memref<3x1x150xf32, #tpu.memory_space<vmem>>, %arg6: memref<3x300x150xf32, #tpu.memory_space<vmem>>, %arg7: memref<3x1x150xf32, #tpu.memory_space<vmem>>, %arg8: memref<3x1x150xf32, #tpu.memory_space<vmem>>, %arg9: memref<2x150x3xf32, #tpu.memory_space<vmem>>, %arg10: memref<1x3xf32, #tpu.memory_space<vmem>>, %arg11: memref<2x3xf32, #tpu.memory_space<vmem>>) attributes {dimension_semantics = [], scalar_prefetch = 0 : i64, scratch_operands = 0 : i64, tpu.core_type = #tpu.core_type<tc>} {
    %c0 = arith.constant 0 : index
    %c0_0 = arith.constant 0 : index
    %0 = memref.load %arg0[%c0, %c0_0] : memref<2x8xi32, #tpu.memory_space<smem>>
    %1 = arith.index_cast %0 : i32 to index
    %c0_1 = arith.constant 0 : index
    %c0_2 = arith.constant 0 : index
    %2 = vector.load %arg1[%1, %c0_1, %c0_2] : memref<50x1x300xf32, #tpu.memory_space<vmem>>, vector<1x1x300xf32>
    %3 = vector.shape_cast %2 : vector<1x1x300xf32> to vector<1x300xf32>
    %c1 = arith.constant 1 : index
    %c0_3 = arith.constant 0 : index
    %4 = memref.load %arg0[%c1, %c0_3] : memref<2x8xi32, #tpu.memory_space<smem>>
    %5 = arith.index_cast %4 : i32 to index
    %c0_4 = arith.constant 0 : index
    %c0_5 = arith.constant 0 : index
    %6 = vector.load %arg1[%5, %c0_4, %c0_5] : memref<50x1x300xf32, #tpu.memory_space<vmem>>, vector<1x1x300xf32>
    %7 = vector.shape_cast %6 : vector<1x1x300xf32> to vector<1x300xf32>
    %c0_6 = arith.constant 0 : index
    %c1_7 = arith.constant 1 : index
    %8 = memref.load %arg0[%c0_6, %c1_7] : memref<2x8xi32, #tpu.memory_space<smem>>
    %9 = arith.index_cast %8 : i32 to index
    %c0_8 = arith.constant 0 : index
    %c0_9 = arith.constant 0 : index
    %10 = vector.load %arg1[%9, %c0_8, %c0_9] : memref<50x1x300xf32, #tpu.memory_space<vmem>>, vector<1x1x300xf32>
    %11 = vector.shape_cast %10 : vector<1x1x300xf32> to vector<1x300xf32>
    %c1_10 = arith.constant 1 : index
    %c1_11 = arith.constant 1 : index
    %12 = memref.load %arg0[%c1_10, %c1_11] : memref<2x8xi32, #tpu.memory_space<smem>>
    %13 = arith.index_cast %12 : i32 to index
    %c0_12 = arith.constant 0 : index
    %c0_13 = arith.constant 0 : index
    %14 = vector.load %arg1[%13, %c0_12, %c0_13] : memref<50x1x300xf32, #tpu.memory_space<vmem>>, vector<1x1x300xf32>
    %15 = vector.shape_cast %14 : vector<1x1x300xf32> to vector<1x300xf32>
    %c0_14 = arith.constant 0 : index
    %c2 = arith.constant 2 : index
    %16 = memref.load %arg0[%c0_14, %c2] : memref<2x8xi32, #tpu.memory_space<smem>>
    %17 = arith.index_cast %16 : i32 to index
    %c0_15 = arith.constant 0 : index
    %c0_16 = arith.constant 0 : index
    %18 = vector.load %arg1[%17, %c0_15, %c0_16] : memref<50x1x300xf32, #tpu.memory_space<vmem>>, vector<1x1x300xf32>
    %19 = vector.shape_cast %18 : vector<1x1x300xf32> to vector<1x300xf32>
    %c1_17 = arith.constant 1 : index
    %c2_18 = arith.constant 2 : index
    %20 = memref.load %arg0[%c1_17, %c2_18] : memref<2x8xi32, #tpu.memory_space<smem>>
    %21 = arith.index_cast %20 : i32 to index
    %c0_19 = arith.constant 0 : index
    %c0_20 = arith.constant 0 : index
    %22 = vector.load %arg1[%21, %c0_19, %c0_20] : memref<50x1x300xf32, #tpu.memory_space<vmem>>, vector<1x1x300xf32>
    %23 = vector.shape_cast %22 : vector<1x1x300xf32> to vector<1x300xf32>
    %c0_21 = arith.constant 0 : index
    %c3 = arith.constant 3 : index
    %24 = memref.load %arg0[%c0_21, %c3] : memref<2x8xi32, #tpu.memory_space<smem>>
    %25 = arith.index_cast %24 : i32 to index
    %c0_22 = arith.constant 0 : index
    %c0_23 = arith.constant 0 : index
    %26 = vector.load %arg1[%25, %c0_22, %c0_23] : memref<50x1x300xf32, #tpu.memory_space<vmem>>, vector<1x1x300xf32>
    %27 = vector.shape_cast %26 : vector<1x1x300xf32> to vector<1x300xf32>
    %c1_24 = arith.constant 1 : index
    %c3_25 = arith.constant 3 : index
    %28 = memref.load %arg0[%c1_24, %c3_25] : memref<2x8xi32, #tpu.memory_space<smem>>
    %29 = arith.index_cast %28 : i32 to index
    %c0_26 = arith.constant 0 : index
    %c0_27 = arith.constant 0 : index
    %30 = vector.load %arg1[%29, %c0_26, %c0_27] : memref<50x1x300xf32, #tpu.memory_space<vmem>>, vector<1x1x300xf32>
    %31 = vector.shape_cast %30 : vector<1x1x300xf32> to vector<1x300xf32>
    %c0_28 = arith.constant 0 : index
    %c4 = arith.constant 4 : index
    %32 = memref.load %arg0[%c0_28, %c4] : memref<2x8xi32, #tpu.memory_space<smem>>
    %33 = arith.index_cast %32 : i32 to index
    %c0_29 = arith.constant 0 : index
    %c0_30 = arith.constant 0 : index
    %34 = vector.load %arg1[%33, %c0_29, %c0_30] : memref<50x1x300xf32, #tpu.memory_space<vmem>>, vector<1x1x300xf32>
    %35 = vector.shape_cast %34 : vector<1x1x300xf32> to vector<1x300xf32>
    %c1_31 = arith.constant 1 : index
    %c4_32 = arith.constant 4 : index
    %36 = memref.load %arg0[%c1_31, %c4_32] : memref<2x8xi32, #tpu.memory_space<smem>>
    %37 = arith.index_cast %36 : i32 to index
    %c0_33 = arith.constant 0 : index
    %c0_34 = arith.constant 0 : index
    %38 = vector.load %arg1[%37, %c0_33, %c0_34] : memref<50x1x300xf32, #tpu.memory_space<vmem>>, vector<1x1x300xf32>
    %39 = vector.shape_cast %38 : vector<1x1x300xf32> to vector<1x300xf32>
    %c0_35 = arith.constant 0 : index
    %c5 = arith.constant 5 : index
    %40 = memref.load %arg0[%c0_35, %c5] : memref<2x8xi32, #tpu.memory_space<smem>>
    %41 = arith.index_cast %40 : i32 to index
    %c0_36 = arith.constant 0 : index
    %c0_37 = arith.constant 0 : index
    %42 = vector.load %arg1[%41, %c0_36, %c0_37] : memref<50x1x300xf32, #tpu.memory_space<vmem>>, vector<1x1x300xf32>
    %43 = vector.shape_cast %42 : vector<1x1x300xf32> to vector<1x300xf32>
    %c1_38 = arith.constant 1 : index
    %c5_39 = arith.constant 5 : index
    %44 = memref.load %arg0[%c1_38, %c5_39] : memref<2x8xi32, #tpu.memory_space<smem>>
    %45 = arith.index_cast %44 : i32 to index
    %c0_40 = arith.constant 0 : index
    %c0_41 = arith.constant 0 : index
    %46 = vector.load %arg1[%45, %c0_40, %c0_41] : memref<50x1x300xf32, #tpu.memory_space<vmem>>, vector<1x1x300xf32>
    %47 = vector.shape_cast %46 : vector<1x1x300xf32> to vector<1x300xf32>
    %c0_42 = arith.constant 0 : index
    %c6 = arith.constant 6 : index
    %48 = memref.load %arg0[%c0_42, %c6] : memref<2x8xi32, #tpu.memory_space<smem>>
    %49 = arith.index_cast %48 : i32 to index
    %c0_43 = arith.constant 0 : index
    %c0_44 = arith.constant 0 : index
    %50 = vector.load %arg1[%49, %c0_43, %c0_44] : memref<50x1x300xf32, #tpu.memory_space<vmem>>, vector<1x1x300xf32>
    %51 = vector.shape_cast %50 : vector<1x1x300xf32> to vector<1x300xf32>
    %c1_45 = arith.constant 1 : index
    %c6_46 = arith.constant 6 : index
    %52 = memref.load %arg0[%c1_45, %c6_46] : memref<2x8xi32, #tpu.memory_space<smem>>
    %53 = arith.index_cast %52 : i32 to index
    %c0_47 = arith.constant 0 : index
    %c0_48 = arith.constant 0 : index
    %54 = vector.load %arg1[%53, %c0_47, %c0_48] : memref<50x1x300xf32, #tpu.memory_space<vmem>>, vector<1x1x300xf32>
    %55 = vector.shape_cast %54 : vector<1x1x300xf32> to vector<1x300xf32>
    %c0_49 = arith.constant 0 : index
    %c7 = arith.constant 7 : index
    %56 = memref.load %arg0[%c0_49, %c7] : memref<2x8xi32, #tpu.memory_space<smem>>
    %57 = arith.index_cast %56 : i32 to index
    %c0_50 = arith.constant 0 : index
    %c0_51 = arith.constant 0 : index
    %58 = vector.load %arg1[%57, %c0_50, %c0_51] : memref<50x1x300xf32, #tpu.memory_space<vmem>>, vector<1x1x300xf32>
    %59 = vector.shape_cast %58 : vector<1x1x300xf32> to vector<1x300xf32>
    %c1_52 = arith.constant 1 : index
    %c7_53 = arith.constant 7 : index
    %60 = memref.load %arg0[%c1_52, %c7_53] : memref<2x8xi32, #tpu.memory_space<smem>>
    %61 = arith.index_cast %60 : i32 to index
    %c0_54 = arith.constant 0 : index
    %c0_55 = arith.constant 0 : index
    %62 = vector.load %arg1[%61, %c0_54, %c0_55] : memref<50x1x300xf32, #tpu.memory_space<vmem>>, vector<1x1x300xf32>
    %63 = vector.shape_cast %62 : vector<1x1x300xf32> to vector<1x300xf32>
    %64 = tpu.concatenate %3, %7, %11, %15, %19, %23, %27, %31, %35, %39, %43, %47, %51, %55, %59, %63 in 0 : vector<1x300xf32>, vector<1x300xf32>, vector<1x300xf32>, vector<1x300xf32>, vector<1x300xf32>, vector<1x300xf32>, vector<1x300xf32>, vector<1x300xf32>, vector<1x300xf32>, vector<1x300xf32>, vector<1x300xf32>, vector<1x300xf32>, vector<1x300xf32>, vector<1x300xf32>, vector<1x300xf32>, vector<1x300xf32> -> vector<16x300xf32>
    %65 = tpu.concatenate %59, %63 in 0 : vector<1x300xf32>, vector<1x300xf32> -> vector<2x300xf32>
    %c0_56 = arith.constant 0 : index
    %c0_57 = arith.constant 0 : index
    %c0_58 = arith.constant 0 : index
    %66 = vector.load %arg2[%c0_56, %c0_57, %c0_58] : memref<3x300x150xf32, #tpu.memory_space<vmem>>, vector<1x300x150xf32>
    %67 = vector.shape_cast %66 : vector<1x300x150xf32> to vector<300x150xf32>
    %cst = arith.constant dense<0.000000e+00> : vector<16x150xf32>
    %68 = tpu.matmul %64, %67, %cst {dimension_numbers = #tpu.dot_dimension_numbers<[1], [0], [0], [1], [0, 0, 1, 1], [], []>} : vector<16x300xf32>, vector<300x150xf32>, vector<16x150xf32> -> vector<16x150xf32>
    %c0_59 = arith.constant 0 : index
    %c0_60 = arith.constant 0 : index
    %c0_61 = arith.constant 0 : index
    %69 = vector.load %arg4[%c0_59, %c0_60, %c0_61] : memref<3x1x150xf32, #tpu.memory_space<vmem>>, vector<1x1x150xf32>
    %70 = vector.shape_cast %69 : vector<1x1x150xf32> to vector<1x150xf32>
    %71 = vector.broadcast %70 : vector<1x150xf32> to vector<16x150xf32>
    %72 = arith.addf %68, %71 : vector<16x150xf32>
    %c1_62 = arith.constant 1 : index
    %c0_63 = arith.constant 0 : index
    %c0_64 = arith.constant 0 : index
    %73 = vector.load %arg2[%c1_62, %c0_63, %c0_64] : memref<3x300x150xf32, #tpu.memory_space<vmem>>, vector<1x300x150xf32>
    %74 = vector.shape_cast %73 : vector<1x300x150xf32> to vector<300x150xf32>
    %cst_65 = arith.constant dense<0.000000e+00> : vector<16x150xf32>
    %75 = tpu.matmul %64, %74, %cst_65 {dimension_numbers = #tpu.dot_dimension_numbers<[1], [0], [0], [1], [0, 0, 1, 1], [], []>} : vector<16x300xf32>, vector<300x150xf32>, vector<16x150xf32> -> vector<16x150xf32>
    %c1_66 = arith.constant 1 : index
    %c0_67 = arith.constant 0 : index
    %c0_68 = arith.constant 0 : index
    %76 = vector.load %arg4[%c1_66, %c0_67, %c0_68] : memref<3x1x150xf32, #tpu.memory_space<vmem>>, vector<1x1x150xf32>
    %77 = vector.shape_cast %76 : vector<1x1x150xf32> to vector<1x150xf32>
    %78 = vector.broadcast %77 : vector<1x150xf32> to vector<16x150xf32>
    %79 = arith.addf %75, %78 : vector<16x150xf32>
    %c2_69 = arith.constant 2 : index
    %c0_70 = arith.constant 0 : index
    %c0_71 = arith.constant 0 : index
    %80 = vector.load %arg2[%c2_69, %c0_70, %c0_71] : memref<3x300x150xf32, #tpu.memory_space<vmem>>, vector<1x300x150xf32>
    %81 = vector.shape_cast %80 : vector<1x300x150xf32> to vector<300x150xf32>
    %cst_72 = arith.constant dense<0.000000e+00> : vector<16x150xf32>
    %82 = tpu.matmul %64, %81, %cst_72 {dimension_numbers = #tpu.dot_dimension_numbers<[1], [0], [0], [1], [0, 0, 1, 1], [], []>} : vector<16x300xf32>, vector<300x150xf32>, vector<16x150xf32> -> vector<16x150xf32>
    %c2_73 = arith.constant 2 : index
    %c0_74 = arith.constant 0 : index
    %c0_75 = arith.constant 0 : index
    %83 = vector.load %arg4[%c2_73, %c0_74, %c0_75] : memref<3x1x150xf32, #tpu.memory_space<vmem>>, vector<1x1x150xf32>
    %84 = vector.shape_cast %83 : vector<1x1x150xf32> to vector<1x150xf32>
    %85 = vector.broadcast %84 : vector<1x150xf32> to vector<16x150xf32>
    %86 = arith.addf %82, %85 : vector<16x150xf32>
    %cst_76 = arith.constant 0.000000e+00 : f32
    %87 = vector.broadcast %cst_76 : f32 to vector<2x150xf32>
    %c0_77 = arith.constant 0 : index
    %c0_78 = arith.constant 0 : index
    %c0_79 = arith.constant 0 : index
    %88 = vector.load %arg3[%c0_77, %c0_78, %c0_79] : memref<3x150x150xf32, #tpu.memory_space<vmem>>, vector<1x150x150xf32>
    %89 = vector.shape_cast %88 : vector<1x150x150xf32> to vector<150x150xf32>
    %cst_80 = arith.constant dense<0.000000e+00> : vector<2x150xf32>
    %90 = tpu.matmul %87, %89, %cst_80 {dimension_numbers = #tpu.dot_dimension_numbers<[1], [0], [0], [1], [0, 0, 1, 1], [], []>} : vector<2x150xf32>, vector<150x150xf32>, vector<2x150xf32> -> vector<2x150xf32>
    %c0_81 = arith.constant 0 : index
    %c0_82 = arith.constant 0 : index
    %c0_83 = arith.constant 0 : index
    %91 = vector.load %arg5[%c0_81, %c0_82, %c0_83] : memref<3x1x150xf32, #tpu.memory_space<vmem>>, vector<1x1x150xf32>
    %92 = vector.shape_cast %91 : vector<1x1x150xf32> to vector<1x150xf32>
    %93 = vector.broadcast %92 : vector<1x150xf32> to vector<2x150xf32>
    %94 = arith.addf %90, %93 : vector<2x150xf32>
    %c1_84 = arith.constant 1 : index
    %c0_85 = arith.constant 0 : index
    %c0_86 = arith.constant 0 : index
    %95 = vector.load %arg3[%c1_84, %c0_85, %c0_86] : memref<3x150x150xf32, #tpu.memory_space<vmem>>, vector<1x150x150xf32>
    %96 = vector.shape_cast %95 : vector<1x150x150xf32> to vector<150x150xf32>
    %cst_87 = arith.constant dense<0.000000e+00> : vector<2x150xf32>
    %97 = tpu.matmul %87, %96, %cst_87 {dimension_numbers = #tpu.dot_dimension_numbers<[1], [0], [0], [1], [0, 0, 1, 1], [], []>} : vector<2x150xf32>, vector<150x150xf32>, vector<2x150xf32> -> vector<2x150xf32>
    %c1_88 = arith.constant 1 : index
    %c0_89 = arith.constant 0 : index
    %c0_90 = arith.constant 0 : index
    %98 = vector.load %arg5[%c1_88, %c0_89, %c0_90] : memref<3x1x150xf32, #tpu.memory_space<vmem>>, vector<1x1x150xf32>
    %99 = vector.shape_cast %98 : vector<1x1x150xf32> to vector<1x150xf32>
    %100 = vector.broadcast %99 : vector<1x150xf32> to vector<2x150xf32>
    %101 = arith.addf %97, %100 : vector<2x150xf32>
    %c2_91 = arith.constant 2 : index
    %c0_92 = arith.constant 0 : index
    %c0_93 = arith.constant 0 : index
    %102 = vector.load %arg3[%c2_91, %c0_92, %c0_93] : memref<3x150x150xf32, #tpu.memory_space<vmem>>, vector<1x150x150xf32>
    %103 = vector.shape_cast %102 : vector<1x150x150xf32> to vector<150x150xf32>
    %cst_94 = arith.constant dense<0.000000e+00> : vector<2x150xf32>
    %104 = tpu.matmul %87, %103, %cst_94 {dimension_numbers = #tpu.dot_dimension_numbers<[1], [0], [0], [1], [0, 0, 1, 1], [], []>} : vector<2x150xf32>, vector<150x150xf32>, vector<2x150xf32> -> vector<2x150xf32>
    %c2_95 = arith.constant 2 : index
    %c0_96 = arith.constant 0 : index
    %c0_97 = arith.constant 0 : index
    %105 = vector.load %arg5[%c2_95, %c0_96, %c0_97] : memref<3x1x150xf32, #tpu.memory_space<vmem>>, vector<1x1x150xf32>
    %106 = vector.shape_cast %105 : vector<1x1x150xf32> to vector<1x150xf32>
    %107 = vector.broadcast %106 : vector<1x150xf32> to vector<2x150xf32>
    %108 = arith.addf %104, %107 : vector<2x150xf32>
    %109 = vector.extract_strided_slice %72 {offsets = [0, 0], sizes = [2, 150], strides = [1, 1]} : vector<16x150xf32> to vector<2x150xf32>
    %110 = arith.addf %109, %94 : vector<2x150xf32>
    %111 = arith.negf %110 : vector<2x150xf32>
    %112 = math.exp %111 : vector<2x150xf32>
    %cst_98 = arith.constant 1.000000e+00 : f32
    %113 = vector.broadcast %cst_98 : f32 to vector<2x150xf32>
    %114 = arith.addf %113, %112 : vector<2x150xf32>
    %115 = arith.divf %113, %114 : vector<2x150xf32>
    %116 = vector.extract_strided_slice %79 {offsets = [0, 0], sizes = [2, 150], strides = [1, 1]} : vector<16x150xf32> to vector<2x150xf32>
    %117 = arith.addf %116, %101 : vector<2x150xf32>
    %118 = arith.negf %117 : vector<2x150xf32>
    %119 = math.exp %118 : vector<2x150xf32>
    %cst_99 = arith.constant 1.000000e+00 : f32
    %120 = vector.broadcast %cst_99 : f32 to vector<2x150xf32>
    %121 = arith.addf %120, %119 : vector<2x150xf32>
    %122 = arith.divf %120, %121 : vector<2x150xf32>
    %123 = vector.extract_strided_slice %86 {offsets = [0, 0], sizes = [2, 150], strides = [1, 1]} : vector<16x150xf32> to vector<2x150xf32>
    %124 = arith.mulf %115, %108 : vector<2x150xf32>
    %125 = arith.addf %123, %124 : vector<2x150xf32>
    %126 = math.tanh %125 : vector<2x150xf32>
    %cst_100 = arith.constant 1.000000e+00 : f32
    %127 = vector.broadcast %cst_100 : f32 to vector<2x150xf32>
    %128 = arith.subf %127, %122 : vector<2x150xf32>
    %129 = arith.mulf %128, %126 : vector<2x150xf32>
    %130 = arith.mulf %122, %87 : vector<2x150xf32>
    %131 = arith.addf %129, %130 : vector<2x150xf32>
    %c0_101 = arith.constant 0 : index
    %c0_102 = arith.constant 0 : index
    %c0_103 = arith.constant 0 : index
    %132 = vector.load %arg3[%c0_101, %c0_102, %c0_103] : memref<3x150x150xf32, #tpu.memory_space<vmem>>, vector<1x150x150xf32>
    %133 = vector.shape_cast %132 : vector<1x150x150xf32> to vector<150x150xf32>
    %cst_104 = arith.constant dense<0.000000e+00> : vector<2x150xf32>
    %134 = tpu.matmul %131, %133, %cst_104 {dimension_numbers = #tpu.dot_dimension_numbers<[1], [0], [0], [1], [0, 0, 1, 1], [], []>} : vector<2x150xf32>, vector<150x150xf32>, vector<2x150xf32> -> vector<2x150xf32>
    %c0_105 = arith.constant 0 : index
    %c0_106 = arith.constant 0 : index
    %c0_107 = arith.constant 0 : index
    %135 = vector.load %arg5[%c0_105, %c0_106, %c0_107] : memref<3x1x150xf32, #tpu.memory_space<vmem>>, vector<1x1x150xf32>
    %136 = vector.shape_cast %135 : vector<1x1x150xf32> to vector<1x150xf32>
    %137 = vector.broadcast %136 : vector<1x150xf32> to vector<2x150xf32>
    %138 = arith.addf %134, %137 : vector<2x150xf32>
    %c1_108 = arith.constant 1 : index
    %c0_109 = arith.constant 0 : index
    %c0_110 = arith.constant 0 : index
    %139 = vector.load %arg3[%c1_108, %c0_109, %c0_110] : memref<3x150x150xf32, #tpu.memory_space<vmem>>, vector<1x150x150xf32>
    %140 = vector.shape_cast %139 : vector<1x150x150xf32> to vector<150x150xf32>
    %cst_111 = arith.constant dense<0.000000e+00> : vector<2x150xf32>
    %141 = tpu.matmul %131, %140, %cst_111 {dimension_numbers = #tpu.dot_dimension_numbers<[1], [0], [0], [1], [0, 0, 1, 1], [], []>} : vector<2x150xf32>, vector<150x150xf32>, vector<2x150xf32> -> vector<2x150xf32>
    %c1_112 = arith.constant 1 : index
    %c0_113 = arith.constant 0 : index
    %c0_114 = arith.constant 0 : index
    %142 = vector.load %arg5[%c1_112, %c0_113, %c0_114] : memref<3x1x150xf32, #tpu.memory_space<vmem>>, vector<1x1x150xf32>
    %143 = vector.shape_cast %142 : vector<1x1x150xf32> to vector<1x150xf32>
    %144 = vector.broadcast %143 : vector<1x150xf32> to vector<2x150xf32>
    %145 = arith.addf %141, %144 : vector<2x150xf32>
    %c2_115 = arith.constant 2 : index
    %c0_116 = arith.constant 0 : index
    %c0_117 = arith.constant 0 : index
    %146 = vector.load %arg3[%c2_115, %c0_116, %c0_117] : memref<3x150x150xf32, #tpu.memory_space<vmem>>, vector<1x150x150xf32>
    %147 = vector.shape_cast %146 : vector<1x150x150xf32> to vector<150x150xf32>
    %cst_118 = arith.constant dense<0.000000e+00> : vector<2x150xf32>
    %148 = tpu.matmul %131, %147, %cst_118 {dimension_numbers = #tpu.dot_dimension_numbers<[1], [0], [0], [1], [0, 0, 1, 1], [], []>} : vector<2x150xf32>, vector<150x150xf32>, vector<2x150xf32> -> vector<2x150xf32>
    %c2_119 = arith.constant 2 : index
    %c0_120 = arith.constant 0 : index
    %c0_121 = arith.constant 0 : index
    %149 = vector.load %arg5[%c2_119, %c0_120, %c0_121] : memref<3x1x150xf32, #tpu.memory_space<vmem>>, vector<1x1x150xf32>
    %150 = vector.shape_cast %149 : vector<1x1x150xf32> to vector<1x150xf32>
    %151 = vector.broadcast %150 : vector<1x150xf32> to vector<2x150xf32>
    %152 = arith.addf %148, %151 : vector<2x150xf32>
    %153 = vector.extract_strided_slice %72 {offsets = [2, 0], sizes = [2, 150], strides = [1, 1]} : vector<16x150xf32> to vector<2x150xf32>
    %154 = arith.addf %153, %138 : vector<2x150xf32>
    %155 = arith.negf %154 : vector<2x150xf32>
    %156 = math.exp %155 : vector<2x150xf32>
    %cst_122 = arith.constant 1.000000e+00 : f32
    %157 = vector.broadcast %cst_122 : f32 to vector<2x150xf32>
    %158 = arith.addf %157, %156 : vector<2x150xf32>
    %159 = arith.divf %157, %158 : vector<2x150xf32>
    %160 = vector.extract_strided_slice %79 {offsets = [2, 0], sizes = [2, 150], strides = [1, 1]} : vector<16x150xf32> to vector<2x150xf32>
    %161 = arith.addf %160, %145 : vector<2x150xf32>
    %162 = arith.negf %161 : vector<2x150xf32>
    %163 = math.exp %162 : vector<2x150xf32>
    %cst_123 = arith.constant 1.000000e+00 : f32
    %164 = vector.broadcast %cst_123 : f32 to vector<2x150xf32>
    %165 = arith.addf %164, %163 : vector<2x150xf32>
    %166 = arith.divf %164, %165 : vector<2x150xf32>
    %167 = vector.extract_strided_slice %86 {offsets = [2, 0], sizes = [2, 150], strides = [1, 1]} : vector<16x150xf32> to vector<2x150xf32>
    %168 = arith.mulf %159, %152 : vector<2x150xf32>
    %169 = arith.addf %167, %168 : vector<2x150xf32>
    %170 = math.tanh %169 : vector<2x150xf32>
    %cst_124 = arith.constant 1.000000e+00 : f32
    %171 = vector.broadcast %cst_124 : f32 to vector<2x150xf32>
    %172 = arith.subf %171, %166 : vector<2x150xf32>
    %173 = arith.mulf %172, %170 : vector<2x150xf32>
    %174 = arith.mulf %166, %131 : vector<2x150xf32>
    %175 = arith.addf %173, %174 : vector<2x150xf32>
    %c0_125 = arith.constant 0 : index
    %c0_126 = arith.constant 0 : index
    %c0_127 = arith.constant 0 : index
    %176 = vector.load %arg3[%c0_125, %c0_126, %c0_127] : memref<3x150x150xf32, #tpu.memory_space<vmem>>, vector<1x150x150xf32>
    %177 = vector.shape_cast %176 : vector<1x150x150xf32> to vector<150x150xf32>
    %cst_128 = arith.constant dense<0.000000e+00> : vector<2x150xf32>
    %178 = tpu.matmul %175, %177, %cst_128 {dimension_numbers = #tpu.dot_dimension_numbers<[1], [0], [0], [1], [0, 0, 1, 1], [], []>} : vector<2x150xf32>, vector<150x150xf32>, vector<2x150xf32> -> vector<2x150xf32>
    %c0_129 = arith.constant 0 : index
    %c0_130 = arith.constant 0 : index
    %c0_131 = arith.constant 0 : index
    %179 = vector.load %arg5[%c0_129, %c0_130, %c0_131] : memref<3x1x150xf32, #tpu.memory_space<vmem>>, vector<1x1x150xf32>
    %180 = vector.shape_cast %179 : vector<1x1x150xf32> to vector<1x150xf32>
    %181 = vector.broadcast %180 : vector<1x150xf32> to vector<2x150xf32>
    %182 = arith.addf %178, %181 : vector<2x150xf32>
    %c1_132 = arith.constant 1 : index
    %c0_133 = arith.constant 0 : index
    %c0_134 = arith.constant 0 : index
    %183 = vector.load %arg3[%c1_132, %c0_133, %c0_134] : memref<3x150x150xf32, #tpu.memory_space<vmem>>, vector<1x150x150xf32>
    %184 = vector.shape_cast %183 : vector<1x150x150xf32> to vector<150x150xf32>
    %cst_135 = arith.constant dense<0.000000e+00> : vector<2x150xf32>
    %185 = tpu.matmul %175, %184, %cst_135 {dimension_numbers = #tpu.dot_dimension_numbers<[1], [0], [0], [1], [0, 0, 1, 1], [], []>} : vector<2x150xf32>, vector<150x150xf32>, vector<2x150xf32> -> vector<2x150xf32>
    %c1_136 = arith.constant 1 : index
    %c0_137 = arith.constant 0 : index
    %c0_138 = arith.constant 0 : index
    %186 = vector.load %arg5[%c1_136, %c0_137, %c0_138] : memref<3x1x150xf32, #tpu.memory_space<vmem>>, vector<1x1x150xf32>
    %187 = vector.shape_cast %186 : vector<1x1x150xf32> to vector<1x150xf32>
    %188 = vector.broadcast %187 : vector<1x150xf32> to vector<2x150xf32>
    %189 = arith.addf %185, %188 : vector<2x150xf32>
    %c2_139 = arith.constant 2 : index
    %c0_140 = arith.constant 0 : index
    %c0_141 = arith.constant 0 : index
    %190 = vector.load %arg3[%c2_139, %c0_140, %c0_141] : memref<3x150x150xf32, #tpu.memory_space<vmem>>, vector<1x150x150xf32>
    %191 = vector.shape_cast %190 : vector<1x150x150xf32> to vector<150x150xf32>
    %cst_142 = arith.constant dense<0.000000e+00> : vector<2x150xf32>
    %192 = tpu.matmul %175, %191, %cst_142 {dimension_numbers = #tpu.dot_dimension_numbers<[1], [0], [0], [1], [0, 0, 1, 1], [], []>} : vector<2x150xf32>, vector<150x150xf32>, vector<2x150xf32> -> vector<2x150xf32>
    %c2_143 = arith.constant 2 : index
    %c0_144 = arith.constant 0 : index
    %c0_145 = arith.constant 0 : index
    %193 = vector.load %arg5[%c2_143, %c0_144, %c0_145] : memref<3x1x150xf32, #tpu.memory_space<vmem>>, vector<1x1x150xf32>
    %194 = vector.shape_cast %193 : vector<1x1x150xf32> to vector<1x150xf32>
    %195 = vector.broadcast %194 : vector<1x150xf32> to vector<2x150xf32>
    %196 = arith.addf %192, %195 : vector<2x150xf32>
    %197 = vector.extract_strided_slice %72 {offsets = [4, 0], sizes = [2, 150], strides = [1, 1]} : vector<16x150xf32> to vector<2x150xf32>
    %198 = arith.addf %197, %182 : vector<2x150xf32>
    %199 = arith.negf %198 : vector<2x150xf32>
    %200 = math.exp %199 : vector<2x150xf32>
    %cst_146 = arith.constant 1.000000e+00 : f32
    %201 = vector.broadcast %cst_146 : f32 to vector<2x150xf32>
    %202 = arith.addf %201, %200 : vector<2x150xf32>
    %203 = arith.divf %201, %202 : vector<2x150xf32>
    %204 = vector.extract_strided_slice %79 {offsets = [4, 0], sizes = [2, 150], strides = [1, 1]} : vector<16x150xf32> to vector<2x150xf32>
    %205 = arith.addf %204, %189 : vector<2x150xf32>
    %206 = arith.negf %205 : vector<2x150xf32>
    %207 = math.exp %206 : vector<2x150xf32>
    %cst_147 = arith.constant 1.000000e+00 : f32
    %208 = vector.broadcast %cst_147 : f32 to vector<2x150xf32>
    %209 = arith.addf %208, %207 : vector<2x150xf32>
    %210 = arith.divf %208, %209 : vector<2x150xf32>
    %211 = vector.extract_strided_slice %86 {offsets = [4, 0], sizes = [2, 150], strides = [1, 1]} : vector<16x150xf32> to vector<2x150xf32>
    %212 = arith.mulf %203, %196 : vector<2x150xf32>
    %213 = arith.addf %211, %212 : vector<2x150xf32>
    %214 = math.tanh %213 : vector<2x150xf32>
    %cst_148 = arith.constant 1.000000e+00 : f32
    %215 = vector.broadcast %cst_148 : f32 to vector<2x150xf32>
    %216 = arith.subf %215, %210 : vector<2x150xf32>
    %217 = arith.mulf %216, %214 : vector<2x150xf32>
    %218 = arith.mulf %210, %175 : vector<2x150xf32>
    %219 = arith.addf %217, %218 : vector<2x150xf32>
    %c0_149 = arith.constant 0 : index
    %c0_150 = arith.constant 0 : index
    %c0_151 = arith.constant 0 : index
    %220 = vector.load %arg3[%c0_149, %c0_150, %c0_151] : memref<3x150x150xf32, #tpu.memory_space<vmem>>, vector<1x150x150xf32>
    %221 = vector.shape_cast %220 : vector<1x150x150xf32> to vector<150x150xf32>
    %cst_152 = arith.constant dense<0.000000e+00> : vector<2x150xf32>
    %222 = tpu.matmul %219, %221, %cst_152 {dimension_numbers = #tpu.dot_dimension_numbers<[1], [0], [0], [1], [0, 0, 1, 1], [], []>} : vector<2x150xf32>, vector<150x150xf32>, vector<2x150xf32> -> vector<2x150xf32>
    %c0_153 = arith.constant 0 : index
    %c0_154 = arith.constant 0 : index
    %c0_155 = arith.constant 0 : index
    %223 = vector.load %arg5[%c0_153, %c0_154, %c0_155] : memref<3x1x150xf32, #tpu.memory_space<vmem>>, vector<1x1x150xf32>
    %224 = vector.shape_cast %223 : vector<1x1x150xf32> to vector<1x150xf32>
    %225 = vector.broadcast %224 : vector<1x150xf32> to vector<2x150xf32>
    %226 = arith.addf %222, %225 : vector<2x150xf32>
    %c1_156 = arith.constant 1 : index
    %c0_157 = arith.constant 0 : index
    %c0_158 = arith.constant 0 : index
    %227 = vector.load %arg3[%c1_156, %c0_157, %c0_158] : memref<3x150x150xf32, #tpu.memory_space<vmem>>, vector<1x150x150xf32>
    %228 = vector.shape_cast %227 : vector<1x150x150xf32> to vector<150x150xf32>
    %cst_159 = arith.constant dense<0.000000e+00> : vector<2x150xf32>
    %229 = tpu.matmul %219, %228, %cst_159 {dimension_numbers = #tpu.dot_dimension_numbers<[1], [0], [0], [1], [0, 0, 1, 1], [], []>} : vector<2x150xf32>, vector<150x150xf32>, vector<2x150xf32> -> vector<2x150xf32>
    %c1_160 = arith.constant 1 : index
    %c0_161 = arith.constant 0 : index
    %c0_162 = arith.constant 0 : index
    %230 = vector.load %arg5[%c1_160, %c0_161, %c0_162] : memref<3x1x150xf32, #tpu.memory_space<vmem>>, vector<1x1x150xf32>
    %231 = vector.shape_cast %230 : vector<1x1x150xf32> to vector<1x150xf32>
    %232 = vector.broadcast %231 : vector<1x150xf32> to vector<2x150xf32>
    %233 = arith.addf %229, %232 : vector<2x150xf32>
    %c2_163 = arith.constant 2 : index
    %c0_164 = arith.constant 0 : index
    %c0_165 = arith.constant 0 : index
    %234 = vector.load %arg3[%c2_163, %c0_164, %c0_165] : memref<3x150x150xf32, #tpu.memory_space<vmem>>, vector<1x150x150xf32>
    %235 = vector.shape_cast %234 : vector<1x150x150xf32> to vector<150x150xf32>
    %cst_166 = arith.constant dense<0.000000e+00> : vector<2x150xf32>
    %236 = tpu.matmul %219, %235, %cst_166 {dimension_numbers = #tpu.dot_dimension_numbers<[1], [0], [0], [1], [0, 0, 1, 1], [], []>} : vector<2x150xf32>, vector<150x150xf32>, vector<2x150xf32> -> vector<2x150xf32>
    %c2_167 = arith.constant 2 : index
    %c0_168 = arith.constant 0 : index
    %c0_169 = arith.constant 0 : index
    %237 = vector.load %arg5[%c2_167, %c0_168, %c0_169] : memref<3x1x150xf32, #tpu.memory_space<vmem>>, vector<1x1x150xf32>
    %238 = vector.shape_cast %237 : vector<1x1x150xf32> to vector<1x150xf32>
    %239 = vector.broadcast %238 : vector<1x150xf32> to vector<2x150xf32>
    %240 = arith.addf %236, %239 : vector<2x150xf32>
    %241 = vector.extract_strided_slice %72 {offsets = [6, 0], sizes = [2, 150], strides = [1, 1]} : vector<16x150xf32> to vector<2x150xf32>
    %242 = arith.addf %241, %226 : vector<2x150xf32>
    %243 = arith.negf %242 : vector<2x150xf32>
    %244 = math.exp %243 : vector<2x150xf32>
    %cst_170 = arith.constant 1.000000e+00 : f32
    %245 = vector.broadcast %cst_170 : f32 to vector<2x150xf32>
    %246 = arith.addf %245, %244 : vector<2x150xf32>
    %247 = arith.divf %245, %246 : vector<2x150xf32>
    %248 = vector.extract_strided_slice %79 {offsets = [6, 0], sizes = [2, 150], strides = [1, 1]} : vector<16x150xf32> to vector<2x150xf32>
    %249 = arith.addf %248, %233 : vector<2x150xf32>
    %250 = arith.negf %249 : vector<2x150xf32>
    %251 = math.exp %250 : vector<2x150xf32>
    %cst_171 = arith.constant 1.000000e+00 : f32
    %252 = vector.broadcast %cst_171 : f32 to vector<2x150xf32>
    %253 = arith.addf %252, %251 : vector<2x150xf32>
    %254 = arith.divf %252, %253 : vector<2x150xf32>
    %255 = vector.extract_strided_slice %86 {offsets = [6, 0], sizes = [2, 150], strides = [1, 1]} : vector<16x150xf32> to vector<2x150xf32>
    %256 = arith.mulf %247, %240 : vector<2x150xf32>
    %257 = arith.addf %255, %256 : vector<2x150xf32>
    %258 = math.tanh %257 : vector<2x150xf32>
    %cst_172 = arith.constant 1.000000e+00 : f32
    %259 = vector.broadcast %cst_172 : f32 to vector<2x150xf32>
    %260 = arith.subf %259, %254 : vector<2x150xf32>
    %261 = arith.mulf %260, %258 : vector<2x150xf32>
    %262 = arith.mulf %254, %219 : vector<2x150xf32>
    %263 = arith.addf %261, %262 : vector<2x150xf32>
    %c0_173 = arith.constant 0 : index
    %c0_174 = arith.constant 0 : index
    %c0_175 = arith.constant 0 : index
    %264 = vector.load %arg3[%c0_173, %c0_174, %c0_175] : memref<3x150x150xf32, #tpu.memory_space<vmem>>, vector<1x150x150xf32>
    %265 = vector.shape_cast %264 : vector<1x150x150xf32> to vector<150x150xf32>
    %cst_176 = arith.constant dense<0.000000e+00> : vector<2x150xf32>
    %266 = tpu.matmul %263, %265, %cst_176 {dimension_numbers = #tpu.dot_dimension_numbers<[1], [0], [0], [1], [0, 0, 1, 1], [], []>} : vector<2x150xf32>, vector<150x150xf32>, vector<2x150xf32> -> vector<2x150xf32>
    %c0_177 = arith.constant 0 : index
    %c0_178 = arith.constant 0 : index
    %c0_179 = arith.constant 0 : index
    %267 = vector.load %arg5[%c0_177, %c0_178, %c0_179] : memref<3x1x150xf32, #tpu.memory_space<vmem>>, vector<1x1x150xf32>
    %268 = vector.shape_cast %267 : vector<1x1x150xf32> to vector<1x150xf32>
    %269 = vector.broadcast %268 : vector<1x150xf32> to vector<2x150xf32>
    %270 = arith.addf %266, %269 : vector<2x150xf32>
    %c1_180 = arith.constant 1 : index
    %c0_181 = arith.constant 0 : index
    %c0_182 = arith.constant 0 : index
    %271 = vector.load %arg3[%c1_180, %c0_181, %c0_182] : memref<3x150x150xf32, #tpu.memory_space<vmem>>, vector<1x150x150xf32>
    %272 = vector.shape_cast %271 : vector<1x150x150xf32> to vector<150x150xf32>
    %cst_183 = arith.constant dense<0.000000e+00> : vector<2x150xf32>
    %273 = tpu.matmul %263, %272, %cst_183 {dimension_numbers = #tpu.dot_dimension_numbers<[1], [0], [0], [1], [0, 0, 1, 1], [], []>} : vector<2x150xf32>, vector<150x150xf32>, vector<2x150xf32> -> vector<2x150xf32>
    %c1_184 = arith.constant 1 : index
    %c0_185 = arith.constant 0 : index
    %c0_186 = arith.constant 0 : index
    %274 = vector.load %arg5[%c1_184, %c0_185, %c0_186] : memref<3x1x150xf32, #tpu.memory_space<vmem>>, vector<1x1x150xf32>
    %275 = vector.shape_cast %274 : vector<1x1x150xf32> to vector<1x150xf32>
    %276 = vector.broadcast %275 : vector<1x150xf32> to vector<2x150xf32>
    %277 = arith.addf %273, %276 : vector<2x150xf32>
    %c2_187 = arith.constant 2 : index
    %c0_188 = arith.constant 0 : index
    %c0_189 = arith.constant 0 : index
    %278 = vector.load %arg3[%c2_187, %c0_188, %c0_189] : memref<3x150x150xf32, #tpu.memory_space<vmem>>, vector<1x150x150xf32>
    %279 = vector.shape_cast %278 : vector<1x150x150xf32> to vector<150x150xf32>
    %cst_190 = arith.constant dense<0.000000e+00> : vector<2x150xf32>
    %280 = tpu.matmul %263, %279, %cst_190 {dimension_numbers = #tpu.dot_dimension_numbers<[1], [0], [0], [1], [0, 0, 1, 1], [], []>} : vector<2x150xf32>, vector<150x150xf32>, vector<2x150xf32> -> vector<2x150xf32>
    %c2_191 = arith.constant 2 : index
    %c0_192 = arith.constant 0 : index
    %c0_193 = arith.constant 0 : index
    %281 = vector.load %arg5[%c2_191, %c0_192, %c0_193] : memref<3x1x150xf32, #tpu.memory_space<vmem>>, vector<1x1x150xf32>
    %282 = vector.shape_cast %281 : vector<1x1x150xf32> to vector<1x150xf32>
    %283 = vector.broadcast %282 : vector<1x150xf32> to vector<2x150xf32>
    %284 = arith.addf %280, %283 : vector<2x150xf32>
    %285 = vector.extract_strided_slice %72 {offsets = [8, 0], sizes = [2, 150], strides = [1, 1]} : vector<16x150xf32> to vector<2x150xf32>
    %286 = arith.addf %285, %270 : vector<2x150xf32>
    %287 = arith.negf %286 : vector<2x150xf32>
    %288 = math.exp %287 : vector<2x150xf32>
    %cst_194 = arith.constant 1.000000e+00 : f32
    %289 = vector.broadcast %cst_194 : f32 to vector<2x150xf32>
    %290 = arith.addf %289, %288 : vector<2x150xf32>
    %291 = arith.divf %289, %290 : vector<2x150xf32>
    %292 = vector.extract_strided_slice %79 {offsets = [8, 0], sizes = [2, 150], strides = [1, 1]} : vector<16x150xf32> to vector<2x150xf32>
    %293 = arith.addf %292, %277 : vector<2x150xf32>
    %294 = arith.negf %293 : vector<2x150xf32>
    %295 = math.exp %294 : vector<2x150xf32>
    %cst_195 = arith.constant 1.000000e+00 : f32
    %296 = vector.broadcast %cst_195 : f32 to vector<2x150xf32>
    %297 = arith.addf %296, %295 : vector<2x150xf32>
    %298 = arith.divf %296, %297 : vector<2x150xf32>
    %299 = vector.extract_strided_slice %86 {offsets = [8, 0], sizes = [2, 150], strides = [1, 1]} : vector<16x150xf32> to vector<2x150xf32>
    %300 = arith.mulf %291, %284 : vector<2x150xf32>
    %301 = arith.addf %299, %300 : vector<2x150xf32>
    %302 = math.tanh %301 : vector<2x150xf32>
    %cst_196 = arith.constant 1.000000e+00 : f32
    %303 = vector.broadcast %cst_196 : f32 to vector<2x150xf32>
    %304 = arith.subf %303, %298 : vector<2x150xf32>
    %305 = arith.mulf %304, %302 : vector<2x150xf32>
    %306 = arith.mulf %298, %263 : vector<2x150xf32>
    %307 = arith.addf %305, %306 : vector<2x150xf32>
    %c0_197 = arith.constant 0 : index
    %c0_198 = arith.constant 0 : index
    %c0_199 = arith.constant 0 : index
    %308 = vector.load %arg3[%c0_197, %c0_198, %c0_199] : memref<3x150x150xf32, #tpu.memory_space<vmem>>, vector<1x150x150xf32>
    %309 = vector.shape_cast %308 : vector<1x150x150xf32> to vector<150x150xf32>
    %cst_200 = arith.constant dense<0.000000e+00> : vector<2x150xf32>
    %310 = tpu.matmul %307, %309, %cst_200 {dimension_numbers = #tpu.dot_dimension_numbers<[1], [0], [0], [1], [0, 0, 1, 1], [], []>} : vector<2x150xf32>, vector<150x150xf32>, vector<2x150xf32> -> vector<2x150xf32>
    %c0_201 = arith.constant 0 : index
    %c0_202 = arith.constant 0 : index
    %c0_203 = arith.constant 0 : index
    %311 = vector.load %arg5[%c0_201, %c0_202, %c0_203] : memref<3x1x150xf32, #tpu.memory_space<vmem>>, vector<1x1x150xf32>
    %312 = vector.shape_cast %311 : vector<1x1x150xf32> to vector<1x150xf32>
    %313 = vector.broadcast %312 : vector<1x150xf32> to vector<2x150xf32>
    %314 = arith.addf %310, %313 : vector<2x150xf32>
    %c1_204 = arith.constant 1 : index
    %c0_205 = arith.constant 0 : index
    %c0_206 = arith.constant 0 : index
    %315 = vector.load %arg3[%c1_204, %c0_205, %c0_206] : memref<3x150x150xf32, #tpu.memory_space<vmem>>, vector<1x150x150xf32>
    %316 = vector.shape_cast %315 : vector<1x150x150xf32> to vector<150x150xf32>
    %cst_207 = arith.constant dense<0.000000e+00> : vector<2x150xf32>
    %317 = tpu.matmul %307, %316, %cst_207 {dimension_numbers = #tpu.dot_dimension_numbers<[1], [0], [0], [1], [0, 0, 1, 1], [], []>} : vector<2x150xf32>, vector<150x150xf32>, vector<2x150xf32> -> vector<2x150xf32>
    %c1_208 = arith.constant 1 : index
    %c0_209 = arith.constant 0 : index
    %c0_210 = arith.constant 0 : index
    %318 = vector.load %arg5[%c1_208, %c0_209, %c0_210] : memref<3x1x150xf32, #tpu.memory_space<vmem>>, vector<1x1x150xf32>
    %319 = vector.shape_cast %318 : vector<1x1x150xf32> to vector<1x150xf32>
    %320 = vector.broadcast %319 : vector<1x150xf32> to vector<2x150xf32>
    %321 = arith.addf %317, %320 : vector<2x150xf32>
    %c2_211 = arith.constant 2 : index
    %c0_212 = arith.constant 0 : index
    %c0_213 = arith.constant 0 : index
    %322 = vector.load %arg3[%c2_211, %c0_212, %c0_213] : memref<3x150x150xf32, #tpu.memory_space<vmem>>, vector<1x150x150xf32>
    %323 = vector.shape_cast %322 : vector<1x150x150xf32> to vector<150x150xf32>
    %cst_214 = arith.constant dense<0.000000e+00> : vector<2x150xf32>
    %324 = tpu.matmul %307, %323, %cst_214 {dimension_numbers = #tpu.dot_dimension_numbers<[1], [0], [0], [1], [0, 0, 1, 1], [], []>} : vector<2x150xf32>, vector<150x150xf32>, vector<2x150xf32> -> vector<2x150xf32>
    %c2_215 = arith.constant 2 : index
    %c0_216 = arith.constant 0 : index
    %c0_217 = arith.constant 0 : index
    %325 = vector.load %arg5[%c2_215, %c0_216, %c0_217] : memref<3x1x150xf32, #tpu.memory_space<vmem>>, vector<1x1x150xf32>
    %326 = vector.shape_cast %325 : vector<1x1x150xf32> to vector<1x150xf32>
    %327 = vector.broadcast %326 : vector<1x150xf32> to vector<2x150xf32>
    %328 = arith.addf %324, %327 : vector<2x150xf32>
    %329 = vector.extract_strided_slice %72 {offsets = [10, 0], sizes = [2, 150], strides = [1, 1]} : vector<16x150xf32> to vector<2x150xf32>
    %330 = arith.addf %329, %314 : vector<2x150xf32>
    %331 = arith.negf %330 : vector<2x150xf32>
    %332 = math.exp %331 : vector<2x150xf32>
    %cst_218 = arith.constant 1.000000e+00 : f32
    %333 = vector.broadcast %cst_218 : f32 to vector<2x150xf32>
    %334 = arith.addf %333, %332 : vector<2x150xf32>
    %335 = arith.divf %333, %334 : vector<2x150xf32>
    %336 = vector.extract_strided_slice %79 {offsets = [10, 0], sizes = [2, 150], strides = [1, 1]} : vector<16x150xf32> to vector<2x150xf32>
    %337 = arith.addf %336, %321 : vector<2x150xf32>
    %338 = arith.negf %337 : vector<2x150xf32>
    %339 = math.exp %338 : vector<2x150xf32>
    %cst_219 = arith.constant 1.000000e+00 : f32
    %340 = vector.broadcast %cst_219 : f32 to vector<2x150xf32>
    %341 = arith.addf %340, %339 : vector<2x150xf32>
    %342 = arith.divf %340, %341 : vector<2x150xf32>
    %343 = vector.extract_strided_slice %86 {offsets = [10, 0], sizes = [2, 150], strides = [1, 1]} : vector<16x150xf32> to vector<2x150xf32>
    %344 = arith.mulf %335, %328 : vector<2x150xf32>
    %345 = arith.addf %343, %344 : vector<2x150xf32>
    %346 = math.tanh %345 : vector<2x150xf32>
    %cst_220 = arith.constant 1.000000e+00 : f32
    %347 = vector.broadcast %cst_220 : f32 to vector<2x150xf32>
    %348 = arith.subf %347, %342 : vector<2x150xf32>
    %349 = arith.mulf %348, %346 : vector<2x150xf32>
    %350 = arith.mulf %342, %307 : vector<2x150xf32>
    %351 = arith.addf %349, %350 : vector<2x150xf32>
    %c0_221 = arith.constant 0 : index
    %c0_222 = arith.constant 0 : index
    %c0_223 = arith.constant 0 : index
    %352 = vector.load %arg3[%c0_221, %c0_222, %c0_223] : memref<3x150x150xf32, #tpu.memory_space<vmem>>, vector<1x150x150xf32>
    %353 = vector.shape_cast %352 : vector<1x150x150xf32> to vector<150x150xf32>
    %cst_224 = arith.constant dense<0.000000e+00> : vector<2x150xf32>
    %354 = tpu.matmul %351, %353, %cst_224 {dimension_numbers = #tpu.dot_dimension_numbers<[1], [0], [0], [1], [0, 0, 1, 1], [], []>} : vector<2x150xf32>, vector<150x150xf32>, vector<2x150xf32> -> vector<2x150xf32>
    %c0_225 = arith.constant 0 : index
    %c0_226 = arith.constant 0 : index
    %c0_227 = arith.constant 0 : index
    %355 = vector.load %arg5[%c0_225, %c0_226, %c0_227] : memref<3x1x150xf32, #tpu.memory_space<vmem>>, vector<1x1x150xf32>
    %356 = vector.shape_cast %355 : vector<1x1x150xf32> to vector<1x150xf32>
    %357 = vector.broadcast %356 : vector<1x150xf32> to vector<2x150xf32>
    %358 = arith.addf %354, %357 : vector<2x150xf32>
    %c1_228 = arith.constant 1 : index
    %c0_229 = arith.constant 0 : index
    %c0_230 = arith.constant 0 : index
    %359 = vector.load %arg3[%c1_228, %c0_229, %c0_230] : memref<3x150x150xf32, #tpu.memory_space<vmem>>, vector<1x150x150xf32>
    %360 = vector.shape_cast %359 : vector<1x150x150xf32> to vector<150x150xf32>
    %cst_231 = arith.constant dense<0.000000e+00> : vector<2x150xf32>
    %361 = tpu.matmul %351, %360, %cst_231 {dimension_numbers = #tpu.dot_dimension_numbers<[1], [0], [0], [1], [0, 0, 1, 1], [], []>} : vector<2x150xf32>, vector<150x150xf32>, vector<2x150xf32> -> vector<2x150xf32>
    %c1_232 = arith.constant 1 : index
    %c0_233 = arith.constant 0 : index
    %c0_234 = arith.constant 0 : index
    %362 = vector.load %arg5[%c1_232, %c0_233, %c0_234] : memref<3x1x150xf32, #tpu.memory_space<vmem>>, vector<1x1x150xf32>
    %363 = vector.shape_cast %362 : vector<1x1x150xf32> to vector<1x150xf32>
    %364 = vector.broadcast %363 : vector<1x150xf32> to vector<2x150xf32>
    %365 = arith.addf %361, %364 : vector<2x150xf32>
    %c2_235 = arith.constant 2 : index
    %c0_236 = arith.constant 0 : index
    %c0_237 = arith.constant 0 : index
    %366 = vector.load %arg3[%c2_235, %c0_236, %c0_237] : memref<3x150x150xf32, #tpu.memory_space<vmem>>, vector<1x150x150xf32>
    %367 = vector.shape_cast %366 : vector<1x150x150xf32> to vector<150x150xf32>
    %cst_238 = arith.constant dense<0.000000e+00> : vector<2x150xf32>
    %368 = tpu.matmul %351, %367, %cst_238 {dimension_numbers = #tpu.dot_dimension_numbers<[1], [0], [0], [1], [0, 0, 1, 1], [], []>} : vector<2x150xf32>, vector<150x150xf32>, vector<2x150xf32> -> vector<2x150xf32>
    %c2_239 = arith.constant 2 : index
    %c0_240 = arith.constant 0 : index
    %c0_241 = arith.constant 0 : index
    %369 = vector.load %arg5[%c2_239, %c0_240, %c0_241] : memref<3x1x150xf32, #tpu.memory_space<vmem>>, vector<1x1x150xf32>
    %370 = vector.shape_cast %369 : vector<1x1x150xf32> to vector<1x150xf32>
    %371 = vector.broadcast %370 : vector<1x150xf32> to vector<2x150xf32>
    %372 = arith.addf %368, %371 : vector<2x150xf32>
    %373 = vector.extract_strided_slice %72 {offsets = [12, 0], sizes = [2, 150], strides = [1, 1]} : vector<16x150xf32> to vector<2x150xf32>
    %374 = arith.addf %373, %358 : vector<2x150xf32>
    %375 = arith.negf %374 : vector<2x150xf32>
    %376 = math.exp %375 : vector<2x150xf32>
    %cst_242 = arith.constant 1.000000e+00 : f32
    %377 = vector.broadcast %cst_242 : f32 to vector<2x150xf32>
    %378 = arith.addf %377, %376 : vector<2x150xf32>
    %379 = arith.divf %377, %378 : vector<2x150xf32>
    %380 = vector.extract_strided_slice %79 {offsets = [12, 0], sizes = [2, 150], strides = [1, 1]} : vector<16x150xf32> to vector<2x150xf32>
    %381 = arith.addf %380, %365 : vector<2x150xf32>
    %382 = arith.negf %381 : vector<2x150xf32>
    %383 = math.exp %382 : vector<2x150xf32>
    %cst_243 = arith.constant 1.000000e+00 : f32
    %384 = vector.broadcast %cst_243 : f32 to vector<2x150xf32>
    %385 = arith.addf %384, %383 : vector<2x150xf32>
    %386 = arith.divf %384, %385 : vector<2x150xf32>
    %387 = vector.extract_strided_slice %86 {offsets = [12, 0], sizes = [2, 150], strides = [1, 1]} : vector<16x150xf32> to vector<2x150xf32>
    %388 = arith.mulf %379, %372 : vector<2x150xf32>
    %389 = arith.addf %387, %388 : vector<2x150xf32>
    %390 = math.tanh %389 : vector<2x150xf32>
    %cst_244 = arith.constant 1.000000e+00 : f32
    %391 = vector.broadcast %cst_244 : f32 to vector<2x150xf32>
    %392 = arith.subf %391, %386 : vector<2x150xf32>
    %393 = arith.mulf %392, %390 : vector<2x150xf32>
    %394 = arith.mulf %386, %351 : vector<2x150xf32>
    %395 = arith.addf %393, %394 : vector<2x150xf32>
    %c0_245 = arith.constant 0 : index
    %c0_246 = arith.constant 0 : index
    %c0_247 = arith.constant 0 : index
    %396 = vector.load %arg3[%c0_245, %c0_246, %c0_247] : memref<3x150x150xf32, #tpu.memory_space<vmem>>, vector<1x150x150xf32>
    %397 = vector.shape_cast %396 : vector<1x150x150xf32> to vector<150x150xf32>
    %cst_248 = arith.constant dense<0.000000e+00> : vector<2x150xf32>
    %398 = tpu.matmul %395, %397, %cst_248 {dimension_numbers = #tpu.dot_dimension_numbers<[1], [0], [0], [1], [0, 0, 1, 1], [], []>} : vector<2x150xf32>, vector<150x150xf32>, vector<2x150xf32> -> vector<2x150xf32>
    %c0_249 = arith.constant 0 : index
    %c0_250 = arith.constant 0 : index
    %c0_251 = arith.constant 0 : index
    %399 = vector.load %arg5[%c0_249, %c0_250, %c0_251] : memref<3x1x150xf32, #tpu.memory_space<vmem>>, vector<1x1x150xf32>
    %400 = vector.shape_cast %399 : vector<1x1x150xf32> to vector<1x150xf32>
    %401 = vector.broadcast %400 : vector<1x150xf32> to vector<2x150xf32>
    %402 = arith.addf %398, %401 : vector<2x150xf32>
    %c1_252 = arith.constant 1 : index
    %c0_253 = arith.constant 0 : index
    %c0_254 = arith.constant 0 : index
    %403 = vector.load %arg3[%c1_252, %c0_253, %c0_254] : memref<3x150x150xf32, #tpu.memory_space<vmem>>, vector<1x150x150xf32>
    %404 = vector.shape_cast %403 : vector<1x150x150xf32> to vector<150x150xf32>
    %cst_255 = arith.constant dense<0.000000e+00> : vector<2x150xf32>
    %405 = tpu.matmul %395, %404, %cst_255 {dimension_numbers = #tpu.dot_dimension_numbers<[1], [0], [0], [1], [0, 0, 1, 1], [], []>} : vector<2x150xf32>, vector<150x150xf32>, vector<2x150xf32> -> vector<2x150xf32>
    %c1_256 = arith.constant 1 : index
    %c0_257 = arith.constant 0 : index
    %c0_258 = arith.constant 0 : index
    %406 = vector.load %arg5[%c1_256, %c0_257, %c0_258] : memref<3x1x150xf32, #tpu.memory_space<vmem>>, vector<1x1x150xf32>
    %407 = vector.shape_cast %406 : vector<1x1x150xf32> to vector<1x150xf32>
    %408 = vector.broadcast %407 : vector<1x150xf32> to vector<2x150xf32>
    %409 = arith.addf %405, %408 : vector<2x150xf32>
    %c2_259 = arith.constant 2 : index
    %c0_260 = arith.constant 0 : index
    %c0_261 = arith.constant 0 : index
    %410 = vector.load %arg3[%c2_259, %c0_260, %c0_261] : memref<3x150x150xf32, #tpu.memory_space<vmem>>, vector<1x150x150xf32>
    %411 = vector.shape_cast %410 : vector<1x150x150xf32> to vector<150x150xf32>
    %cst_262 = arith.constant dense<0.000000e+00> : vector<2x150xf32>
    %412 = tpu.matmul %395, %411, %cst_262 {dimension_numbers = #tpu.dot_dimension_numbers<[1], [0], [0], [1], [0, 0, 1, 1], [], []>} : vector<2x150xf32>, vector<150x150xf32>, vector<2x150xf32> -> vector<2x150xf32>
    %c2_263 = arith.constant 2 : index
    %c0_264 = arith.constant 0 : index
    %c0_265 = arith.constant 0 : index
    %413 = vector.load %arg5[%c2_263, %c0_264, %c0_265] : memref<3x1x150xf32, #tpu.memory_space<vmem>>, vector<1x1x150xf32>
    %414 = vector.shape_cast %413 : vector<1x1x150xf32> to vector<1x150xf32>
    %415 = vector.broadcast %414 : vector<1x150xf32> to vector<2x150xf32>
    %416 = arith.addf %412, %415 : vector<2x150xf32>
    %417 = vector.extract_strided_slice %72 {offsets = [14, 0], sizes = [2, 150], strides = [1, 1]} : vector<16x150xf32> to vector<2x150xf32>
    %418 = arith.addf %417, %402 : vector<2x150xf32>
    %419 = arith.negf %418 : vector<2x150xf32>
    %420 = math.exp %419 : vector<2x150xf32>
    %cst_266 = arith.constant 1.000000e+00 : f32
    %421 = vector.broadcast %cst_266 : f32 to vector<2x150xf32>
    %422 = arith.addf %421, %420 : vector<2x150xf32>
    %423 = arith.divf %421, %422 : vector<2x150xf32>
    %424 = vector.extract_strided_slice %79 {offsets = [14, 0], sizes = [2, 150], strides = [1, 1]} : vector<16x150xf32> to vector<2x150xf32>
    %425 = arith.addf %424, %409 : vector<2x150xf32>
    %426 = arith.negf %425 : vector<2x150xf32>
    %427 = math.exp %426 : vector<2x150xf32>
    %cst_267 = arith.constant 1.000000e+00 : f32
    %428 = vector.broadcast %cst_267 : f32 to vector<2x150xf32>
    %429 = arith.addf %428, %427 : vector<2x150xf32>
    %430 = arith.divf %428, %429 : vector<2x150xf32>
    %431 = vector.extract_strided_slice %86 {offsets = [14, 0], sizes = [2, 150], strides = [1, 1]} : vector<16x150xf32> to vector<2x150xf32>
    %432 = arith.mulf %423, %416 : vector<2x150xf32>
    %433 = arith.addf %431, %432 : vector<2x150xf32>
    %434 = math.tanh %433 : vector<2x150xf32>
    %cst_268 = arith.constant 1.000000e+00 : f32
    %435 = vector.broadcast %cst_268 : f32 to vector<2x150xf32>
    %436 = arith.subf %435, %430 : vector<2x150xf32>
    %437 = arith.mulf %436, %434 : vector<2x150xf32>
    %438 = arith.mulf %430, %395 : vector<2x150xf32>
    %439 = arith.addf %437, %438 : vector<2x150xf32>
    %c0_269 = arith.constant 0 : index
    %c0_270 = arith.constant 0 : index
    %c0_271 = arith.constant 0 : index
    %440 = vector.load %arg6[%c0_269, %c0_270, %c0_271] : memref<3x300x150xf32, #tpu.memory_space<vmem>>, vector<1x300x150xf32>
    %441 = vector.shape_cast %440 : vector<1x300x150xf32> to vector<300x150xf32>
    %cst_272 = arith.constant dense<0.000000e+00> : vector<2x150xf32>
    %442 = tpu.matmul %65, %441, %cst_272 {dimension_numbers = #tpu.dot_dimension_numbers<[1], [0], [0], [1], [0, 0, 1, 1], [], []>} : vector<2x300xf32>, vector<300x150xf32>, vector<2x150xf32> -> vector<2x150xf32>
    %c0_273 = arith.constant 0 : index
    %c0_274 = arith.constant 0 : index
    %c0_275 = arith.constant 0 : index
    %443 = vector.load %arg7[%c0_273, %c0_274, %c0_275] : memref<3x1x150xf32, #tpu.memory_space<vmem>>, vector<1x1x150xf32>
    %444 = vector.shape_cast %443 : vector<1x1x150xf32> to vector<1x150xf32>
    %445 = vector.broadcast %444 : vector<1x150xf32> to vector<2x150xf32>
    %446 = arith.addf %442, %445 : vector<2x150xf32>
    %c1_276 = arith.constant 1 : index
    %c0_277 = arith.constant 0 : index
    %c0_278 = arith.constant 0 : index
    %447 = vector.load %arg6[%c1_276, %c0_277, %c0_278] : memref<3x300x150xf32, #tpu.memory_space<vmem>>, vector<1x300x150xf32>
    %448 = vector.shape_cast %447 : vector<1x300x150xf32> to vector<300x150xf32>
    %cst_279 = arith.constant dense<0.000000e+00> : vector<2x150xf32>
    %449 = tpu.matmul %65, %448, %cst_279 {dimension_numbers = #tpu.dot_dimension_numbers<[1], [0], [0], [1], [0, 0, 1, 1], [], []>} : vector<2x300xf32>, vector<300x150xf32>, vector<2x150xf32> -> vector<2x150xf32>
    %c1_280 = arith.constant 1 : index
    %c0_281 = arith.constant 0 : index
    %c0_282 = arith.constant 0 : index
    %450 = vector.load %arg7[%c1_280, %c0_281, %c0_282] : memref<3x1x150xf32, #tpu.memory_space<vmem>>, vector<1x1x150xf32>
    %451 = vector.shape_cast %450 : vector<1x1x150xf32> to vector<1x150xf32>
    %452 = vector.broadcast %451 : vector<1x150xf32> to vector<2x150xf32>
    %453 = arith.addf %449, %452 : vector<2x150xf32>
    %c2_283 = arith.constant 2 : index
    %c0_284 = arith.constant 0 : index
    %c0_285 = arith.constant 0 : index
    %454 = vector.load %arg6[%c2_283, %c0_284, %c0_285] : memref<3x300x150xf32, #tpu.memory_space<vmem>>, vector<1x300x150xf32>
    %455 = vector.shape_cast %454 : vector<1x300x150xf32> to vector<300x150xf32>
    %cst_286 = arith.constant dense<0.000000e+00> : vector<2x150xf32>
    %456 = tpu.matmul %65, %455, %cst_286 {dimension_numbers = #tpu.dot_dimension_numbers<[1], [0], [0], [1], [0, 0, 1, 1], [], []>} : vector<2x300xf32>, vector<300x150xf32>, vector<2x150xf32> -> vector<2x150xf32>
    %c2_287 = arith.constant 2 : index
    %c0_288 = arith.constant 0 : index
    %c0_289 = arith.constant 0 : index
    %457 = vector.load %arg7[%c2_287, %c0_288, %c0_289] : memref<3x1x150xf32, #tpu.memory_space<vmem>>, vector<1x1x150xf32>
    %458 = vector.shape_cast %457 : vector<1x1x150xf32> to vector<1x150xf32>
    %459 = vector.broadcast %458 : vector<1x150xf32> to vector<2x150xf32>
    %460 = arith.addf %456, %459 : vector<2x150xf32>
    %c0_290 = arith.constant 0 : index
    %c0_291 = arith.constant 0 : index
    %c0_292 = arith.constant 0 : index
    %461 = vector.load %arg8[%c0_290, %c0_291, %c0_292] : memref<3x1x150xf32, #tpu.memory_space<vmem>>, vector<1x1x150xf32>
    %462 = vector.shape_cast %461 : vector<1x1x150xf32> to vector<1x150xf32>
    %463 = vector.broadcast %462 : vector<1x150xf32> to vector<2x150xf32>
    %464 = arith.addf %446, %463 : vector<2x150xf32>
    %465 = arith.negf %464 : vector<2x150xf32>
    %466 = math.exp %465 : vector<2x150xf32>
    %cst_293 = arith.constant 1.000000e+00 : f32
    %467 = vector.broadcast %cst_293 : f32 to vector<2x150xf32>
    %468 = arith.addf %467, %466 : vector<2x150xf32>
    %469 = arith.divf %467, %468 : vector<2x150xf32>
    %c1_294 = arith.constant 1 : index
    %c0_295 = arith.constant 0 : index
    %c0_296 = arith.constant 0 : index
    %470 = vector.load %arg8[%c1_294, %c0_295, %c0_296] : memref<3x1x150xf32, #tpu.memory_space<vmem>>, vector<1x1x150xf32>
    %471 = vector.shape_cast %470 : vector<1x1x150xf32> to vector<1x150xf32>
    %472 = vector.broadcast %471 : vector<1x150xf32> to vector<2x150xf32>
    %473 = arith.addf %453, %472 : vector<2x150xf32>
    %474 = arith.negf %473 : vector<2x150xf32>
    %475 = math.exp %474 : vector<2x150xf32>
    %cst_297 = arith.constant 1.000000e+00 : f32
    %476 = vector.broadcast %cst_297 : f32 to vector<2x150xf32>
    %477 = arith.addf %476, %475 : vector<2x150xf32>
    %478 = arith.divf %476, %477 : vector<2x150xf32>
    %c2_298 = arith.constant 2 : index
    %c0_299 = arith.constant 0 : index
    %c0_300 = arith.constant 0 : index
    %479 = vector.load %arg8[%c2_298, %c0_299, %c0_300] : memref<3x1x150xf32, #tpu.memory_space<vmem>>, vector<1x1x150xf32>
    %480 = vector.shape_cast %479 : vector<1x1x150xf32> to vector<1x150xf32>
    %481 = vector.broadcast %480 : vector<1x150xf32> to vector<2x150xf32>
    %482 = arith.mulf %469, %481 : vector<2x150xf32>
    %483 = arith.addf %460, %482 : vector<2x150xf32>
    %484 = math.tanh %483 : vector<2x150xf32>
    %cst_301 = arith.constant 1.000000e+00 : f32
    %485 = vector.broadcast %cst_301 : f32 to vector<2x150xf32>
    %486 = arith.subf %485, %478 : vector<2x150xf32>
    %487 = arith.mulf %486, %484 : vector<2x150xf32>
    %c0_302 = arith.constant 0 : index
    %c0_303 = arith.constant 0 : index
    %c0_304 = arith.constant 0 : index
    %488 = vector.load %arg9[%c0_302, %c0_303, %c0_304] : memref<2x150x3xf32, #tpu.memory_space<vmem>>, vector<1x150x3xf32>
    %489 = vector.shape_cast %488 : vector<1x150x3xf32> to vector<150x3xf32>
    %cst_305 = arith.constant dense<0.000000e+00> : vector<2x3xf32>
    %490 = tpu.matmul %439, %489, %cst_305 {dimension_numbers = #tpu.dot_dimension_numbers<[1], [0], [0], [1], [0, 0, 1, 1], [], []>} : vector<2x150xf32>, vector<150x3xf32>, vector<2x3xf32> -> vector<2x3xf32>
    %c1_306 = arith.constant 1 : index
    %c0_307 = arith.constant 0 : index
    %c0_308 = arith.constant 0 : index
    %491 = vector.load %arg9[%c1_306, %c0_307, %c0_308] : memref<2x150x3xf32, #tpu.memory_space<vmem>>, vector<1x150x3xf32>
    %492 = vector.shape_cast %491 : vector<1x150x3xf32> to vector<150x3xf32>
    %cst_309 = arith.constant dense<0.000000e+00> : vector<2x3xf32>
    %493 = tpu.matmul %487, %492, %cst_309 {dimension_numbers = #tpu.dot_dimension_numbers<[1], [0], [0], [1], [0, 0, 1, 1], [], []>} : vector<2x150xf32>, vector<150x3xf32>, vector<2x3xf32> -> vector<2x3xf32>
    %494 = arith.addf %490, %493 : vector<2x3xf32>
    %c0_310 = arith.constant 0 : index
    %c0_311 = arith.constant 0 : index
    %495 = vector.load %arg10[%c0_310, %c0_311] : memref<1x3xf32, #tpu.memory_space<vmem>>, vector<1x3xf32>
    %496 = vector.broadcast %495 : vector<1x3xf32> to vector<2x3xf32>
    %497 = arith.addf %494, %496 : vector<2x3xf32>
    %c0_312 = arith.constant 0 : index
    %c0_313 = arith.constant 0 : index
    %498 = vector.load %arg11[%c0_312, %c0_313] : memref<2x3xf32, #tpu.memory_space<vmem>>, vector<2x3xf32>
    tpu.vector_store %arg11[%c0_312, %c0_313], %497 {strides = array<i32>} : memref<2x3xf32, #tpu.memory_space<vmem>>, vector<2x3xf32>,
    return
  }
}

</mosaic_0001>

<bundles_post_ra>
// kernel: tpu_custom_call.1
= control target key start
LH: loop header
LB: loop body
LE: loop exit
PB: predicated region body
PF: predicated region fallthrough
CT: control target
= control target key end

     0   :  { %s10408_s0 = inlined_call_operand.vmem [shape: s32[2,8], index: 0, kind: input, shape index: {}]   ;;  %s10409_s1 = inlined_call_operand.vmem [shape: f32[50,1,300], index: 1, kind: input, shape index: {}]   ;;  %s10410_s2 = inlined_call_operand.vmem [shape: f32[3,300,150], index: 2, kind: input, shape index: {}]   ;;  %s10411_s3 = inlined_call_operand.vmem [shape: f32[3,150,150], index: 3, kind: input, shape index: {}]   ;;  %s10412_s4 = inlined_call_operand.vmem [shape: f32[3,1,150], index: 4, kind: input, shape index: {}]   ;;  %s10413_s5 = inlined_call_operand.vmem [shape: f32[3,1,150], index: 5, kind: input, shape index: {}]   ;;  %s10414_s6 = inlined_call_operand.vmem [shape: f32[3,300,150], index: 6, kind: input, shape index: {}]   ;;  %s10415_s7 = inlined_call_operand.vmem [shape: f32[3,1,150], index: 7, kind: input, shape index: {}]   ;;  %s10416_s8 = inlined_call_operand.vmem [shape: f32[3,1,150], index: 8, kind: input, shape index: {}]   ;;  %s10417_s9 = inlined_call_operand.vmem [shape: f32[2,150,3], index: 9, kind: input, shape index: {}]   ;;  %s10418_s10 = inlined_call_operand.vmem [shape: f32[1,3], index: 10, kind: input, shape index: {}]   ;;  %s10419_s11 = inlined_call_operand.hbm [shape: f32[2,3], index: 11, kind: output, shape index: {}]  }
   0x1   :  { %10518 = sst [smem:[#allocation55_spill]] %s10415_s7 }
   0x2   :  { %10519 = sst [smem:[#allocation56_spill]] %s10416_s8 }
   0x3   :  { %10520 = sst [smem:[#allocation57_spill]] %s10418_s10 }
   0x4   :  { %10521 = sst [smem:[#allocation58_spill]] %s10419_s11 }
   0x5   :  { %16 = vsyncpa [#allocation4], 0 }
   0x6   :  { %17 = vsyncpa [#allocation3], 0  ;;  %s24_s19 = sshll.u32 %s10408_s0, 4  ;;  %s25_s19 = int_to_ptr.vmem [resolvable:$true] %s24_s19 }
   0x7   :  { %s6782_s20 = scalar_lea.vmem %s25_s19, 32  ;;  %p6787_p1 = scmp.lt.s32.totalorder %s25_s19, %s25_s19 }
   0x8   :  { %p6783_p0 = scmp.ne.s32.totalorder %s25_s19, %s6782_s20  ;;  %p6788_p2 = scmp.lt.s32.totalorder %s6782_s20, %s6782_s20 }
   0xa   :  { %p6789_p3 = por %p6788_p2, %p6787_p1 }
   0xc   :  { %p6790_p4 = pnand %p6789_p3, %p6783_p0 }
   0xe   :  { %6793 = shalt.err (!%p6790_p4)
}
   0xf   :  { %s6820_s21 = smov [#allocation2]  }
  0x10   :  { %27 = dma.vmem_to_smem %s25_s19, 32, %s6820_s21, [#allocation4]  }
  0x11   :  { %6816 = dma.done.wait [#allocation4], 32  }
  0x12   :  { %6817 = vsyncadd [#allocation4], 4294967264 }
  0x13   :  { %51 = sfence }
  0x14   :  { %v425_v0 = vld [vmem:[%s10410_s2 + $0x8] sm:$0xff]  ;;  %v427_v1 = vld [vmem:[%s10410_s2 + $0x18] sm:$0xff]  ;;  %v424_v5 = vld [vmem:[%s10410_s2] sm:$0xff]  ;;  %s7044_s0 = sld [smem:[#allocation2]]  ;;  %s7066_s20 = sld [smem:[#allocation2 + $0x1]]  ;;  %vm372_vm0 = vcmask 1040384  }
  0x15   :  { %v4634_v2 = vld [vmem:[%s10410_s2 + $0x268] sm:$0xff]  ;;  %v5167_v3 = vpack.c.bf16 %v427_v1, %v425_v0  ;;  %v4636_v4 = vld [vmem:[%s10410_s2 + $0x278] sm:$0xff]  ;;  %v426_v6 = vld [vmem:[%s10410_s2 + $0x10] sm:$0xff]  ;;  %s7055_s13 = sld [smem:[#allocation2 + $0x80]]  ;;  %s7074_s25 = sld [smem:[#allocation2 + $0x81]]  ;;  %vm376_vm1 = vcmask 1041408  }
  0x16   :  { %v5245_v7 = vpack.c.bf16 %v4636_v4, %v4634_v2  ;;  %v5169_v8 = vpack.c.bf16 %v426_v6, %v424_v5  ;;  %v4633_v9 = vld [vmem:[%s10410_s2 + $0x260] sm:$0xff]  ;;  %v4635_v10 = vld [vmem:[%s10410_s2 + $0x270] sm:$0xff]  ;;  %v429_v11 = vld [vmem:[%s10410_s2 + $0x28] sm:$0xff]  ;;  %s7085_s14 = sld [smem:[#allocation2 + $0x2]]  ;;  %s7105_s29 = sld [smem:[#allocation2 + $0x3]]  ;;  %vm380_vm2 = vcmask 1042432  }
  0x17   :  { %5168 = vmatprep.subr.bf16.mxu0 %v5167_v3  ;;  %v5247_v12 = vpack.c.bf16 %v4635_v10, %v4633_v9  ;;  %v431_v13 = vld [vmem:[%s10410_s2 + $0x38] sm:$0xff]  ;;  %v4638_v14 = vld [vmem:[%s10410_s2 + $0x288] sm:$0xff]  ;;  %v428_v18 = vld [vmem:[%s10410_s2 + $0x20] sm:$0xff]  ;;  %s7102_s27 = sld [smem:[#allocation2 + $0x82]]  ;;  %s7127_s12 = sld [smem:[#allocation2 + $0x83]]  ;;  %vm384_vm3 = vcmask 1043456  }
  0x18   :  { %v4640_v15 = vld [vmem:[%s10410_s2 + $0x298] sm:$0xff]  ;;  %5246 = vmatprep.subr.bf16.mxu1 %v5245_v7  ;;  %5170 = vmatpush1.bf16.msra.mxu0 %v5169_v8  ;;  %v5171_v16 = vpack.c.bf16 %v431_v13, %v429_v11  ;;  %v430_v19 = vld [vmem:[%s10410_s2 + $0x30] sm:$0xff]  ;;  %v4637_v20 = vld [vmem:[%s10410_s2 + $0x280] sm:$0xff]  ;;  %s7171_s23 = sld [smem:[#allocation2 + $0x84]]  ;;  %s7262_s17 = sld [smem:[#allocation2 + $0x5]]  ;;  %vm388_vm4 = vcmask 1044480  }
  0x19   :  { %v5249_v17 = vpack.c.bf16 %v4640_v15, %v4638_v14  ;;  %5248 = vmatpush1.bf16.msra.mxu1 %v5247_v12  ;;  %v5173_v21 = vpack.c.bf16 %v430_v19, %v428_v18  ;;  %v4639_v22 = vld [vmem:[%s10410_s2 + $0x290] sm:$0xff]  ;;  %v433_v23 = vld [vmem:[%s10410_s2 + $0x48] sm:$0xff]  ;;  %v435_v24 = vld [vmem:[%s10410_s2 + $0x58] sm:$0xff]  ;;  %s7318_s18 = sld [smem:[#allocation2 + $0x85]]  ;;  %s7353_s21 = sld [smem:[#allocation2 + $0x6]]  ;;  %vm392_vm5 = vcmask 1045504  }
  0x1a   :  { %5172 = vmatprep.subr.bf16.mxu0 %v5171_v16  ;;  %v5251_v25 = vpack.c.bf16 %v4639_v22, %v4637_v20  ;;  %v5175_v26 = vpack.c.bf16 %v435_v24, %v433_v23  ;;  %v4642_v27 = vld [vmem:[%s10410_s2 + $0x2a8] sm:$0xff]  ;;  %v4644_v28 = vld [vmem:[%s10410_s2 + $0x2b8] sm:$0xff]  ;;  %v432_v29 = vld [vmem:[%s10410_s2 + $0x40] sm:$0xff]  ;;  %s53_s28 = smul.u32 3, %s7044_s0  ;;  %s7451_s10 = sld [smem:[#allocation2 + $0x7]]  ;;  %vm396_vm6 = vcmask 1046528  }
  0x1b   :  { %5250 = vmatprep.subr.bf16.mxu1 %v5249_v17  ;;  %v5253_v30 = vpack.c.bf16 %v4644_v28, %v4642_v27  ;;  %v434_v31 = vld [vmem:[%s10410_s2 + $0x50] sm:$0xff]  ;;  %v4641_v32 = vld [vmem:[%s10410_s2 + $0x2a0] sm:$0xff]  ;;  %v437_v35 = vld [vmem:[%s10410_s2 + $0x68] sm:$0xff]  ;;  %s57_s0 = smul.u32 3, %s7055_s13  ;;  %vm6821_vm7 = vmmov 1   ;;  %vm512_vm9 = vcmask 359424  }
  0x1c   :  { %v4643_v33 = vld [vmem:[%s10410_s2 + $0x2b0] sm:$0xff]  ;;  %5174 = vmatpush1.bf16.msra.mxu0 %v5173_v21  ;;  %v5177_v34 = vpack.c.bf16 %v434_v31, %v432_v29  ;;  %v439_v36 = vld [vmem:[%s10410_s2 + $0x78] sm:$0xff]  ;;  %v4646_v37 = vld [vmem:[%s10410_s2 + $0x2c8] sm:$0xff]  ;;  %s61_s30 = smul.u32 3, %s7066_s20  ;;  %s7151_s15 = scalar_lea.vmem %s10409_s1, %s53_s28  ;;  %vm1229_vm10 = vcmask 179200   ;;  %vm4565_vm11 = vcmask 17408  }
  0x1d   :  { %5252 = vmatpush1.bf16.msra.mxu1 %v5251_v25  ;;  %5176 = vmatprep.subr.bf16.mxu0 %v5175_v26  ;;  %v5255_v38 = vpack.c.bf16 %v4643_v33, %v4641_v32  ;;  %v5179_v39 = vpack.c.bf16 %v439_v36, %v437_v35  ;;  %v4648_v40 = vld [vmem:[%s10410_s2 + $0x2d8] sm:$0xff]  ;;  %v436_v41 = vld [vmem:[%s10410_s2 + $0x60] sm:$0xff]  ;;  %v438_v42 = vld [vmem:[%s10410_s2 + $0x70] sm:$0xff]  ;;  %s65_s19 = smul.u32 3, %s7074_s25  ;;  %s7153_s25 = sld [smem:[#allocation2 + $0x4]] }
  0x1e   :  { %5254 = vmatprep.subr.bf16.mxu1 %v5253_v30  ;;  %v5257_v43 = vpack.c.bf16 %v4648_v40, %v4646_v37  ;;  %v4645_v44 = vld [vmem:[%s10410_s2 + $0x2c0] sm:$0xff]  ;;  %v4647_v45 = vld [vmem:[%s10410_s2 + $0x2d0] sm:$0xff]  ;;  %v441_v46 = vld [vmem:[%s10410_s2 + $0x88] sm:$0xff]  ;;  %v5181_v50 = vpack.c.bf16 %v438_v42, %v436_v41  ;;  %s7193_s20 = scalar_lea.vmem %s10409_s1, %s57_s0  ;;  %s7198_s26 = scalar_lea.vmem %s10409_s1, %s61_s30 }
  0x1f   :  { %v443_v47 = vld [vmem:[%s10410_s2 + $0x98] sm:$0xff]  ;;  %v4650_v48 = vld [vmem:[%s10410_s2 + $0x2e8] sm:$0xff]  ;;  %v5259_v51 = vpack.c.bf16 %v4647_v45, %v4645_v44  ;;  %v440_v53 = vld [vmem:[%s10410_s2 + $0x80] sm:$0xff]  ;;  %s7223_s22 = scalar_lea.vmem %s10409_s1, %s65_s19  ;;  %s10523_s30 = smul.u32 3, %s7085_s14 }
  0x20   :  { %v4652_v49 = vld [vmem:[%s10410_s2 + $0x2f8] sm:$0xff]  ;;  %5178 = vmatpush1.bf16.msra.mxu0 %v5177_v34  ;;  %v5183_v52 = vpack.c.bf16 %v443_v47, %v441_v46  ;;  %v442_v54 = vld [vmem:[%s10410_s2 + $0x90] sm:$0xff]  ;;  %v4649_v55 = vld [vmem:[%s10410_s2 + $0x2e0] sm:$0xff]  ;;  %v117_v34 = vlaneseq  ;;  %s10525_s14 = smul.u32 3, %s7102_s27  ;;  %s7479_s27 = sld [smem:[#allocation2 + $0x87]] }
  0x21   :  { %5256 = vmatpush1.bf16.msra.mxu1 %v5255_v38  ;;  %5180 = vmatprep.subr.bf16.mxu0 %v5179_v39  ;;  %v5261_v56 = vpack.c.bf16 %v4652_v49, %v4650_v48  ;;  %v4651_v57 = vld [vmem:[%s10410_s2 + $0x2f0] sm:$0xff]  ;;  %v445_v58 = vld [vmem:[%s10410_s2 + $0xa8] sm:$0xff]  ;;  %v447_v59 = vld [vmem:[%s10410_s2 + $0xb8] sm:$0xff]  ;;  %v5185_v62 = vpack.c.bf16 %v442_v54, %v440_v53  ;;  %s7313_s24 = scalar_lea.vmem %s10409_s1, %s10523_s30  ;;  %s7385_s30 = sld [smem:[#allocation2 + $0x86]] }
  0x22   :  { %5258 = vmatprep.subr.bf16.mxu1 %v5257_v43  ;;  %v4654_v60 = vld [vmem:[%s10410_s2 + $0x308] sm:$0xff]  ;;  %v4656_v61 = vld [vmem:[%s10410_s2 + $0x318] sm:$0xff]  ;;  %v5263_v63 = vpack.c.bf16 %v4651_v57, %v4649_v55  ;;  %v5187_v0 = vpack.c.bf16 %v447_v59, %v445_v58  ;;  %v444_v1 = vld [vmem:[%s10410_s2 + $0xa0] sm:$0xff]  ;;  %v7136_v47 = vshrl.u32 %v117_v34, 7  ;;  %s7380_s8 = scalar_lea.vmem %s10409_s1, %s10525_s14  ;;  %s10526_s11 = smul.u32 3, %s7105_s29 }
  0x23   :  { %v446_v2 = vld [vmem:[%s10410_s2 + $0xb0] sm:$0xff]  ;;  %v4653_v3 = vld [vmem:[%s10410_s2 + $0x300] sm:$0xff]  ;;  %v5265_v4 = vpack.c.bf16 %v4656_v61, %v4654_v60  ;;  %v449_v6 = vld [vmem:[%s10410_s2 + $0xc8] sm:$0xff]  ;;  %s10527_s16 = smul.u32 3, %s7127_s12 }
  0x24   :  { %5182 = vmatpush1.bf16.msra.mxu0 %v5181_v50  ;;  %v4655_v5 = vld [vmem:[%s10410_s2 + $0x310] sm:$0xff]  ;;  %v451_v7 = vld [vmem:[%s10410_s2 + $0xd8] sm:$0xff]  ;;  %v4658_v8 = vld [vmem:[%s10410_s2 + $0x328] sm:$0xff]  ;;  %v5189_v10 = vpack.c.bf16 %v446_v2, %v444_v1  ;;  %s7416_s7 = scalar_lea.vmem %s10409_s1, %s10526_s11  ;;  %s10528_s28 = smul.u32 3, %s7153_s25 }
  0x25   :  { %5260 = vmatpush1.bf16.msra.mxu1 %v5259_v51  ;;  %5184 = vmatprep.subr.bf16.mxu0 %v5183_v52  ;;  %v4660_v9 = vld [vmem:[%s10410_s2 + $0x338] sm:$0xff]  ;;  %v5267_v11 = vpack.c.bf16 %v4655_v5, %v4653_v3  ;;  %v5191_v12 = vpack.c.bf16 %v451_v7, %v449_v6  ;;  %v448_v13 = vld [vmem:[%s10410_s2 + $0xc0] sm:$0xff]  ;;  %v450_v14 = vld [vmem:[%s10410_s2 + $0xd0] sm:$0xff]  ;;  %s82_s14 = scalar_lea.vmem %s10409_s1, %s10527_s16  ;;  %s109_s13 = smul.u32 3, %s7451_s10 }
  0x26   :  { %5262 = vmatprep.subr.bf16.mxu1 %v5261_v56  ;;  %v4657_v15 = vld [vmem:[%s10410_s2 + $0x320] sm:$0xff]  ;;  %v5269_v16 = vpack.c.bf16 %v4660_v9, %v4658_v8  ;;  %v4659_v17 = vld [vmem:[%s10410_s2 + $0x330] sm:$0xff]  ;;  %v453_v18 = vld [vmem:[%s10410_s2 + $0xe8] sm:$0xff]  ;;  %v5193_v22 = vpack.c.bf16 %v450_v14, %v448_v13  ;;  %s10770_s25 = sld [smem:[#allocation56_spill]] }
  0x27   :  { %v455_v19 = vld [vmem:[%s10410_s2 + $0xf8] sm:$0xff]  ;;  %v4662_v20 = vld [vmem:[%s10410_s2 + $0x348] sm:$0xff]  ;;  %v5271_v23 = vpack.c.bf16 %v4659_v17, %v4657_v15  ;;  %v452_v25 = vld [vmem:[%s10410_s2 + $0xe0] sm:$0xff]  ;;  %s105_s16 = smul.u32 3, %s7385_s30 }
  0x28   :  { %5186 = vmatpush1.bf16.msra.mxu0 %v5185_v62  ;;  %v4664_v21 = vld [vmem:[%s10410_s2 + $0x358] sm:$0xff]  ;;  %v5195_v24 = vpack.c.bf16 %v455_v19, %v453_v18  ;;  %v454_v26 = vld [vmem:[%s10410_s2 + $0xf0] sm:$0xff]  ;;  %v4661_v27 = vld [vmem:[%s10410_s2 + $0x340] sm:$0xff]  ;;  %v7316_v18 = vsub.s32 1, %v7136_v47 }
  0x29   :  { %5264 = vmatpush1.bf16.msra.mxu1 %v5263_v63  ;;  %5188 = vmatprep.subr.bf16.mxu0 %v5187_v0  ;;  %v5273_v28 = vpack.c.bf16 %v4664_v21, %v4662_v20  ;;  %v4663_v29 = vld [vmem:[%s10410_s2 + $0x350] sm:$0xff]  ;;  %v457_v30 = vld [vmem:[%s10410_s2 + $0x108] sm:$0xff]  ;;  %v459_v31 = vld [vmem:[%s10410_s2 + $0x118] sm:$0xff]  ;;  %v5197_v35 = vpack.c.bf16 %v454_v26, %v452_v25  ;;  %v7227_v0 = vsub.s32 0, %v7136_v47 }
  0x2a   :  { %5266 = vmatprep.subr.bf16.mxu1 %v5265_v4  ;;  %v4666_v32 = vld [vmem:[%s10410_s2 + $0x368] sm:$0xff]  ;;  %v4668_v33 = vld [vmem:[%s10410_s2 + $0x378] sm:$0xff]  ;;  %v5275_v36 = vpack.c.bf16 %v4663_v29, %v4661_v27  ;;  %v5199_v37 = vpack.c.bf16 %v459_v31, %v457_v30  ;;  %v456_v38 = vld [vmem:[%s10410_s2 + $0x100] sm:$0xff]  ;;  %10524 = vst [vmem:[#allocation9_spill] sm:$0xff] %v7316_v18  ;;  %v7383_v30 = vsub.s32 2, %v7136_v47 }
  0x2b   :  { %v458_v39 = vld [vmem:[%s10410_s2 + $0x110] sm:$0xff]  ;;  %v4665_v40 = vld [vmem:[%s10410_s2 + $0x360] sm:$0xff]  ;;  %v5277_v41 = vpack.c.bf16 %v4668_v33, %v4666_v32  ;;  %v461_v43 = vld [vmem:[%s10410_s2 + $0x128] sm:$0xff]  ;;  %10522 = vst [vmem:[#allocation8_spill] sm:$0xff] %v7227_v0 }
  0x2c   :  { %5190 = vmatpush1.bf16.msra.mxu0 %v5189_v10  ;;  %v4667_v42 = vld [vmem:[%s10410_s2 + $0x370] sm:$0xff]  ;;  %v463_v44 = vld [vmem:[%s10410_s2 + $0x138] sm:$0xff]  ;;  %v4670_v45 = vld [vmem:[%s10410_s2 + $0x388] sm:$0xff]  ;;  %v5201_v48 = vpack.c.bf16 %v458_v39, %v456_v38 }
  0x2d   :  { %5268 = vmatpush1.bf16.msra.mxu1 %v5267_v11  ;;  %5192 = vmatprep.subr.bf16.mxu0 %v5191_v12  ;;  %v4672_v46 = vld [vmem:[%s10410_s2 + $0x398] sm:$0xff]  ;;  %v7141_v49 = vld [vmem:[%s10410_s2 + $0x120] sm:$0xff]  ;;  %v7146_v50 = vld [vmem:[%s10410_s2 + $0x130] sm:$0xff]  ;;  %v5279_v51 = vpack.c.bf16 %v4667_v42, %v4665_v40  ;;  %v5203_v52 = vpack.c.bf16 %v463_v44, %v461_v43 }
  0x2e   :  { %5270 = vmatprep.subr.bf16.mxu1 %v5269_v16  ;;  %v7158_v53 = vld [vmem:[%s10410_s2 + $0x380] sm:$0xff]  ;;  %v7163_v54 = vld [vmem:[%s10410_s2 + $0x390] sm:$0xff]  ;;  %v7168_v55 = vld [vmem:[%s10410_s2 + $0x148] sm:$0xff]  ;;  %v5281_v56 = vpack.c.bf16 %v4672_v46, %v4670_v45  ;;  %v5205_v1 = vpack.c.bf16 %v7146_v50, %v7141_v49 }
  0x2f   :  { %v7176_v57 = vld [vmem:[%s10410_s2 + $0x158] sm:$0xff]  ;;  %v7181_v58 = vld [vmem:[%s10410_s2 + $0x3a8] sm:$0xff]  ;;  %v7203_v60 = vld [vmem:[%s10410_s2 + $0x140] sm:$0xff]  ;;  %v5283_v8 = vpack.c.bf16 %v7163_v54, %v7158_v53 }
  0x30   :  { %5194 = vmatpush1.bf16.msra.mxu0 %v5193_v22  ;;  %v7186_v59 = vld [vmem:[%s10410_s2 + $0x3b8] sm:$0xff]  ;;  %v7208_v61 = vld [vmem:[%s10410_s2 + $0x150] sm:$0xff]  ;;  %v7213_v62 = vld [vmem:[%s10410_s2 + $0x3a0] sm:$0xff]  ;;  %v5207_v9 = vpack.c.bf16 %v7176_v57, %v7168_v55 }
  0x31   :  { %5272 = vmatpush1.bf16.msra.mxu1 %v5271_v23  ;;  %5196 = vmatprep.subr.bf16.mxu0 %v5195_v24  ;;  %v7218_v63 = vld [vmem:[%s10410_s2 + $0x3b0] sm:$0xff]  ;;  %v7234_v2 = vld [vmem:[%s10410_s2 + $0x168] sm:$0xff]  ;;  %v7239_v3 = vld [vmem:[%s10410_s2 + $0x178] sm:$0xff]  ;;  %v5285_v19 = vpack.c.bf16 %v7186_v59, %v7181_v58  ;;  %v5209_v31 = vpack.c.bf16 %v7208_v61, %v7203_v60 }
  0x32   :  { %5274 = vmatprep.subr.bf16.mxu1 %v5273_v28  ;;  %v7244_v4 = vld [vmem:[%s10410_s2 + $0x3c8] sm:$0xff]  ;;  %v7249_v5 = vld [vmem:[%s10410_s2 + $0x3d8] sm:$0xff]  ;;  %v7254_v6 = vld [vmem:[%s10410_s2 + $0x160] sm:$0xff]  ;;  %v5287_v32 = vpack.c.bf16 %v7218_v63, %v7213_v62 }
  0x33   :  { %v7259_v7 = vld [vmem:[%s10410_s2 + $0x170] sm:$0xff]  ;;  %v7271_v10 = vld [vmem:[%s10410_s2 + $0x3c0] sm:$0xff]  ;;  %v7281_v12 = vld [vmem:[%s10410_s2 + $0x188] sm:$0xff]  ;;  %v5289_v38 = vpack.c.bf16 %v7249_v5, %v7244_v4 }
  0x34   :  { %5198 = vmatpush1.bf16.msra.mxu0 %v5197_v35  ;;  %v7276_v11 = vld [vmem:[%s10410_s2 + $0x3d0] sm:$0xff]  ;;  %v7286_v13 = vld [vmem:[%s10410_s2 + $0x198] sm:$0xff]  ;;  %v7291_v14 = vld [vmem:[%s10410_s2 + $0x3e8] sm:$0xff]  ;;  %v5213_v39 = vpack.c.bf16 %v7259_v7, %v7254_v6 }
  0x35   :  { %5276 = vmatpush1.bf16.msra.mxu1 %v5275_v36  ;;  %5200 = vmatprep.subr.bf16.mxu0 %v5199_v37  ;;  %v7296_v15 = vld [vmem:[%s10410_s2 + $0x3f8] sm:$0xff]  ;;  %v7301_v16 = vld [vmem:[%s10410_s2 + $0x180] sm:$0xff]  ;;  %v7306_v17 = vld [vmem:[%s10410_s2 + $0x190] sm:$0xff]  ;;  %v5211_v37 = vpack.c.bf16 %v7239_v3, %v7234_v2  ;;  %v5291_v45 = vpack.c.bf16 %v7276_v11, %v7271_v10  ;;  %v5215_v46 = vpack.c.bf16 %v7286_v13, %v7281_v12 }
  0x36   :  { %5278 = vmatprep.subr.bf16.mxu1 %v5277_v41  ;;  %v7325_v20 = vld [vmem:[%s10410_s2 + $0x3e0] sm:$0xff]  ;;  %v7330_v21 = vld [vmem:[%s10410_s2 + $0x3f0] sm:$0xff]  ;;  %v7335_v22 = vld [vmem:[%s10410_s2 + $0x1a8] sm:$0xff]  ;;  %v5293_v47 = vpack.c.bf16 %v7296_v15, %v7291_v14 }
  0x37   :  { %v7340_v23 = vld [vmem:[%s10410_s2 + $0x1b8] sm:$0xff]  ;;  %v7345_v24 = vld [vmem:[%s10410_s2 + $0x408] sm:$0xff]  ;;  %v7358_v26 = vld [vmem:[%s10410_s2 + $0x1a0] sm:$0xff] }
  0x38   :  { %5202 = vmatpush1.bf16.msra.mxu0 %v5201_v48  ;;  %v7350_v25 = vld [vmem:[%s10410_s2 + $0x418] sm:$0xff]  ;;  %v7363_v27 = vld [vmem:[%s10410_s2 + $0x1b0] sm:$0xff]  ;;  %v7368_v28 = vld [vmem:[%s10410_s2 + $0x400] sm:$0xff]  ;;  %v5217_v48 = vpack.c.bf16 %v7306_v17, %v7301_v16  ;;  %v5219_v53 = vpack.c.bf16 %v7340_v23, %v7335_v22 }
  0x39   :  { %5280 = vmatpush1.bf16.msra.mxu1 %v5279_v51  ;;  %5204 = vmatprep.subr.bf16.mxu0 %v5203_v52  ;;  %v7373_v29 = vld [vmem:[%s10410_s2 + $0x410] sm:$0xff]  ;;  %v7394_v33 = vld [vmem:[%s10410_s2 + $0x1c8] sm:$0xff]  ;;  %v7399_v34 = vld [vmem:[%s10410_s2 + $0x1d8] sm:$0xff]  ;;  %v5295_v52 = vpack.c.bf16 %v7330_v21, %v7325_v20  ;;  %v5297_v54 = vpack.c.bf16 %v7350_v25, %v7345_v24  ;;  %v5221_v59 = vpack.c.bf16 %v7363_v27, %v7358_v26 }
  0x3a   :  { %5282 = vmatprep.subr.bf16.mxu1 %v5281_v56  ;;  %v7404_v35 = vld [vmem:[%s10410_s2 + $0x428] sm:$0xff]  ;;  %v7409_v36 = vld [vmem:[%s10410_s2 + $0x438] sm:$0xff]  ;;  %v7428_v40 = vld [vmem:[%s10410_s2 + $0x1c0] sm:$0xff]  ;;  %v5299_v60 = vpack.c.bf16 %v7373_v29, %v7368_v28  ;;  %v5223_v3 = vpack.c.bf16 %v7399_v34, %v7394_v33 }
  0x3b   :  { %v7433_v41 = vld [vmem:[%s10410_s2 + $0x1d0] sm:$0xff]  ;;  %v7438_v42 = vld [vmem:[%s10410_s2 + $0x420] sm:$0xff]  ;;  %v7448_v44 = vld [vmem:[%s10410_s2 + $0x1e8] sm:$0xff]  ;;  %v5301_v4 = vpack.c.bf16 %v7409_v36, %v7404_v35 }
  0x3c   :  { %5206 = vmatpush1.bf16.msra.mxu0 %v5205_v1  ;;  %v7443_v43 = vld [vmem:[%s10410_s2 + $0x430] sm:$0xff]  ;;  %v7464_v49 = vld [vmem:[%s10410_s2 + $0x1f8] sm:$0xff]  ;;  %v7469_v50 = vld [vmem:[%s10410_s2 + $0x448] sm:$0xff] }
  0x3d   :  { %5284 = vmatpush1.bf16.msra.mxu1 %v5283_v8  ;;  %5208 = vmatprep.subr.bf16.mxu0 %v5207_v9  ;;  %v7472_v51 = vld [vmem:[%s7151_s15] sm:$0x7]  ;;  %v7505_v61 = vld [vmem:[%s10410_s2 + $0x458] sm:$0xff]  ;;  %v5225_v8 = vpack.c.bf16 %v7433_v41, %v7428_v40  ;;  %v7549_v14 = vld [vmem:[%s10410_s2 + $0x1f0] sm:$0xff]  ;;  %s86_s15 = scalar_lea.vmem %s10409_s1, %s10528_s28  ;;  %v10531_v40 = vpack.c.bf16 %v7443_v43, %v7438_v42  ;;  %v10532_v41 = vpack.c.bf16 %v7464_v49, %v7448_v44 }
  0x3e   :  { %5286 = vmatprep.subr.bf16.mxu1 %v5285_v19  ;;  %v7488_v55 = vld [vmem:[%s7193_s20] sm:$0x7]  ;;  %v124_v58 = vrot.slane %v7472_v51, %v7316_v18  ;;  %s93_s20 = smul.u32 3, %s7262_s17  ;;  %v7559_v19 = vld [vmem:[%s10410_s2 + $0x450] sm:$0xff]  ;;  %v7663_v17 = vld [vmem:[%s10410_s2 + $0x468] sm:$0xff] }
  0x3f   :  { %v7491_v56 = vld [vmem:[%s7198_s26] sm:$0x7]  ;;  %v140_v1 = vrot.slane %v7488_v55, %v7316_v18  ;;  %v136_v9 = vrot.slane %v7488_v55, %v7227_v0  ;;  %s106_s26 = scalar_lea.vmem %s10409_s1, %s105_s16  ;;  %v490_v35 = vld [vmem:[%s10410_s2 + $0x210] sm:$0xff]  ;;  %v493_v42 = vld [vmem:[%s10410_s2 + $0x228] sm:$0xff] }
  0x40   :  { %v7494_v57 = vld [vmem:[%s7223_s22] sm:$0x7]  ;;  %5210 = vmatpush1.bf16.msra.mxu0 %v5209_v31  ;;  %v156_v2 = vrot.slane %v7491_v56, %v7316_v18  ;;  %s101_s22 = smul.u32 3, %s7353_s21  ;;  %v495_v43 = vld [vmem:[%s10410_s2 + $0x238] sm:$0xff]  ;;  %v4702_v44 = vld [vmem:[%s10410_s2 + $0x488] sm:$0xff]  ;;  %s10772_s21 = sld [smem:[#allocation57_spill]] }
  0x41   :  { %v7508_v62 = vld [vmem:[%s7313_s24] sm:$0x7]  ;;  %5288 = vmatpush1.bf16.msra.mxu1 %v5287_v32  ;;  %5212 = vmatprep.subr.bf16.mxu0 %v5211_v37  ;;  %v172_v7 = vrot.slane %v7494_v57, %v7316_v18  ;;  %v374_v32 = vsel %vm372_vm0, %v124_v58, %v140_v1  ;;  %v120_v37 = vrot.slane %v7472_v51, %v7227_v0  ;;  %s113_s24 = smul.u32 3, %s7479_s27  ;;  %vm7912_vm8 = vmpackc.low %vm384_vm3, %vm6821_vm7 }
  0x42   :  { %v7511_v63 = vld [vmem:[%s7380_s8] sm:$0x7]  ;;  %s97_s8 = smul.u32 3, %s7318_s18  ;;  %5290 = vmatprep.subr.bf16.mxu1 %v5289_v38  ;;  %v188_v12 = vrot.slane %v7508_v62, %v7316_v18  ;;  %v378_v10 = vsel %vm376_vm1, %v374_v32, %v156_v2  ;;  %v152_v58 = vrot.slane %v7491_v56, %v7227_v0  ;;  %v168_v1 = vrot.slane %v7494_v57, %v7227_v0  ;;  %s7612_s29 = scalar_lea.vmem %s10409_s1, %s101_s22  ;;  %v7622_v32 = vld [vmem:[%s10410_s2 + $0x208] sm:$0xff] }
  0x43   :  { %v7523_v5 = vld [vmem:[%s7416_s7] sm:$0x7]  ;;  %v204_v31 = vrot.slane %v7511_v63, %v7316_v18  ;;  %s10529_s7 = smul.u32 3, %s7171_s23  ;;  %s94_s23 = scalar_lea.vmem %s10409_s1, %s93_s20  ;;  %v200_v20 = vrot.slane %v7511_v63, %v7227_v0  ;;  %v192_v23 = vrot.slane %v7508_v62, %v7383_v30 }
  0x44   :  { %v7525_v6 = vld [vmem:[%s82_s14] sm:$0x7]  ;;  %5214 = vmatpush1.bf16.msra.mxu0 %v5213_v39  ;;  %v220_v38 = vrot.slane %v7523_v5, %v7316_v18  ;;  %v382_v39 = vsel %vm380_vm2, %v378_v10, %v172_v7  ;;  %v184_v7 = vrot.slane %v7508_v62, %v7227_v0  ;;  %s98_s11 = scalar_lea.vmem %s10409_s1, %s97_s8  ;;  %s114_s17 = scalar_lea.vmem %s10409_s1, %s113_s24 }
  0x45   :  { %v7539_v11 = vld [vmem:[%s10410_s2 + $0x1e0] sm:$0xff]  ;;  %v236_v13 = vrot.slane %v7525_v6, %v7316_v18  ;;  %s90_s14 = scalar_lea.vmem %s10409_s1, %s10529_s7  ;;  %5292 = vmatpush1.bf16.msra.mxu1 %v5291_v45  ;;  %5216 = vmatprep.subr.bf16.mxu0 %v5215_v46  ;;  %v386_v2 = vsel %vm384_vm3, %v382_v39, %v188_v12  ;;  %v7627_v39 = vld [vmem:[%s10410_s2 + $0x218] sm:$0xff]  ;;  %v373_v46 = vsel %vm372_vm0, %v120_v37, %v136_v9  ;;  %s6824_s22 = smov [#allocation5]  }
  0x46   :  { %v7554_v15 = vld [vmem:[%s10410_s2 + $0x440] sm:$0xff]  ;;  %5294 = vmatprep.subr.bf16.mxu1 %v5293_v47  ;;  %v390_v12 = vsel %vm388_vm4, %v386_v2, %v204_v31  ;;  %v160_v31 = vrot.slane %v7491_v56, %v7383_v30  ;;  %v176_v2 = vrot.slane %v7494_v57, %v7383_v30  ;;  %v377_v9 = vsel %vm376_vm1, %v373_v46, %v152_v58  ;;  %v497_v56 = vld [vmem:[%s10410_s2 + $0x248] sm:$0xff]  ;;  %s4573_s7 = sshll.u32 %s6824_s22, 4  ;;  %s4574_s7 = int_to_ptr.vmem [resolvable:$true] %s4573_s7 }
  0x47   :  { %v394_v45 = vsel %vm392_vm5, %v390_v12, %v220_v38  ;;  %v7645_v37 = vld [vmem:[%s86_s15] sm:$0x7]  ;;  %v381_v21 = vsel %vm380_vm2, %v377_v9, %v168_v1  ;;  %v5231_v58 = vpack.c.bf16 %v7627_v39, %v7622_v32  ;;  %v232_v46 = vrot.slane %v7525_v6, %v7227_v0  ;;  %v4706_v57 = vld [vmem:[%s10410_s2 + $0x4a8] sm:$0xff]  ;;  %s10768_s15 = sld [smem:[#allocation55_spill]]  ;;  %p6799_p6 = scmp.lt.s32.totalorder %s4574_s7, %s4574_s7 }
  0x48   :  { %5218 = vmatpush1.bf16.msra.mxu0 %v5217_v48  ;;  %v7647_v47 = vld [vmem:[%s90_s14] sm:$0x7]  ;;  %v7658_v16 = vsel %vm396_vm6, %v394_v45, %v236_v13  ;;  %v7668_v48 = vld [vmem:[%s10410_s2 + $0x478] sm:$0xff]  ;;  %v252_v24 = vrot.slane %v7645_v37, %v7316_v18  ;;  %v216_v45 = vrot.slane %v7523_v5, %v7227_v0  ;;  %v248_v28 = vrot.slane %v7645_v37, %v7227_v0 }
  0x49   :  { %v7649_v10 = vld [vmem:[%s94_s23] sm:$0x7]  ;;  %5296 = vmatpush1.bf16.msra.mxu1 %v5295_v52  ;;  %5220 = vmatprep.subr.bf16.mxu0 %v5219_v53  ;;  %s110_s23 = scalar_lea.vmem %s10409_s1, %s109_s13  ;;  %v208_v52 = vrot.slane %v7511_v63, %v7383_v30  ;;  %v385_v53 = vsel %vm384_vm3, %v381_v21, %v184_v7  ;;  %v268_v25 = vrot.slane %v7647_v47, %v7316_v18  ;;  %v4699_v21 = vld [vmem:[%s10410_s2 + $0x470] sm:$0xff]  ;;  %v1182_v63 = vld [vmem:[%s10411_s3 + $0x18] sm:$0xff] }
  0x4a   :  { %v7673_v22 = vld [vmem:[%s98_s11] sm:$0x7]  ;;  %5298 = vmatprep.subr.bf16.mxu1 %v5297_v54  ;;  %589 = vmatprep.mubr.f32.mxu0 %v7658_v16  ;;  %v284_v54 = vrot.slane %v7649_v10, %v7316_v18  ;;  %v5309_v1 = vpack.c.bf16 %v7668_v48, %v7663_v17  ;;  %v389_v27 = vsel %vm388_vm4, %v385_v53, %v200_v20 }
  0x4b   :  { %v7690_v13 = vld [vmem:[%s7612_s29] sm:$0x7]  ;;  %839 = vmatprep.mubr.f32.mxu1 %v7658_v16  ;;  %v300_v26 = vrot.slane %v7673_v22, %v7316_v18  ;;  %v401_v32 = vsel %vm372_vm0, %v252_v24, %v268_v25  ;;  %v264_v29 = vrot.slane %v7647_v47, %v7227_v0  ;;  %v280_v33 = vrot.slane %v7649_v10, %v7227_v0 }
  0x4c   :  { %v7692_v38 = vld [vmem:[%s106_s26] sm:$0x7]  ;;  %5222 = vmatpush1.bf16.msra.mxu0 %v5221_v59  ;;  %v316_v59 = vrot.slane %v7690_v13, %v7316_v18  ;;  %v312_v39 = vrot.slane %v7690_v13, %v7227_v0  ;;  %v393_v9 = vsel %vm392_vm5, %v389_v27, %v216_v45  ;;  %v256_v17 = vrot.slane %v7645_v37, %v7383_v30  ;;  %v498_v37 = vld [vmem:[%s10410_s2 + $0x250] sm:$0xf] }
  0x4d   :  { %v7712_v7 = vld [vmem:[%s110_s23] sm:$0x7]  ;;  %5300 = vmatpush1.bf16.msra.mxu1 %v5299_v60  ;;  %5224 = vmatprep.subr.bf16.mxu0 %v5223_v3  ;;  %v332_v12 = vrot.slane %v7692_v38, %v7316_v18  ;;  %v404_v3 = vsel %vm376_vm1, %v401_v32, %v284_v54  ;;  %v328_v24 = vrot.slane %v7692_v38, %v7227_v0  ;;  %v4704_v32 = vld [vmem:[%s10410_s2 + $0x498] sm:$0xff] }
  0x4e   :  { %5302 = vmatprep.subr.bf16.mxu1 %v5301_v4  ;;  %v488_v34 = vld [vmem:[%s10410_s2 + $0x200] sm:$0xff]  ;;  %v7752_v60 = vrot.slane %v7712_v7, %v7316_v18  ;;  %v296_v4 = vrot.slane %v7673_v22, %v7227_v0  ;;  %v407_v53 = vsel %vm380_vm2, %v404_v3, %v300_v26  ;;  %v400_v25 = vsel %vm372_vm0, %v248_v28, %v264_v29  ;;  %v494_v29 = vld [vmem:[%s10410_s2 + $0x230] sm:$0xff] }
  0x4f   :  { %v7748_v36 = vld [vmem:[%s114_s17] sm:$0x7]  ;;  %v7782_v54 = vrot.slane %v7712_v7, %v7227_v0  ;;  %v403_v45 = vsel %vm376_vm1, %v400_v25, %v280_v33  ;;  %v10534_v26 = vpack.c.bf16 %v7505_v61, %v7469_v50  ;;  %v5233_v27 = vpack.c.bf16 %v490_v35, %v488_v34 }
  0x50   :  { %10530 = vst [vmem:[#allocation10_spill] sm:$0xff] %v7752_v60  ;;  %5226 = vmatpush1.bf16.msra.mxu0 %v5225_v8  ;;  %v4697_v20 = vld [vmem:[%s10410_s2 + $0x460] sm:$0xff]  ;;  %v410_v8 = vsel %vm384_vm3, %v407_v53, %v316_v59  ;;  %v7799_v49 = vrot.slane %v7748_v36, %v7316_v18  ;;  %v406_v61 = vsel %vm380_vm2, %v403_v45, %v296_v4  ;;  %v4715_v45 = vld [vmem:[%s10410_s2 + $0x4c8] sm:$0xff] }
  0x51   :  { %5304 = vmatpush1.bf16.msra.mxu1 %v10531_v40  ;;  %5228 = vmatprep.subr.bf16.mxu0 %v10532_v41  ;;  %10533 = vst [vmem:[#allocation11_spill] sm:$0xff] %v7782_v54  ;;  %v413_v50 = vsel %vm388_vm4, %v410_v8, %v332_v12  ;;  %v5311_v59 = vpack.c.bf16 %v4699_v21, %v4697_v20  ;;  %v492_v28 = vld [vmem:[%s10410_s2 + $0x220] sm:$0xff]  ;;  %v4707_v8 = vld [vmem:[%s10410_s2 + $0x4b0] sm:$0xf] }
  0x52   :  { %5306 = vmatprep.subr.bf16.mxu1 %v10534_v26  ;;  %10535 = vst [vmem:[#allocation12_spill] sm:$0xff] %v7799_v49  ;;  %v416_v33 = vsel %vm392_vm5, %v413_v50, %v7752_v60  ;;  %v409_v12 = vsel %vm384_vm3, %v406_v61, %v312_v39  ;;  %v10536_v34 = vrot.slane %v7488_v55, %v7383_v30  ;;  %v496_v62 = vld [vmem:[%s10410_s2 + $0x240] sm:$0xff]  ;;  %v4717_v26 = vld [vmem:[%s10410_s2 + $0x4d8] sm:$0xff]  ;;  %v1180_v61 = vld [vmem:[%s10411_s3 + $0x8] sm:$0xff] }
  0x53   :  { %v10537_v35 = vrot.slane %v7472_v51, %v7383_v30  ;;  %v10538_v4 = vpack.c.bf16 %v7549_v14, %v7539_v11  ;;  %v7826_v20 = vsel %vm396_vm6, %v393_v9, %v232_v46  ;;  %v7830_v21 = vrot.slane %v7748_v36, %v7227_v0  ;;  %v4701_v14 = vld [vmem:[%s10410_s2 + $0x480] sm:$0xff]  ;;  %v4703_v46 = vld [vmem:[%s10410_s2 + $0x490] sm:$0xff]  ;;  %v4867_v60 = vld [vmem:[%s10411_s3 + $0x348] sm:$0xff] }
  0x54   :  { %v412_v39 = vsel %vm388_vm4, %v409_v12, %v328_v24  ;;  %v10540_v55 = vpack.c.bf16 %v7559_v19, %v7554_v15  ;;  %v5235_v11 = vpack.c.bf16 %v495_v43, %v493_v42  ;;  %v224_v19 = vrot.slane %v7523_v5, %v7383_v30  ;;  %v499_v24 = vld [vmem:[%s10410_s2 + $0x258] sm:$0xf] }
  0x55   :  { %v375_v3 = vsel %vm372_vm0, %v10537_v35, %v10536_v34  ;;  %5230 = vmatpush1.bf16.msra.mxu0 %v10538_v4  ;;  %10539 = vst [vmem:[#allocation13_spill] sm:$0xff] %v7830_v21  ;;  %v415_v9 = vsel %vm392_vm5, %v412_v39, %v7782_v54  ;;  %v7862_v53 = vsel %vm396_vm6, %v416_v33, %v7799_v49  ;;  %v4708_v5 = vld [vmem:[%s10410_s2 + $0x4b8] sm:$0xf]  ;;  %v10423_v34 = vmov 0.0   ;;  %v1181_v4 = vld [vmem:[%s10411_s3 + $0x10] sm:$0xff]  ;;  %v4719_v39 = vld [vmem:[%s10410_s2 + $0x4e8] sm:$0xff] }
  0x56   :  { %v379_v51 = vsel %vm376_vm1, %v375_v3, %v160_v31  ;;  %5308 = vmatpush1.bf16.msra.mxu1 %v10540_v55  ;;  %5232 = vmatprep.subr.bf16.mxu0 %v5231_v58  ;;  %v5313_v31 = vpack.c.bf16 %v4704_v32, %v4702_v44  ;;  %v5237_v58 = vpack.c.bf16 %v494_v29, %v492_v28  ;;  %v4714_v28 = vld [vmem:[%s10410_s2 + $0x4c0] sm:$0xff]  ;;  %v4716_v29 = vld [vmem:[%s10410_s2 + $0x4d0] sm:$0xff]  ;;  %v1184_v55 = vld [vmem:[%s10411_s3 + $0x28] sm:$0xff] }
  0x57   :  { %v383_v15 = vsel %vm380_vm2, %v379_v51, %v176_v2  ;;  %5310 = vmatprep.subr.bf16.mxu1 %v5309_v1  ;;  %v272_v48 = vrot.slane %v7647_v47, %v7383_v30  ;;  %v288_v1 = vrot.slane %v7649_v10, %v7383_v30  ;;  %v5315_v25 = vpack.c.bf16 %v4703_v46, %v4701_v14  ;;  %v4705_v47 = vld [vmem:[%s10410_s2 + $0x4a0] sm:$0xff]  ;;  %v4721_v51 = vld [vmem:[%s10410_s2 + $0x4f8] sm:$0xff]  ;;  %v4863_v54 = vld [vmem:[%s10411_s3 + $0x328] sm:$0xff] }
  0x58   :  { %590 = vmatmul.mubr.f32.vlgmr.msra.gmra.mrb[0].mxu0 %v7826_v20  ;;  %v387_v2 = vsel %vm384_vm3, %v383_v15, %v192_v23  ;;  %v7887_v40 = vsel %vm396_vm6, %v415_v9, %v7830_v21  ;;  %v304_v10 = vrot.slane %v7673_v22, %v7383_v30  ;;  %v5239_v23 = vpack.c.bf16 %v499_v24, %v497_v56  ;;  %v1179_v3 = vld [vmem:[%s10411_s3] sm:$0xff]  ;;  %v1185_v24 = vld [vmem:[%s10411_s3 + $0x30] sm:$0xff] }
  0x59   :  { %5234 = vmatpush1.bf16.msra.mxu0 %v5233_v27  ;;  %840 = vmatmul.mubr.f32.vlgmr.msra.gmra.mrb[0].mxu1 %v7826_v20  ;;  %v5317_v41 = vpack.c.bf16 %v4708_v5, %v4706_v57  ;;  %v320_v27 = vrot.slane %v7690_v13, %v7383_v30  ;;  %v10541_v22 = vmov 0  ;;  %v391_v42 = vsel %vm388_vm4, %v387_v2, %v208_v52  ;;  %v4723_v57 = vld [vmem:[%s10410_s2 + $0x508] sm:$0xff]  ;;  %v4725_v5 = vld [vmem:[%s10410_s2 + $0x518] sm:$0xff]  ;;  %v4864_v21 = vld [vmem:[%s10411_s3 + $0x330] sm:$0xff] }
  0x5a   :  { %5312 = vmatpush1.bf16.msra.mxu1 %v5311_v59  ;;  %5236 = vmatprep.subr.bf16.mxu0 %v5235_v11  ;;  %v10542_v22 = vsel %vm7912_vm8, 4294967295, %v10541_v22  ;;  %v336_v43 = vrot.slane %v7692_v38, %v7383_v30  ;;  %v402_v44 = vsel %vm372_vm0, %v256_v17, %v272_v48  ;;  %v240_v13 = vrot.slane %v7525_v6, %v7383_v30  ;;  %v1186_v11 = vld [vmem:[%s10411_s3 + $0x38] sm:$0xff]  ;;  %v1188_v2 = vld [vmem:[%s10411_s3 + $0x48] sm:$0xff]  ;;  %v4868_v49 = vld [vmem:[%s10411_s3 + $0x350] sm:$0xff] }
  0x5b   :  { %10543 = vst [vmem:[#allocation14_spill] sm:$0xff] %v10542_v22  ;;  %5314 = vmatprep.subr.bf16.mxu1 %v5313_v31  ;;  %595 = vmatprep.mubr.f32.mxu0 %v7862_v53  ;;  %v5242_v50 = vpack.c.bf16 %v498_v37, %v496_v62  ;;  %v405_v52 = vsel %vm376_vm1, %v402_v44, %v288_v1  ;;  %v4720_v31 = vld [vmem:[%s10410_s2 + $0x4f0] sm:$0xff]  ;;  %v1190_v17 = vld [vmem:[%s10411_s3 + $0x58] sm:$0xff]  ;;  %v4722_v37 = vld [vmem:[%s10410_s2 + $0x500] sm:$0xff] }
  0x5c   :  { %596 = vmatmul.mubr.f32.gmra.mrb[2].mxu0 %v7887_v40  ;;  %845 = vmatprep.mubr.f32.mxu1 %v7862_v53  ;;  %v5320_v38 = vpack.c.bf16 %v4707_v8, %v4705_v47  ;;  %v5323_v6 = vpack.c.bf16 %v4717_v26, %v4715_v45  ;;  %v408_v59 = vsel %vm380_vm2, %v405_v52, %v304_v10  ;;  %v4724_v47 = vld [vmem:[%s10410_s2 + $0x510] sm:$0xff]  ;;  %v1187_v10 = vld [vmem:[%s10411_s3 + $0x40] sm:$0xff]  ;;  %v4727_v8 = vld [vmem:[%s10410_s2 + $0x528] sm:$0xff] }
  0x5d   :  { %5238 = vmatpush1.bf16.msra.mxu0 %v5237_v58  ;;  %846 = vmatmul.mubr.f32.gmra.mrb[2].mxu1 %v7887_v40  ;;  %v395_v32 = vsel %vm392_vm5, %v391_v42, %v224_v19  ;;  %v7948_v33 = vrot.slane %v7712_v7, %v7383_v30  ;;  %v411_v12 = vsel %vm384_vm3, %v408_v59, %v320_v27  ;;  %v4718_v19 = vld [vmem:[%s10410_s2 + $0x4e0] sm:$0xff]  ;;  %v4729_v45 = vld [vmem:[%s10410_s2 + $0x538] sm:$0xff]  ;;  %v1192_v26 = vld [vmem:[%s10411_s3 + $0x68] sm:$0xff] }
  0x5e   :  { %5316 = vmatpush1.bf16.msra.mxu1 %v5315_v25  ;;  %5241 = vmatprep.subr.msk.bf16.mxu0 %vm7912_vm8, %v5239_v23  ;;  %v7954_v35 = vpack.c.bf16 %v1182_v63, %v1180_v61  ;;  %v414_v7 = vsel %vm388_vm4, %v411_v12, %v336_v43  ;;  %v7979_v14 = vsel %vm396_vm6, %v395_v32, %v240_v13  ;;  %v1194_v27 = vld [vmem:[%s10411_s3 + $0x78] sm:$0xff]  ;;  %v4726_v13 = vld [vmem:[%s10410_s2 + $0x520] sm:$0xff]  ;;  %v1193_v52 = vld [vmem:[%s10411_s3 + $0x70] sm:$0xff] }
  0x5f   :  { %10544 = vst [vmem:[#allocation15_spill] sm:$0xff] %v7948_v33  ;;  %5319 = vmatprep.subr.msk.bf16.mxu1 %vm7912_vm8, %v5317_v41  ;;  %666 = vmatprep.mubr.f32.mxu0 %v10423_v34  ;;  %v5325_v46 = vpack.c.bf16 %v4716_v29, %v4714_v28  ;;  %v7983_v9 = vrot.slane %v7748_v36, %v7383_v30  ;;  %v1183_v30 = vld [vmem:[%s10411_s3 + $0x20] sm:$0xff]  ;;  %v1189_v41 = vld [vmem:[%s10411_s3 + $0x50] sm:$0xff]  ;;  %v1196_v59 = vld [vmem:[%s10411_s3 + $0x88] sm:$0xff] }
  0x60   :  { %10545 = vst [vmem:[#allocation16_spill] sm:$0xff] %v7954_v35  ;;  %916 = vmatprep.mubr.f32.mxu1 %v10423_v34  ;;  %v7987_v56 = vpack.c.bf16 %v1181_v4, %v1179_v3  ;;  %v417_v15 = vsel %vm392_vm5, %v414_v7, %v7948_v33  ;;  %v5327_v36 = vpack.c.bf16 %v4721_v51, %v4719_v39  ;;  %v1191_v61 = vld [vmem:[%s10411_s3 + $0x60] sm:$0xff]  ;;  %v1198_v32 = vld [vmem:[%s10411_s3 + $0x98] sm:$0xff]  ;;  %v4732_v4 = vld [vmem:[%s10410_s2 + $0x550] sm:$0xff] }
  0x61   :  { %5244 = vmatpush1.bf16.msk.msra.mxu0 %vm7912_vm8, %v5242_v50  ;;  %10546 = vst [vmem:[#allocation17_spill] sm:$0xff] %v7983_v9  ;;  %v8001_v58 = vpack.c.bf16 %v1186_v11, %v1184_v55  ;;  %v8024_v48 = vsel %vm396_vm6, %v417_v15, %v7983_v9  ;;  %v5329_v1 = vpack.c.bf16 %v4720_v31, %v4718_v19  ;;  %v4728_v50 = vld [vmem:[%s10410_s2 + $0x530] sm:$0xff]  ;;  %v4730_v3 = vld [vmem:[%s10410_s2 + $0x540] sm:$0xff]  ;;  %v4735_v51 = vld [vmem:[%s10410_s2 + $0x568] sm:$0xff] }
  0x62   :  { %5322 = vmatpush1.bf16.msk.msra.mxu1 %vm7912_vm8, %v5320_v38  ;;  %5324 = vmatprep.subr.bf16.mxu0 %v5323_v6  ;;  %v8028_v25 = vpack.c.bf16 %v1185_v24, %v1183_v30  ;;  %v5331_v62 = vpack.c.bf16 %v4725_v5, %v4723_v57  ;;  %v8040_v23 = vpack.c.bf16 %v1190_v17, %v1188_v2  ;;  %v4731_v38 = vld [vmem:[%s10410_s2 + $0x548] sm:$0xff]  ;;  %v4733_v6 = vld [vmem:[%s10410_s2 + $0x558] sm:$0xff]  ;;  %v1197_v39 = vld [vmem:[%s10411_s3 + $0x90] sm:$0xff] }
  0x63   :  { %5402 = vmatprep.subr.bf16.mxu1 %v7954_v35  ;;  %v5333_v42 = vpack.c.bf16 %v4724_v47, %v4722_v37  ;;  %v8063_v43 = vpack.c.bf16 %v1189_v41, %v1187_v10  ;;  %v5335_v44 = vpack.c.bf16 %v4729_v45, %v4727_v8  ;;  %v8075_v63 = vpack.c.bf16 %v1194_v27, %v1192_v26  ;;  %v4737_v55 = vld [vmem:[%s10410_s2 + $0x578] sm:$0xff]  ;;  %v1200_v11 = vld [vmem:[%s10411_s3 + $0xa8] sm:$0xff]  ;;  %v4734_v30 = vld [vmem:[%s10410_s2 + $0x560] sm:$0xff] }
  0x64   :  { %4631 = vmatmul.mubr.msk.f32.vlgmr.msra.gmra.mrb[0].mxu0 %vm512_vm9, %v7979_v14  ;;  %v5337_v28 = vpack.c.bf16 %v4728_v50, %v4726_v13  ;;  %v8095_v29 = vpack.c.bf16 %v1193_v52, %v1191_v61  ;;  %v5339_v12 = vpack.c.bf16 %v4733_v6, %v4731_v38  ;;  %v8107_v7 = vpack.c.bf16 %v1198_v32, %v1196_v59  ;;  %v1199_v24 = vld [vmem:[%s10411_s3 + $0xa0] sm:$0xff]  ;;  %v1201_v5 = vld [vmem:[%s10411_s3 + $0xb0] sm:$0xff]  ;;  %v4739_v2 = vld [vmem:[%s10410_s2 + $0x588] sm:$0xff] }
  0x65   :  { %4712 = vmatmul.mubr.msk.f32.vlgmr.msra.gmra.mrb[0].mxu1 %vm512_vm9, %v7979_v14  ;;  %5326 = vmatpush1.bf16.msra.mxu0 %v5325_v46  ;;  %v1202_v46 = vld [vmem:[%s10411_s3 + $0xb8] sm:$0xff]  ;;  %v5341_v15 = vpack.c.bf16 %v4732_v4, %v4730_v3  ;;  %v5343_v31 = vpack.c.bf16 %v4737_v55, %v4735_v51  ;;  %v8155_v47 = vpack.c.bf16 %v1201_v5, %v1199_v24  ;;  %v4738_v41 = vld [vmem:[%s10410_s2 + $0x580] sm:$0xff]  ;;  %v4740_v8 = vld [vmem:[%s10410_s2 + $0x590] sm:$0xff] }
  0x66   :  { %5404 = vmatpush1.bf16.msra.mxu1 %v7987_v56  ;;  %672 = vmatprep.mubr.f32.mxu0 %v10423_v34  ;;  %v8137_v57 = vpack.c.bf16 %v1202_v46, %v1200_v11  ;;  %v4741_v17 = vld [vmem:[%s10410_s2 + $0x598] sm:$0xff]  ;;  %v1203_v45 = vld [vmem:[%s10411_s3 + $0xc0] sm:$0xff]  ;;  %v1205_v27 = vld [vmem:[%s10411_s3 + $0xd0] sm:$0xff]  ;;  %v5349_v61 = vpack.c.bf16 %v4740_v8, %v4738_v41 }
  0x67   :  { %5328 = vmatprep.subr.bf16.mxu0 %v5327_v36  ;;  %5406 = vmatprep.subr.bf16.mxu1 %v8001_v58  ;;  %v4736_v36 = vld [vmem:[%s10410_s2 + $0x570] sm:$0xff]  ;;  %v5347_v10 = vpack.c.bf16 %v4741_v17, %v4739_v2  ;;  %v1208_v13 = vld [vmem:[%s10411_s3 + $0xe8] sm:$0xff]  ;;  %v1210_v50 = vld [vmem:[%s10411_s3 + $0xf8] sm:$0xff]  ;;  %v8185_v52 = vpack.c.bf16 %v1205_v27, %v1203_v45 }
  0x68   :  { %4632 = vmatmul.mubr.msk.f32.gmra.mrb[2].mxu0 %vm512_vm9, %v8024_v48  ;;  %922 = vmatprep.mubr.f32.mxu1 %v10423_v34  ;;  %v5345_v37 = vpack.c.bf16 %v4736_v36, %v4734_v30  ;;  %v4742_v6 = vld [vmem:[%s10410_s2 + $0x5a0] sm:$0xff]  ;;  %v4744_v59 = vld [vmem:[%s10410_s2 + $0x5b0] sm:$0xff]  ;;  %v4747_v3 = vld [vmem:[%s10410_s2 + $0x5c8] sm:$0xff] }
  0x69   :  { %5330 = vmatpush1.bf16.msra.mxu0 %v5329_v1  ;;  %4713 = vmatmul.mubr.msk.f32.gmra.mrb[2].mxu1 %vm512_vm9, %v8024_v48  ;;  %v1204_v1 = vld [vmem:[%s10411_s3 + $0xc8] sm:$0xff]  ;;  %v1207_v32 = vld [vmem:[%s10411_s3 + $0xe0] sm:$0xff]  ;;  %v4749_v4 = vld [vmem:[%s10410_s2 + $0x5d8] sm:$0xff]  ;;  %v5353_v51 = vpack.c.bf16 %v4744_v59, %v4742_v6 }
  0x6a   :  { %5408 = vmatpush1.bf16.msra.mxu1 %v8028_v25  ;;  %5332 = vmatprep.subr.bf16.mxu0 %v5331_v62  ;;  %v1206_v62 = vld [vmem:[%s10411_s3 + $0xd8] sm:$0xff]  ;;  %v5355_v11 = vpack.c.bf16 %v4749_v4, %v4747_v3  ;;  %v4746_v46 = vld [vmem:[%s10410_s2 + $0x5c0] sm:$0xff]  ;;  %v1213_v36 = vld [vmem:[%s10411_s3 + $0x110] sm:$0xff] }
  0x6b   :  { %5410 = vmatprep.subr.bf16.mxu1 %v8040_v23  ;;  %1303 = vmatprep.mubr.f32.mxu1 %v10423_v34  ;;  %v8167_v26 = vpack.c.bf16 %v1206_v62, %v1204_v1  ;;  %v4751_v24 = vld [vmem:[%s10410_s2 + $0x5e8] sm:$0xff]  ;;  %v4753_v5 = vld [vmem:[%s10410_s2 + $0x5f8] sm:$0xff]  ;;  %v4750_v62 = vld [vmem:[%s10410_s2 + $0x5e0] sm:$0xff] }
  0x6c   :  { %1089 = vmatprep.mubr.f32.mxu0 %v7658_v16  ;;  %v1195_v16 = vld [vmem:[%s10411_s3 + $0x80] sm:$0xff]  ;;  %v5359_v1 = vpack.c.bf16 %v4753_v5, %v4751_v24  ;;  %v4757_v41 = vld [vmem:[%s10410_s2 + $0x618] sm:$0xff]  ;;  %v8257_v8 = vld [vmem:[%s10411_s3 + $0x128] sm:$0x3f] }
  0x6d   :  { %5334 = vmatpush1.bf16.msra.mxu0 %v5333_v42  ;;  %v8125_v19 = vpack.c.bf16 %v1197_v39, %v1195_v16  ;;  %v4743_v42 = vld [vmem:[%s10410_s2 + $0x5a8] sm:$0xff]  ;;  %v1214_v39 = vld [vmem:[%s10411_s3 + $0x118] sm:$0xff]  ;;  %v4856_v33 = vld [vmem:[%s10411_s3 + $0x2f0] sm:$0xff] }
  0x6e   :  { %5412 = vmatpush1.bf16.msra.mxu1 %v8063_v43  ;;  %5336 = vmatprep.subr.bf16.mxu0 %v5335_v44  ;;  %v4745_v44 = vld [vmem:[%s10410_s2 + $0x5b8] sm:$0xff]  ;;  %v1212_v16 = vld [vmem:[%s10411_s3 + $0x108] sm:$0xff]  ;;  %v4860_v22 = vld [vmem:[%s10411_s3 + $0x310] sm:$0xff] }
  0x6f   :  { %5414 = vmatprep.subr.bf16.mxu1 %v8075_v63  ;;  %v5351_v38 = vpack.c.bf16 %v4745_v44, %v4743_v42  ;;  %v8227_v30 = vpack.c.bf16 %v1214_v39, %v1212_v16  ;;  %v4798_v45 = vld [vmem:[%s10411_s3 + $0x138] sm:$0xff]  ;;  %v4800_v27 = vld [vmem:[%s10411_s3 + $0x148] sm:$0xff]  ;;  %v4797_v44 = vld [vmem:[%s10411_s3 + $0x130] sm:$0xff] }
  0x70   :  { %v4802_v6 = vld [vmem:[%s10411_s3 + $0x158] sm:$0xff]  ;;  %v4804_v59 = vld [vmem:[%s10411_s3 + $0x168] sm:$0xff] }
  0x71   :  { %5338 = vmatpush1.bf16.msra.mxu0 %v5337_v28  ;;  %v8197_v28 = vpack.c.bf16 %v1210_v50, %v1208_v13  ;;  %v4799_v13 = vld [vmem:[%s10411_s3 + $0x140] sm:$0xff]  ;;  %v4759_v3 = vld [vmem:[%s10410_s2 + $0x628] sm:$0xff]  ;;  %v4761_v4 = vld [vmem:[%s10410_s2 + $0x638] sm:$0xff] }
  0x72   :  { %5416 = vmatpush1.bf16.msra.mxu1 %v8095_v29  ;;  %5340 = vmatprep.subr.bf16.mxu0 %v5339_v12  ;;  %v1209_v12 = vld [vmem:[%s10411_s3 + $0xf0] sm:$0xff]  ;;  %v4754_v50 = vld [vmem:[%s10410_s2 + $0x600] sm:$0xff]  ;;  %v8299_v16 = vpack.c.bf16 %v4799_v13, %v4797_v44  ;;  %v4806_v24 = vld [vmem:[%s10411_s3 + $0x178] sm:$0xff] }
  0x73   :  { %5418 = vmatprep.subr.bf16.mxu1 %v8107_v7  ;;  %v8215_v55 = vpack.c.bf16 %v1209_v12, %v1207_v32  ;;  %v8289_v32 = vld [vmem:[%s10411_s3 + $0x120] sm:$0x3f]  ;;  %v8291_v12 = vpack.c.bf16 %v4800_v27, %v4798_v45  ;;  %v4808_v5 = vld [vmem:[%s10411_s3 + $0x188] sm:$0xff]  ;;  %v4764_v44 = vld [vmem:[%s10410_s2 + $0x650] sm:$0xff] }
  0x74   :  { %10547 = vst [vmem:[#allocation18_spill] sm:$0xff] %v8289_v32  ;;  %10549 = vst [vmem:[#allocation20_spill] sm:$0xff] %v8299_v16  ;;  %v4807_v45 = vld [vmem:[%s10411_s3 + $0x180] sm:$0xff]  ;;  %v4810_v13 = vld [vmem:[%s10411_s3 + $0x198] sm:$0xff] }
  0x75   :  { %5342 = vmatpush1.bf16.msra.mxu0 %v5341_v15  ;;  %v4748_v15 = vld [vmem:[%s10410_s2 + $0x5d0] sm:$0xff]  ;;  %10548 = vst [vmem:[#allocation19_spill] sm:$0xff] %v8291_v12  ;;  %v4762_v27 = vld [vmem:[%s10410_s2 + $0x640] sm:$0xff]  ;;  %v4859_v9 = vld [vmem:[%s10411_s3 + $0x308] sm:$0xff] }
  0x76   :  { %5420 = vmatpush1.bf16.msra.mxu1 %v8125_v19  ;;  %5344 = vmatprep.subr.bf16.mxu0 %v5343_v31  ;;  %v1211_v31 = vld [vmem:[%s10411_s3 + $0x100] sm:$0xff]  ;;  %v5357_v2 = vpack.c.bf16 %v4748_v15, %v4746_v46 }
  0x77   :  { %5422 = vmatprep.subr.bf16.mxu1 %v8137_v57  ;;  %v8239_v17 = vpack.c.bf16 %v1213_v36, %v1211_v31  ;;  %v4803_v46 = vld [vmem:[%s10411_s3 + $0x160] sm:$0xff]  ;;  %v5367_v31 = vpack.c.bf16 %v4761_v4, %v4759_v3  ;;  %v4760_v36 = vld [vmem:[%s10410_s2 + $0x630] sm:$0xff] }
  0x78   :  { %v4758_v15 = vld [vmem:[%s10410_s2 + $0x620] sm:$0xff]  ;;  %v4809_v4 = vld [vmem:[%s10411_s3 + $0x190] sm:$0xff] }
  0x79   :  { %5346 = vmatpush1.bf16.msra.mxu0 %v5345_v37  ;;  %v4752_v37 = vld [vmem:[%s10410_s2 + $0x5f0] sm:$0xff] }
  0x7a   :  { %5424 = vmatpush1.bf16.msra.mxu1 %v8155_v47  ;;  %5348 = vmatprep.subr.bf16.mxu0 %v5347_v10  ;;  %v4755_v10 = vld [vmem:[%s10410_s2 + $0x608] sm:$0xff]  ;;  %v5361_v42 = vpack.c.bf16 %v4752_v37, %v4750_v62  ;;  %v5369_v37 = vpack.c.bf16 %v4760_v36, %v4758_v15  ;;  %v4768_v15 = vld [vmem:[%s10410_s2 + $0x670] sm:$0xff] }
  0x7b   :  { %5426 = vmatprep.subr.bf16.mxu1 %v8167_v26  ;;  %v4816_v36 = vld [vmem:[%s10411_s3 + $0x1c8] sm:$0xff] }
  0x7d   :  { %5350 = vmatpush1.bf16.msra.mxu0 %v5349_v61  ;;  %v5363_v61 = vpack.c.bf16 %v4757_v41, %v4755_v10  ;;  %v8336_v10 = vpack.c.bf16 %v4808_v5, %v4806_v24  ;;  %v4805_v41 = vld [vmem:[%s10411_s3 + $0x170] sm:$0xff]  ;;  %v4771_v24 = vld [vmem:[%s10410_s2 + $0x688] sm:$0xff]  ;;  %v4773_v5 = vld [vmem:[%s10410_s2 + $0x698] sm:$0xff] }
  0x7e   :  { %5428 = vmatpush1.bf16.msra.mxu1 %v8185_v52  ;;  %5352 = vmatprep.subr.bf16.mxu0 %v5351_v38  ;;  %v4756_v38 = vld [vmem:[%s10410_s2 + $0x610] sm:$0xff] }
  0x7f   :  { %5430 = vmatprep.subr.bf16.mxu1 %v8197_v28  ;;  %v5365_v39 = vpack.c.bf16 %v4756_v38, %v4754_v50  ;;  %10552 = vst [vmem:[#allocation23_spill] sm:$0xff] %v8336_v10  ;;  %v4812_v50 = vld [vmem:[%s10411_s3 + $0x1a8] sm:$0xff]  ;;  %v4769_v38 = vld [vmem:[%s10410_s2 + $0x678] sm:$0xff] }
  0x80   :  { %v8366_v3 = vpack.c.bf16 %v4812_v50, %v4810_v13  ;;  %v4818_v13 = vld [vmem:[%s10411_s3 + $0x1d8] sm:$0xff]  ;;  %v4820_v50 = vld [vmem:[%s10411_s3 + $0x1e8] sm:$0xff] }
  0x81   :  { %5354 = vmatpush1.bf16.msra.mxu0 %v5353_v51  ;;  %v8301_v51 = vpack.c.bf16 %v4804_v59, %v4802_v6  ;;  %v8363_v6 = vpack.c.bf16 %v4807_v45, %v4805_v41  ;;  %v5373_v59 = vpack.c.bf16 %v4764_v44, %v4762_v27  ;;  %v4813_v41 = vld [vmem:[%s10411_s3 + $0x1b0] sm:$0xff]  ;;  %v4815_v45 = vld [vmem:[%s10411_s3 + $0x1c0] sm:$0xff] }
  0x82   :  { %5432 = vmatpush1.bf16.msra.mxu1 %v8215_v55  ;;  %5356 = vmatprep.subr.bf16.mxu0 %v5355_v11  ;;  %v4801_v11 = vld [vmem:[%s10411_s3 + $0x150] sm:$0xff]  ;;  %10554 = vst [vmem:[#allocation25_spill] sm:$0xff] %v8366_v3  ;;  %v4770_v27 = vld [vmem:[%s10410_s2 + $0x680] sm:$0xff] }
  0x83   :  { %5434 = vmatprep.subr.bf16.mxu1 %v8227_v30  ;;  %10550 = vst [vmem:[#allocation21_spill] sm:$0xff] %v8301_v51  ;;  %v8332_v62 = vpack.c.bf16 %v4803_v46, %v4801_v11  ;;  %10553 = vst [vmem:[#allocation24_spill] sm:$0xff] %v8363_v6  ;;  %v4766_v11 = vld [vmem:[%s10410_s2 + $0x660] sm:$0xff]  ;;  %v4772_v44 = vld [vmem:[%s10410_s2 + $0x690] sm:$0xff] }
  0x85   :  { %5358 = vmatpush1.bf16.msra.mxu0 %v5357_v2  ;;  %v4763_v2 = vld [vmem:[%s10410_s2 + $0x648] sm:$0xff]  ;;  %10551 = vst [vmem:[#allocation22_spill] sm:$0xff] %v8332_v62 }
  0x86   :  { %5436 = vmatpush1.bf16.msra.mxu1 %v8239_v17  ;;  %5360 = vmatprep.subr.bf16.mxu0 %v5359_v1  ;;  %v4765_v1 = vld [vmem:[%s10410_s2 + $0x658] sm:$0xff] }
  0x87   :  { %4795 = vmatprep.subr.msk.mxu1 %vm392_vm5, %v8257_v8 }
  0x89   :  { %5362 = vmatpush1.bf16.msra.mxu0 %v5361_v42  ;;  %v5371_v42 = vpack.c.bf16 %v4765_v1, %v4763_v2  ;;  %v5377_v1 = vpack.c.bf16 %v4768_v15, %v4766_v11  ;;  %v4817_v11 = vld [vmem:[%s10411_s3 + $0x1d0] sm:$0xff]  ;;  %v4774_v15 = vld [vmem:[%s10410_s2 + $0x6a0] sm:$0xff] }
  0x8a   :  { %4796 = vmatpush1.msk.msra.mxu1 %vm392_vm5, %v8289_v32  ;;  %5364 = vmatprep.subr.bf16.mxu0 %v5363_v61  ;;  %v4767_v61 = vld [vmem:[%s10410_s2 + $0x668] sm:$0xff] }
  0x8b   :  { %1304 = vmatmul.mubr.f32.vlgmr.msra.gmra.mrb[4].mxu1 %v10423_v34  ;;  %5438 = vmatprep.subr.bf16.mxu1 %v8291_v12  ;;  %v5375_v46 = vpack.c.bf16 %v4769_v38, %v4767_v61  ;;  %v4775_v61 = vld [vmem:[%s10410_s2 + $0x6a8] sm:$0xff]  ;;  %v4777_v38 = vld [vmem:[%s10410_s2 + $0x6b8] sm:$0xff] }
  0x8c   :  { %5440 = vmatpush1.bf16.msra.mxu1 %v8299_v16  ;;  %1432 = vmatprep.mubr.f32.mxu1 %v10423_v34  ;;  %v4831_v34 = vld [vmem:[%s10411_s3 + $0x240] sm:$0xff] }
  0x8d   :  { %5366 = vmatpush1.bf16.msra.mxu0 %v5365_v39  ;;  %5442 = vmatprep.subr.bf16.mxu1 %v8301_v51  ;;  %v4811_v39 = vld [vmem:[%s10411_s3 + $0x1a0] sm:$0xff] }
  0x8e   :  { %5368 = vmatprep.subr.bf16.mxu0 %v5367_v31  ;;  %v4814_v31 = vld [vmem:[%s10411_s3 + $0x1b8] sm:$0xff]  ;;  %v8393_v2 = vpack.c.bf16 %v4811_v39, %v4809_v4  ;;  %v5381_v4 = vpack.c.bf16 %v4772_v44, %v4770_v27  ;;  %v8426_v39 = vpack.c.bf16 %v4820_v50, %v4818_v13  ;;  %v4821_v44 = vld [vmem:[%s10411_s3 + $0x1f0] sm:$0xff]  ;;  %v4823_v13 = vld [vmem:[%s10411_s3 + $0x200] sm:$0xff] }
  0x8f   :  { %v4778_v50 = vld [vmem:[%s10410_s2 + $0x6c0] sm:$0xff] }
  0x90   :  { %5444 = vmatpush1.bf16.msra.mxu1 %v8332_v62  ;;  %10555 = vst [vmem:[#allocation26_spill] sm:$0xff] %v8393_v2  ;;  %10558 = vst [vmem:[#allocation29_spill] sm:$0xff] %v8426_v39 }
  0x91   :  { %5370 = vmatpush1.bf16.msra.mxu0 %v5369_v37  ;;  %5446 = vmatprep.subr.bf16.mxu1 %v8336_v10  ;;  %v8396_v37 = vpack.c.bf16 %v4816_v36, %v4814_v31  ;;  %v5383_v31 = vpack.c.bf16 %v4777_v38, %v4775_v61  ;;  %v4776_v36 = vld [vmem:[%s10410_s2 + $0x6b0] sm:$0xff] }
  0x92   :  { %5372 = vmatprep.subr.bf16.mxu0 %v5371_v42  ;;  %v5379_v42 = vpack.c.bf16 %v4773_v5, %v4771_v24  ;;  %v4822_v24 = vld [vmem:[%s10411_s3 + $0x1f8] sm:$0xff]  ;;  %v4824_v5 = vld [vmem:[%s10411_s3 + $0x208] sm:$0xff]  ;;  %v5385_v27 = vpack.c.bf16 %v4776_v36, %v4774_v15  ;;  %v4780_v38 = vld [vmem:[%s10410_s2 + $0x6d0] sm:$0xff] }
  0x93   :  { %10556 = vst [vmem:[#allocation27_spill] sm:$0xff] %v8396_v37  ;;  %v4785_v15 = vld [vmem:[%s10410_s2 + $0x6f8] sm:$0xff]  ;;  %v5389_v36 = vpack.c.bf16 %v4780_v38, %v4778_v50  ;;  %v4832_v50 = vld [vmem:[%s10411_s3 + $0x248] sm:$0xff] }
  0x94   :  { %5448 = vmatpush1.bf16.msra.mxu1 %v8363_v6  ;;  %v4787_v38 = vld [vmem:[%s10410_s2 + $0x708] sm:$0xff] }
  0x95   :  { %5374 = vmatpush1.bf16.msra.mxu0 %v5373_v59  ;;  %5450 = vmatprep.subr.bf16.mxu1 %v8366_v3  ;;  %v8423_v59 = vpack.c.bf16 %v4815_v45, %v4813_v41  ;;  %v4781_v41 = vld [vmem:[%s10410_s2 + $0x6d8] sm:$0xff] }
  0x96   :  { %5376 = vmatprep.subr.bf16.mxu0 %v5375_v46  ;;  %v4819_v46 = vld [vmem:[%s10411_s3 + $0x1e0] sm:$0xff] }
  0x97   :  { %10557 = vst [vmem:[#allocation28_spill] sm:$0xff] %v8423_v59  ;;  %v8453_v45 = vpack.c.bf16 %v4819_v46, %v4817_v11  ;;  %v4828_v11 = vld [vmem:[%s10411_s3 + $0x228] sm:$0xff] }
  0x98   :  { %5452 = vmatpush1.bf16.msra.mxu1 %v8393_v2  ;;  %v4783_v46 = vld [vmem:[%s10410_s2 + $0x6e8] sm:$0xff] }
  0x99   :  { %5378 = vmatpush1.bf16.msra.mxu0 %v5377_v1  ;;  %5454 = vmatprep.subr.bf16.mxu1 %v8396_v37  ;;  %v4779_v1 = vld [vmem:[%s10410_s2 + $0x6c8] sm:$0xff]  ;;  %10559 = vst [vmem:[#allocation30_spill] sm:$0xff] %v8453_v45 }
  0x9a   :  { %5380 = vmatprep.subr.bf16.mxu0 %v5379_v42  ;;  %v8456_v42 = vpack.c.bf16 %v4824_v5, %v4822_v24  ;;  %v5387_v61 = vpack.c.bf16 %v4781_v41, %v4779_v1  ;;  %v4825_v5 = vld [vmem:[%s10411_s3 + $0x210] sm:$0xff]  ;;  %v4827_v1 = vld [vmem:[%s10411_s3 + $0x220] sm:$0xff] }
  0x9b   :  { %v4782_v41 = vld [vmem:[%s10410_s2 + $0x6e0] sm:$0xff] }
  0x9c   :  { %5456 = vmatpush1.bf16.msra.mxu1 %v8423_v59  ;;  %10560 = vst [vmem:[#allocation31_spill] sm:$0xff] %v8456_v42 }
  0x9d   :  { %5382 = vmatpush1.bf16.msra.mxu0 %v5381_v4  ;;  %5458 = vmatprep.subr.bf16.mxu1 %v8426_v39  ;;  %v4826_v4 = vld [vmem:[%s10411_s3 + $0x218] sm:$0xff] }
  0x9e   :  { %5384 = vmatprep.subr.bf16.mxu0 %v5383_v31  ;;  %v8483_v31 = vpack.c.bf16 %v4823_v13, %v4821_v44  ;;  %v8486_v24 = vpack.c.bf16 %v4828_v11, %v4826_v4  ;;  %v5391_v44 = vpack.c.bf16 %v4785_v15, %v4783_v46  ;;  %v4830_v13 = vld [vmem:[%s10411_s3 + $0x238] sm:$0xff]  ;;  %v8514_v4 = vpack.c.bf16 %v4827_v1, %v4825_v5  ;;  %v4829_v15 = vld [vmem:[%s10411_s3 + $0x230] sm:$0xff]  ;;  %v4839_v1 = vld [vmem:[%s10411_s3 + $0x268] sm:$0xff] }
  0x9f   :  { %v8517_v46 = vpack.c.bf16 %v4832_v50, %v4830_v13  ;;  %v4788_v5 = vld [vmem:[%s10410_s2 + $0x710] sm:$0xf]  ;;  %v10567_v13 = vmov 0.0  }
  0xa0   :  { %5460 = vmatpush1.bf16.msra.mxu1 %v8453_v45  ;;  %10561 = vst [vmem:[#allocation32_spill] sm:$0xff] %v8483_v31  ;;  %10562 = vst [vmem:[#allocation33_spill] sm:$0xff] %v8486_v24 }
  0xa1   :  { %5386 = vmatpush1.bf16.msra.mxu0 %v5385_v27  ;;  %5462 = vmatprep.subr.bf16.mxu1 %v8456_v42  ;;  %v4784_v27 = vld [vmem:[%s10410_s2 + $0x6f0] sm:$0xff]  ;;  %10563 = vst [vmem:[#allocation34_spill] sm:$0xff] %v8514_v4  ;;  %10564 = vst [vmem:[#allocation35_spill] sm:$0xff] %v8517_v46 }
  0xa2   :  { %5388 = vmatprep.subr.bf16.mxu0 %v5387_v61  ;;  %v4789_v61 = vld [vmem:[%s10410_s2 + $0x718] sm:$0xf]  ;;  %v5393_v11 = vpack.c.bf16 %v4784_v27, %v4782_v41 }
  0xa3   :  { %v4841_v41 = vld [vmem:[%s10411_s3 + $0x278] sm:$0xff] }
  0xa4   :  { %5464 = vmatpush1.bf16.msra.mxu1 %v8483_v31  ;;  %1090 = vmatmul.mubr.f32.vlgmr.msra.gmra.mrb[4].mxu0 %v7826_v20  ;;  %v5395_v20 = vpack.c.bf16 %v4789_v61, %v4787_v38  ;;  %v8548_v27 = vld [vmem:[%s10411_s3 + $0x258] sm:$0x3f]  ;;  %v8551_v50 = vpack.c.bf16 %v4841_v41, %v4839_v1  ;;  %v4843_v38 = vld [vmem:[%s10411_s3 + $0x288] sm:$0xff] }
  0xa5   :  { %5390 = vmatpush1.bf16.msra.mxu0 %v5389_v36  ;;  %5466 = vmatprep.subr.bf16.mxu1 %v8486_v24  ;;  %v4786_v36 = vld [vmem:[%s10410_s2 + $0x700] sm:$0xff]  ;;  %10566 = vst [vmem:[#allocation37_spill] sm:$0xff] %v8548_v27  ;;  %v4845_v61 = vld [vmem:[%s10411_s3 + $0x298] sm:$0xff]  ;;  %v4847_v1 = vld [vmem:[%s10411_s3 + $0x2a8] sm:$0xff] }
  0xa6   :  { %5392 = vmatprep.subr.bf16.mxu0 %v5391_v44  ;;  %1095 = vmatprep.mubr.f32.mxu0 %v7862_v53  ;;  %v8539_v53 = vpack.c.bf16 %v4831_v34, %v4829_v15  ;;  %v5398_v44 = vpack.c.bf16 %v4788_v5, %v4786_v36  ;;  %10568 = vst [vmem:[#allocation38_spill] sm:$0xff] %v8551_v50  ;;  %v4840_v34 = vld [vmem:[%s10411_s3 + $0x270] sm:$0xff]  ;;  %v4842_v36 = vld [vmem:[%s10411_s3 + $0x280] sm:$0xff]  ;;  %v4849_v41 = vld [vmem:[%s10411_s3 + $0x2b8] sm:$0xff] }
  0xa7   :  { %v4844_v5 = vld [vmem:[%s10411_s3 + $0x290] sm:$0xff] }
  0xa8   :  { %5468 = vmatpush1.bf16.msra.mxu1 %v8514_v4  ;;  %10565 = vst [vmem:[#allocation36_spill] sm:$0xff] %v8539_v53  ;;  %1096 = vmatmul.mubr.f32.gmra.mrb[6].mxu0 %v7887_v40  ;;  %v4838_v40 = vld [vmem:[%s10411_s3 + $0x260] sm:$0xff] }
  0xa9   :  { %5394 = vmatpush1.bf16.msra.mxu0 %v5393_v11  ;;  %5470 = vmatprep.subr.bf16.mxu1 %v8517_v46  ;;  %v8573_v11 = vld [vmem:[%s10411_s3 + $0x250] sm:$0x3f]  ;;  %v8575_v15 = vpack.c.bf16 %v4840_v34, %v4838_v40  ;;  %v8602_v40 = vpack.c.bf16 %v4849_v41, %v4847_v1  ;;  %v4846_v34 = vld [vmem:[%s10411_s3 + $0x2a0] sm:$0xff]  ;;  %v4855_v41 = vld [vmem:[%s10411_s3 + $0x2e8] sm:$0xff] }
  0xaa   :  { %5397 = vmatprep.subr.msk.bf16.mxu0 %vm7912_vm8, %v5395_v20  ;;  %1166 = vmatprep.mubr.f32.mxu0 %v10567_v13  ;;  %10569 = vst [vmem:[#allocation39_spill] sm:$0xff] %v8573_v11  ;;  %v8578_v20 = vpack.c.bf16 %v4845_v61, %v4843_v38  ;;  %v4851_v38 = vld [vmem:[%s10411_s3 + $0x2c8] sm:$0xff]  ;;  %v4853_v61 = vld [vmem:[%s10411_s3 + $0x2d8] sm:$0xff]  ;;  %v4850_v1 = vld [vmem:[%s10411_s3 + $0x2c0] sm:$0xff] }
  0xac   :  { %5472 = vmatpush1.bf16.msra.mxu1 %v8539_v53 }
  0xad   :  { %5400 = vmatpush1.bf16.msk.msra.mxu0 %vm7912_vm8, %v5398_v44  ;;  %4836 = vmatprep.subr.msk.mxu1 %vm392_vm5, %v8548_v27  ;;  %v8598_v44 = vpack.c.bf16 %v4844_v5, %v4842_v36  ;;  %v8625_v5 = vpack.c.bf16 %v4853_v61, %v4851_v38  ;;  %v4854_v61 = vld [vmem:[%s10411_s3 + $0x2e0] sm:$0xff] }
  0xae   :  { %5474 = vmatprep.subr.bf16.mxu0 %v8551_v50 }
  0xb0   :  { %4837 = vmatpush1.msk.msra.mxu1 %vm392_vm5, %v8573_v11  ;;  %4793 = vmatmul.mubr.msk.f32.vlgmr.msra.gmra.mrb[4].mxu0 %vm512_vm9, %v7979_v14  ;;  %v4848_v14 = vld [vmem:[%s10411_s3 + $0x2b0] sm:$0xff] }
  0xb1   :  { %1433 = vmatmul.mubr.f32.vlgmr.msra.gmra.mrb[6].mxu1 %v10567_v13  ;;  %5476 = vmatpush1.bf16.msra.mxu0 %v8575_v15  ;;  %v8621_v36 = vpack.c.bf16 %v4848_v14, %v4846_v34  ;;  %v4857_v34 = vld [vmem:[%s10411_s3 + $0x2f8] sm:$0xff] }
  0xb2   :  { %1172 = vmatprep.mubr.f32.mxu0 %v10567_v13  ;;  %5478 = vmatprep.subr.bf16.mxu0 %v8578_v20  ;;  %v8646_v38 = vpack.c.bf16 %v4857_v34, %v4855_v41  ;;  %v4858_v34 = vld [vmem:[%s10411_s3 + $0x300] sm:$0xff] }
  0xb3   :  { %5510 = vmatprep.subr.bf16.mxu1 %v7954_v35 }
  0xb4   :  { %4794 = vmatmul.mubr.msk.f32.gmra.mrb[6].mxu0 %vm512_vm9, %v8024_v48  ;;  %5512 = vmatpush1.bf16.msra.mxu1 %v7987_v56  ;;  %v4852_v48 = vld [vmem:[%s10411_s3 + $0x2d0] sm:$0xff] }
  0xb5   :  { %5480 = vmatpush1.bf16.msra.mxu0 %v8598_v44  ;;  %1561 = vmatprep.mubr.f32.mxu0 %v10567_v13  ;;  %v8642_v14 = vpack.c.bf16 %v4852_v48, %v4850_v1  ;;  %v4861_v1 = vld [vmem:[%s10411_s3 + $0x318] sm:$0xff]  ;;  %v8662_v48 = vpack.c.bf16 %v4856_v33, %v4854_v61 }
  0xb6   :  { %5482 = vmatprep.subr.bf16.mxu0 %v8602_v40  ;;  %5514 = vmatprep.subr.bf16.mxu1 %v8001_v58  ;;  %v8666_v41 = vpack.c.bf16 %v4861_v1, %v4859_v9  ;;  %v4865_v33 = vld [vmem:[%s10411_s3 + $0x338] sm:$0xff]  ;;  %v8682_v9 = vpack.c.bf16 %v4860_v22, %v4858_v34  ;;  %v4862_v1 = vld [vmem:[%s10411_s3 + $0x320] sm:$0xff] }
  0xb7   :  { %v8686_v61 = vpack.c.bf16 %v4865_v33, %v4863_v54  ;;  %v4869_v22 = vld [vmem:[%s10411_s3 + $0x358] sm:$0xff]  ;;  %v8702_v54 = vpack.c.bf16 %v4864_v21, %v4862_v1  ;;  %v4866_v33 = vld [vmem:[%s10411_s3 + $0x340] sm:$0xff] }
  0xb8   :  { %5516 = vmatpush1.bf16.msra.mxu1 %v8028_v25  ;;  %10570 = vst [vmem:[#allocation40_spill] sm:$0xff] %v8682_v9  ;;  %v8706_v34 = vpack.c.bf16 %v4869_v22, %v4867_v60  ;;  %v4873_v21 = vld [vmem:[%s10411_s3 + $0x378] sm:$0xff]  ;;  %v8722_v60 = vpack.c.bf16 %v4868_v49, %v4866_v33  ;;  %v4870_v22 = vld [vmem:[%s10411_s3 + $0x360] sm:$0xff] }
  0xb9   :  { %5484 = vmatpush1.bf16.msra.mxu0 %v8621_v36  ;;  %5518 = vmatprep.subr.bf16.mxu1 %v8040_v23  ;;  %10571 = vst [vmem:[#allocation41_spill] sm:$0xff] %v8686_v61  ;;  %v500_v33 = vld [vmem:[%s10412_s4] sm:$0x3] }
  0xba   :  { %5486 = vmatprep.subr.bf16.mxu0 %v8625_v5 }
  0xbc   :  { %5520 = vmatpush1.bf16.msra.mxu1 %v8063_v43 }
  0xbd   :  { %5488 = vmatpush1.bf16.msra.mxu0 %v8642_v14  ;;  %5522 = vmatprep.subr.bf16.mxu1 %v8075_v63 }
  0xbe   :  { %5490 = vmatprep.subr.bf16.mxu0 %v8646_v38 }
  0xc0   :  { %5524 = vmatpush1.bf16.msra.mxu1 %v8095_v29 }
  0xc1   :  { %5492 = vmatpush1.bf16.msra.mxu0 %v8662_v48  ;;  %5526 = vmatprep.subr.bf16.mxu1 %v8107_v7 }
  0xc2   :  { %5494 = vmatprep.subr.bf16.mxu0 %v8666_v41 }
  0xc4   :  { %5528 = vmatpush1.bf16.msra.mxu1 %v8125_v19 }
  0xc5   :  { %5496 = vmatpush1.bf16.msra.mxu0 %v8682_v9  ;;  %5530 = vmatprep.subr.bf16.mxu1 %v8137_v57  ;;  %v4871_v9 = vld [vmem:[%s10411_s3 + $0x368] sm:$0xff] }
  0xc6   :  { %5498 = vmatprep.subr.bf16.mxu0 %v8686_v61  ;;  %v8726_v1 = vpack.c.bf16 %v4873_v21, %v4871_v9  ;;  %v4872_v61 = vld [vmem:[%s10411_s3 + $0x370] sm:$0xff]  ;;  %v8743_v9 = vld [vmem:[%s10411_s3 + $0x388] sm:$0x3f] }
  0xc7   :  { %v8736_v49 = vpack.c.bf16 %v4872_v61, %v4870_v22  ;;  %v8753_v61 = vld [vmem:[%s10411_s3 + $0x380] sm:$0x3f] }
  0xc8   :  { %5532 = vmatpush1.bf16.msra.mxu1 %v8155_v47  ;;  %10572 = vst [vmem:[#allocation42_spill] sm:$0xff] %v8753_v61 }
  0xc9   :  { %5500 = vmatpush1.bf16.msra.mxu0 %v8702_v54  ;;  %5534 = vmatprep.subr.bf16.mxu1 %v8167_v26 }
  0xca   :  { %5502 = vmatprep.subr.bf16.mxu0 %v8706_v34 }
  0xcc   :  { %5536 = vmatpush1.bf16.msra.mxu1 %v8185_v52 }
  0xcd   :  { %5504 = vmatpush1.bf16.msra.mxu0 %v8722_v60  ;;  %5538 = vmatprep.subr.bf16.mxu1 %v8197_v28 }
  0xce   :  { %5506 = vmatprep.subr.bf16.mxu0 %v8726_v1 }
  0xd0   :  { %5540 = vmatpush1.bf16.msra.mxu1 %v8215_v55 }
  0xd1   :  { %5508 = vmatpush1.bf16.msra.mxu0 %v8736_v49  ;;  %5542 = vmatprep.subr.bf16.mxu1 %v8227_v30 }
  0xd2   :  { %4877 = vmatprep.subr.msk.mxu0 %vm392_vm5, %v8743_v9 }
  0xd4   :  { %5544 = vmatpush1.bf16.msra.mxu1 %v8239_v17 }
  0xd5   :  { %4878 = vmatpush1.msk.msra.mxu0 %vm392_vm5, %v8753_v61  ;;  %4883 = vmatprep.subr.msk.mxu1 %vm392_vm5, %v8257_v8 }
  0xd6   :  { %1562 = vmatmul.mubr.f32.vlgmr.msra.gmra.mrb[8].mxu0 %v10567_v13  ;;  %5546 = vmatprep.subr.bf16.mxu0 %v8291_v12  ;;  %v4709_v13 = vld [vmem:[%s10412_s4 + $0x2] sm:$0x3] }
  0xd7   :  { %5548 = vmatpush1.bf16.msra.mxu0 %v8299_v16 }
  0xd8   :  { %5550 = vmatprep.subr.bf16.mxu0 %v8301_v51  ;;  %4884 = vmatpush1.msk.msra.mxu1 %vm392_vm5, %v8289_v32 }
  0xd9   :  { %5582 = vmatprep.subr.bf16.mxu1 %v8551_v50 }
  0xdb   :  { %5552 = vmatpush1.bf16.msra.mxu0 %v8332_v62 }
  0xdc   :  { %5554 = vmatprep.subr.bf16.mxu0 %v8336_v10 }
  0xdf   :  { %5556 = vmatpush1.bf16.msra.mxu0 %v8363_v6 }
  0xe0   :  { %5558 = vmatprep.subr.bf16.mxu0 %v8366_v3 }
  0xe3   :  { %5560 = vmatpush1.bf16.msra.mxu0 %v8393_v2 }
  0xe4   :  { %5562 = vmatprep.subr.bf16.mxu0 %v8396_v37 }
  0xe7   :  { %5564 = vmatpush1.bf16.msra.mxu0 %v8423_v59 }
  0xe8   :  { %5566 = vmatprep.subr.bf16.mxu0 %v8426_v39 }
  0xeb   :  { %5568 = vmatpush1.bf16.msra.mxu0 %v8453_v45 }
  0xec   :  { %5570 = vmatprep.subr.bf16.mxu0 %v8456_v42  ;;  %v766_v42 = vrot.slane %v4709_v13, %v7316_v18 }
  0xef   :  { %5572 = vmatpush1.bf16.msra.mxu0 %v8483_v31 }
  0xf0   :  { %5574 = vmatprep.subr.bf16.mxu0 %v8486_v24 }
  0xf3   :  { %5576 = vmatpush1.bf16.msra.mxu0 %v8514_v4  ;;  %v505_v4 = vrot.slane %v500_v33, %v7227_v0 }
  0xf4   :  { %5578 = vmatprep.subr.bf16.mxu0 %v8517_v46 }
  0xf7   :  { %5580 = vmatpush1.bf16.msra.mxu0 %v8539_v53 }
  0xf8   :  { %4886 = vmatprep.subr.msk.mxu0 %vm392_vm5, %v8548_v27  ;;  %v509_v27 = vrot.slane %v500_v33, %v7316_v18  ;;  %v1217_v33 = vld [vmem:[%s10413_s5] sm:$0x3] }
  0xfb   :  { %4887 = vmatpush1.msk.msra.mxu0 %vm392_vm5, %v8573_v11  ;;  %v762_v11 = vrot.slane %v4709_v13, %v7227_v0 }
  0xfc   :  { %5618 = vmatprep.subr.bf16.mxu0 %v7954_v35 }
 0x137   :  { %v668_v21 = vpop.f32.mrb[0].mxu0 }
 0x138   :  { %v670_v22 = vpop.f32.mrb[1].mxu0  ;;  %v918_v46 = vpop.f32.mrb[0].mxu1  ;;  %v8819_v10 = vadd.f32 %v668_v21, %v505_v4 }
 0x139   :  { %v920_v53 = vpop.f32.mrb[1].mxu1  ;;  %v8822_v50 = vadd.f32 %v670_v22, %v509_v27 }
 0x13a   :  { %10578 = vst [vmem:[#allocation48_spill] sm:$0xff] %v8819_v10 }
 0x13b   :  { %v674_v24 = vpop.f32.mrb[2].mxu0  ;;  %10579 = vst [vmem:[#allocation49_spill] sm:$0xff] %v8822_v50 }
 0x13c   :  { %v8796_v35 = vadd.f32 %v674_v24, %v505_v4  ;;  %v676_v31 = vpop.f32.mrb[3].mxu0  ;;  %v924_v45 = vpop.f32.mrb[2].mxu1  ;;  %v8809_v24 = vrot.slane %v1217_v33, %v7227_v0 }
 0x13d   :  { %v8799_v39 = vadd.f32 %v676_v31, %v509_v27  ;;  %v8801_v59 = vadd.f32 %v924_v45, %v762_v11  ;;  %v926_v37 = vpop.f32.mrb[3].mxu1  ;;  %v4790_v45 = vld [vmem:[%s10412_s4 + $0x4] sm:$0x3] }
 0x13e   :  { %10573 = vst [vmem:[#allocation43_spill] sm:$0xff] %v8796_v35  ;;  %v8803_v2 = vadd.f32 %v926_v37, %v766_v42  ;;  %10577 = vst [vmem:[#allocation47_spill] sm:$0xff] %v8809_v24  ;;  %v8812_v35 = vrot.slane %v1217_v33, %v7316_v18  ;;  %v1012_v62 = vrot.slane %v4790_v45, %v7227_v0 }
 0x13f   :  { %10574 = vst [vmem:[#allocation44_spill] sm:$0xff] %v8799_v39  ;;  %10575 = vst [vmem:[#allocation45_spill] sm:$0xff] %v8801_v59  ;;  %v1016_v33 = vrot.slane %v4790_v45, %v7316_v18 }
 0x140   :  { %10576 = vst [vmem:[#allocation46_spill] sm:$0xff] %v8803_v2 }
 0x15e   :  { %v1305_v3 = vpop.f32.mrb[4].mxu1 }
 0x15f   :  { %v1307_v6 = vpop.f32.mrb[5].mxu1  ;;  %v1306_v37 = vadd.f32 %v1305_v3, %v8809_v24  ;;  %v4835_v3 = vld [vmem:[%s10413_s5 + $0x2] sm:$0x3] }
 0x160   :  { %v1308_v59 = vadd.f32 %v1307_v6, %v8812_v35  ;;  %v8835_v21 = vrot.slane %v4835_v3, %v7227_v0  ;;  %v8838_v22 = vrot.slane %v4835_v3, %v7316_v18 }
 0x161   :  { %v1568_v32 = vadd.f32 %v8819_v10, %v1306_v37 }
 0x162   :  { %v1569_v6 = vadd.f32 %v8822_v50, %v1308_v59  ;;  %10582 = vst [vmem:[#allocation52_spill] sm:$0xff] %v8835_v21 }
 0x163   :  { %v4879_v27 = vmul.f32 -1.442695, %v1568_v32 }
 0x164   :  { %v4880_v45 = vmul.f32 -1.442695, %v1569_v6 }
 0x165   :  { %6594 = vpow2.f32 %v4879_v27 }
 0x166   :  { %6596 = vpow2.f32 %v4880_v45 }
 0x16f   :  { %v6595_v50 = vpop.eup %6594 }
 0x170   :  { %v6597_v3 = vpop.eup %6596  ;;  %v1576_v6 = vadd.f32 1.0, %v6595_v50 }
 0x183   :  { %v1168_v31 = vpop.f32.mrb[4].mxu0 }
 0x184   :  { %v1434_v13 = vpop.f32.mrb[6].mxu1  ;;  %v1170_v2 = vpop.f32.mrb[5].mxu0 }
 0x185   :  { %v1436_v39 = vpop.f32.mrb[7].mxu1  ;;  %v1435_v37 = vadd.f32 %v1434_v13, %v8835_v21  ;;  %v1577_v13 = vadd.f32 1.0, %v6597_v3 }
 0x186   :  { %v1437_v10 = vadd.f32 %v1436_v39, %v8838_v22  ;;  %v4876_v39 = vld [vmem:[%s10413_s5 + $0x4] sm:$0x3] }
 0x187   :  { %v1174_v51 = vpop.f32.mrb[6].mxu0 }
 0x188   :  { %v8829_v24 = vadd.f32 %v1174_v51, %v1012_v62  ;;  %v1176_v16 = vpop.f32.mrb[7].mxu0  ;;  %v8842_v51 = vadd.f32 %v918_v46, %v762_v11 }
 0x189   :  { %v8832_v4 = vadd.f32 %v1176_v16, %v1016_v33 }
 0x18a   :  { %10580 = vst [vmem:[#allocation50_spill] sm:$0xff] %v8829_v24  ;;  %v8844_v24 = vadd.f32 %v920_v53, %v766_v42  ;;  %v1582_v16 = vadd.f32 %v8842_v51, %v1435_v37  ;;  %v8852_v53 = vrot.slane %v4876_v39, %v7227_v0 }
 0x18b   :  { %10581 = vst [vmem:[#allocation51_spill] sm:$0xff] %v8832_v4 }
 0x18c   :  { %v1583_v59 = vadd.f32 %v8844_v24, %v1437_v10  ;;  %v4881_v4 = vmul.f32 -1.442695, %v1582_v16  ;;  %10583 = vst [vmem:[#allocation53_spill] sm:$0xff] %v8852_v53  ;;  %v8855_v10 = vrot.slane %v4876_v39, %v7316_v18 }
 0x18e   :  { %v4882_v32 = vmul.f32 -1.442695, %v1583_v59  ;;  %6598 = vpow2.f32 %v4881_v4  ;;  %10584 = vst [vmem:[#allocation54_spill] sm:$0xff] %v8855_v10 }
 0x190   :  { %6600 = vpow2.f32 %v4882_v32  ;;  %v8859_v32 = vadd.f32 %v1168_v31, %v1012_v62 }
 0x191   :  { %6602 = vrcp.f32 %v1576_v6  ;;  %v8861_v6 = vadd.f32 %v1170_v2, %v1016_v33 }
 0x192   :  { %6604 = vrcp.f32 %v1577_v13 }
 0x198   :  { %v6599_v42 = vpop.eup %6598 }
 0x199   :  { %v1590_v11 = vadd.f32 1.0, %v6599_v42 }
 0x19a   :  { %v6601_v46 = vpop.eup %6600 }
 0x19b   :  { %v1591_v27 = vadd.f32 1.0, %v6601_v46  ;;  %v6603_v37 = vpop.eup %6602  ;;  %6606 = vrcp.f32 %v1590_v11 }
 0x19c   :  { %v6605_v59 = vpop.eup %6604 }
 0x19d   :  { %6608 = vrcp.f32 %v1591_v27  ;;  %v10588_v27 = vld [vmem:[#allocation18_spill] sm:$0xff] }
 0x1a5   :  { %v6607_v46 = vpop.eup %6606 }
 0x1a6   :  { %v1602_v18 = vsub.f32 1.0, %v6607_v46  ;;  %v1606_v31 = vmul.f32 0.0, %v6607_v46  ;;  %v10597_v46 = vld [vmem:[#allocation28_spill] sm:$0xff] }
 0x1a9   :  { %v1563_v4 = vpop.f32.mrb[8].mxu0 }
 0x1aa   :  { %v1564_v50 = vadd.f32 %v1563_v4, %v8852_v53  ;;  %v1565_v45 = vpop.f32.mrb[9].mxu0  ;;  %v6609_v4 = vpop.eup %6608 }
 0x1ab   :  { %v1566_v16 = vadd.f32 %v1565_v45, %v8855_v10  ;;  %v1603_v45 = vsub.f32 1.0, %v6609_v4 }
 0x1ac   :  { %v1596_v3 = vmul.f32 %v6603_v37, %v1564_v50  ;;  %v1607_v50 = vmul.f32 0.0, %v6609_v4  ;;  %v10589_v37 = vld [vmem:[#allocation21_spill] sm:$0xff] }
 0x1ad   :  { %v1597_v13 = vmul.f32 %v6605_v59, %v1566_v16  ;;  %v10590_v16 = vld [vmem:[#allocation38_spill] sm:$0xff]  ;;  %v10598_v4 = vld [vmem:[#allocation29_spill] sm:$0xff] }
 0x1ae   :  { %v1598_v39 = vadd.f32 %v8859_v32, %v1596_v3  ;;  %v10591_v59 = vld [vmem:[#allocation22_spill] sm:$0xff]  ;;  %v10592_v3 = vld [vmem:[#allocation23_spill] sm:$0xff] }
 0x1af   :  { %v1599_v42 = vadd.f32 %v8861_v6, %v1597_v13  ;;  %v10594_v13 = vld [vmem:[#allocation25_spill] sm:$0xff] }
 0x1b0   :  { %6610 = vtanh.f32 %v1598_v39  ;;  %v10595_v39 = vld [vmem:[#allocation26_spill] sm:$0xff] }
 0x1b1   :  { %6612 = vtanh.f32 %v1599_v42  ;;  %v10596_v42 = vld [vmem:[#allocation27_spill] sm:$0xff] }
 0x1ba   :  { %v6611_v0 = vpop.eup %6610 }
 0x1bb   :  { %v6613_v10 = vpop.eup %6612  ;;  %v1604_v62 = vmul.f32 %v6611_v0, %v1602_v18  ;;  %v10585_v0 = vld [vmem:[#allocation40_spill] sm:$0xff]  ;;  %v10586_v18 = vld [vmem:[#allocation41_spill] sm:$0xff] }
 0x1bc   :  { %v1605_v11 = vmul.f32 %v6613_v10, %v1603_v45  ;;  %v10587_v10 = vld [vmem:[#allocation20_spill] sm:$0xff]  ;;  %v10599_v45 = vld [vmem:[#allocation30_spill] sm:$0xff] }
 0x1bd   :  { %v8865_v2 = vadd.f32 %v1606_v31, %v1604_v62  ;;  %v10600_v62 = vld [vmem:[#allocation31_spill] sm:$0xff]  ;;  %v10601_v31 = vld [vmem:[#allocation32_spill] sm:$0xff] }
 0x1be   :  { %v8867_v33 = vadd.f32 %v1607_v50, %v1605_v11  ;;  %v10602_v11 = vld [vmem:[#allocation33_spill] sm:$0xff]  ;;  %v10603_v50 = vld [vmem:[#allocation34_spill] sm:$0xff] }
 0x1c0   :  { %4885 = vmatprep.mubr.msk.f32.mxu1 %vm1229_vm10, %v8867_v33  ;;  %4888 = vmatprep.mubr.msk.f32.mxu0 %vm1229_vm10, %v8867_v33 }
 0x1c1   :  { %1678 = vmatmul.mubr.f32.vlgmr.msra.gmra.mrb[8].mxu1 %v8865_v2  ;;  %1749 = vmatmul.mubr.f32.vlgmr.msra.gmra.mrb[10].mxu0 %v8865_v2 }
 0x1c2   :  { %5584 = vmatpush1.bf16.msra.mxu1 %v8575_v15  ;;  %4891 = vmatprep.mubr.msk.f32.mxu1 %vm1229_vm10, %v8867_v33 }
 0x1c3   :  { %5586 = vmatprep.subr.bf16.mxu1 %v8578_v20  ;;  %5620 = vmatpush1.bf16.msra.mxu0 %v7987_v56 }
 0x1c4   :  { %5622 = vmatprep.subr.bf16.mxu0 %v8001_v58 }
 0x1c6   :  { %5588 = vmatpush1.bf16.msra.mxu1 %v8598_v44 }
 0x1c7   :  { %5590 = vmatprep.subr.bf16.mxu1 %v8602_v40  ;;  %5624 = vmatpush1.bf16.msra.mxu0 %v8028_v25 }
 0x1c8   :  { %5626 = vmatprep.subr.bf16.mxu0 %v8040_v23 }
 0x1ca   :  { %5592 = vmatpush1.bf16.msra.mxu1 %v8621_v36 }
 0x1cb   :  { %5594 = vmatprep.subr.bf16.mxu1 %v8625_v5  ;;  %5628 = vmatpush1.bf16.msra.mxu0 %v8063_v43 }
 0x1cc   :  { %5630 = vmatprep.subr.bf16.mxu0 %v8075_v63 }
 0x1ce   :  { %5596 = vmatpush1.bf16.msra.mxu1 %v8642_v14 }
 0x1cf   :  { %5598 = vmatprep.subr.bf16.mxu1 %v8646_v38  ;;  %5632 = vmatpush1.bf16.msra.mxu0 %v8095_v29 }
 0x1d0   :  { %5634 = vmatprep.subr.bf16.mxu0 %v8107_v7 }
 0x1d2   :  { %5600 = vmatpush1.bf16.msra.mxu1 %v8662_v48 }
 0x1d3   :  { %5602 = vmatprep.subr.bf16.mxu1 %v8666_v41  ;;  %5636 = vmatpush1.bf16.msra.mxu0 %v8125_v19 }
 0x1d4   :  { %5638 = vmatprep.subr.bf16.mxu0 %v8137_v57 }
 0x1d6   :  { %5604 = vmatpush1.bf16.msra.mxu1 %v10585_v0 }
 0x1d7   :  { %5606 = vmatprep.subr.bf16.mxu1 %v10586_v18  ;;  %5640 = vmatpush1.bf16.msra.mxu0 %v8155_v47 }
 0x1d8   :  { %5642 = vmatprep.subr.bf16.mxu0 %v8167_v26 }
 0x1da   :  { %5608 = vmatpush1.bf16.msra.mxu1 %v8702_v54 }
 0x1db   :  { %5610 = vmatprep.subr.bf16.mxu1 %v8706_v34  ;;  %5644 = vmatpush1.bf16.msra.mxu0 %v8185_v52 }
 0x1dc   :  { %5646 = vmatprep.subr.bf16.mxu0 %v8197_v28 }
 0x1de   :  { %5612 = vmatpush1.bf16.msra.mxu1 %v8722_v60 }
 0x1df   :  { %5614 = vmatprep.subr.bf16.mxu1 %v8726_v1  ;;  %5648 = vmatpush1.bf16.msra.mxu0 %v8215_v55 }
 0x1e0   :  { %5650 = vmatprep.subr.bf16.mxu0 %v8227_v30 }
 0x1e2   :  { %5616 = vmatpush1.bf16.msra.mxu1 %v8736_v49 }
 0x1e3   :  { %4889 = vmatprep.subr.msk.mxu1 %vm392_vm5, %v8743_v9  ;;  %5652 = vmatpush1.bf16.msra.mxu0 %v8239_v17 }
 0x1e4   :  { %4896 = vmatprep.subr.msk.mxu0 %vm392_vm5, %v8257_v8  ;;  %v10593_v8 = vld [vmem:[#allocation24_spill] sm:$0xff] }
 0x1e6   :  { %4890 = vmatpush1.msk.msra.mxu1 %vm392_vm5, %v8753_v61 }
 0x1e7   :  { %1820 = vmatmul.mubr.f32.vlgmr.msra.gmra.mrb[10].mxu1 %v8865_v2  ;;  %5654 = vmatprep.subr.bf16.mxu1 %v8291_v12 }
 0x1e8   :  { %5656 = vmatpush1.bf16.msra.mxu1 %v10587_v10  ;;  %4897 = vmatpush1.msk.msra.mxu0 %vm392_vm5, %v10588_v27  ;;  %v10604_v27 = vld [vmem:[#allocation35_spill] sm:$0xff] }
 0x1e9   :  { %5658 = vmatprep.subr.bf16.mxu1 %v10589_v37  ;;  %5690 = vmatprep.subr.bf16.mxu0 %v10590_v16  ;;  %v10610_v37 = vld [vmem:[#allocation48_spill] sm:$0xff] }
 0x1ec   :  { %5660 = vmatpush1.bf16.msra.mxu1 %v10591_v59 }
 0x1ed   :  { %5662 = vmatprep.subr.bf16.mxu1 %v10592_v3 }
 0x1f0   :  { %5664 = vmatpush1.bf16.msra.mxu1 %v10593_v8 }
 0x1f1   :  { %5666 = vmatprep.subr.bf16.mxu1 %v10594_v13  ;;  %v10605_v13 = vld [vmem:[#allocation36_spill] sm:$0xff] }
 0x1f4   :  { %5668 = vmatpush1.bf16.msra.mxu1 %v10595_v39  ;;  %v10606_v39 = vld [vmem:[#allocation37_spill] sm:$0xff] }
 0x1f5   :  { %5670 = vmatprep.subr.bf16.mxu1 %v10596_v42  ;;  %v10609_v42 = vld [vmem:[#allocation47_spill] sm:$0xff] }
 0x1f8   :  { %5672 = vmatpush1.bf16.msra.mxu1 %v10597_v46  ;;  %v10607_v46 = vld [vmem:[#allocation39_spill] sm:$0xff] }
 0x1f9   :  { %5674 = vmatprep.subr.bf16.mxu1 %v10598_v4  ;;  %v10608_v4 = vld [vmem:[#allocation16_spill] sm:$0xff] }
 0x1fc   :  { %5676 = vmatpush1.bf16.msra.mxu1 %v10599_v45 }
 0x1fd   :  { %5678 = vmatprep.subr.bf16.mxu1 %v10600_v62 }
 0x200   :  { %5680 = vmatpush1.bf16.msra.mxu1 %v10601_v31 }
 0x201   :  { %5682 = vmatprep.subr.bf16.mxu1 %v10602_v11 }
 0x204   :  { %5684 = vmatpush1.bf16.msra.mxu1 %v10603_v50 }
 0x205   :  { %5686 = vmatprep.subr.bf16.mxu1 %v10604_v27 }
 0x208   :  { %5688 = vmatpush1.bf16.msra.mxu1 %v10605_v13 }
 0x209   :  { %4899 = vmatprep.subr.msk.mxu1 %vm392_vm5, %v10606_v39 }
 0x20c   :  { %4900 = vmatpush1.msk.msra.mxu1 %vm392_vm5, %v10607_v46 }
 0x20d   :  { %5726 = vmatprep.subr.bf16.mxu1 %v10608_v4 }
 0x294   :  { %v1679_v45 = vpop.f32.mrb[8].mxu1  ;;  %v1750_v62 = vpop.f32.mrb[10].mxu0 }
 0x295   :  { %v1680_v31 = vadd.f32 %v1679_v45, %v10609_v42  ;;  %v1751_v11 = vadd.f32 %v1750_v62, %v8835_v21  ;;  %v1681_v8 = vpop.f32.mrb[9].mxu1  ;;  %v1752_v50 = vpop.f32.mrb[11].mxu0  ;;  %v10611_v45 = vld [vmem:[#allocation49_spill] sm:$0xff] }
 0x296   :  { %v1682_v27 = vadd.f32 %v1681_v8, %v8812_v35  ;;  %v1753_v13 = vadd.f32 %v1752_v50, %v8838_v22 }
 0x297   :  { %v1828_v3 = vrot.slane %v1680_v31, 6  ;;  %v1848_v59 = vrot.slane %v1751_v11, 6 }
 0x298   :  { %v1829_v39 = vrot.slane %v1682_v27, 6  ;;  %v1849_v16 = vrot.slane %v1753_v13, 6 }
 0x299   :  { %v1852_v46 = vadd.f32 %v8842_v51, %v1848_v59  ;;  %v1832_v10 = vadd.f32 %v10610_v37, %v1828_v3 }
 0x29a   :  { %v1853_v4 = vadd.f32 %v8844_v24, %v1849_v16  ;;  %v1833_v42 = vadd.f32 %v10611_v45, %v1829_v39  ;;  %v1883_v39 = vrot.slane %v8865_v2, 6 }
 0x29b   :  { %v4894_v12 = vmul.f32 -1.442695, %v1852_v46  ;;  %v4892_v21 = vmul.f32 -1.442695, %v1832_v10 }
 0x29c   :  { %v4895_v62 = vmul.f32 -1.442695, %v1853_v4  ;;  %v4893_v61 = vmul.f32 -1.442695, %v1833_v42 }
 0x29d   :  { %6614 = vpow2.f32 %v4894_v12  ;;  %v1884_v12 = vrot.slane %v8867_v33, 6 }
 0x29e   :  { %6616 = vpow2.f32 %v4895_v62  ;;  %v10612_v62 = vld [vmem:[#allocation54_spill] sm:$0xff] }
 0x29f   :  { %6618 = vpow2.f32 %v4892_v21 }
 0x2a0   :  { %6620 = vpow2.f32 %v4893_v61 }
 0x2a7   :  { %v6615_v8 = vpop.eup %6614 }
 0x2a8   :  { %v1860_v31 = vadd.f32 1.0, %v6615_v8  ;;  %v6617_v11 = vpop.eup %6616 }
 0x2a9   :  { %v1861_v13 = vadd.f32 1.0, %v6617_v11  ;;  %v6619_v59 = vpop.eup %6618 }
 0x2aa   :  { %6622 = vrcp.f32 %v1860_v31  ;;  %v6621_v16 = vpop.eup %6620  ;;  %v1840_v50 = vadd.f32 1.0, %v6619_v59 }
 0x2ab   :  { %6624 = vrcp.f32 %v1861_v13  ;;  %v1841_v3 = vadd.f32 1.0, %v6621_v16 }
 0x2ac   :  { %6626 = vrcp.f32 %v1840_v50 }
 0x2ad   :  { %6628 = vrcp.f32 %v1841_v3 }
 0x2b4   :  { %v6623_v46 = vpop.eup %6622 }
 0x2b5   :  { %v1887_v10 = vmul.f32 %v6623_v46, %v1883_v39  ;;  %v6625_v21 = vpop.eup %6624  ;;  %v1878_v33 = vsub.f32 1.0, %v6623_v46  ;;  %v10615_v46 = vld [vmem:[#allocation19_spill] sm:$0xff] }
 0x2b6   :  { %v1888_v61 = vmul.f32 %v6625_v21, %v1884_v12  ;;  %v6627_v11 = vpop.eup %6626  ;;  %v1879_v12 = vsub.f32 1.0, %v6625_v21  ;;  %v9017_v21 = vld [vmem:[%s10411_s3 + $0x120] sm:$0x3f] }
 0x2b7   :  { %v6629_v59 = vpop.eup %6628  ;;  %10617 = vst [vmem:[#allocation41_spill] sm:$0xff] %v9017_v21 }
 0x2ba   :  { %v1821_v42 = vpop.f32.mrb[10].mxu1 }
 0x2bb   :  { %v1822_v4 = vadd.f32 %v1821_v42, %v8852_v53  ;;  %v1823_v27 = vpop.f32.mrb[11].mxu1 }
 0x2bc   :  { %v1824_v8 = vadd.f32 %v1823_v27, %v10612_v62 }
 0x2bd   :  { %v1868_v31 = vrot.slane %v1822_v4, 6 }
 0x2be   :  { %v1869_v13 = vrot.slane %v1824_v8, 6 }
 0x2bf   :  { %v1872_v16 = vmul.f32 %v6627_v11, %v1868_v31  ;;  %v10619_v31 = vld [vmem:[#allocation38_spill] sm:$0xff] }
 0x2c0   :  { %v1873_v50 = vmul.f32 %v6629_v59, %v1869_v13  ;;  %v10620_v11 = vld [vmem:[#allocation22_spill] sm:$0xff]  ;;  %v10621_v13 = vld [vmem:[#allocation23_spill] sm:$0xff]  ;;  %v10622_v59 = vld [vmem:[#allocation24_spill] sm:$0xff] }
 0x2c1   :  { %v1874_v2 = vadd.f32 %v8859_v32, %v1872_v16  ;;  %v10623_v16 = vld [vmem:[#allocation25_spill] sm:$0xff] }
 0x2c2   :  { %v1875_v3 = vadd.f32 %v8861_v6, %v1873_v50  ;;  %v10624_v50 = vld [vmem:[#allocation26_spill] sm:$0xff] }
 0x2c3   :  { %6630 = vtanh.f32 %v1874_v2  ;;  %v10625_v2 = vld [vmem:[#allocation27_spill] sm:$0xff] }
 0x2c4   :  { %6632 = vtanh.f32 %v1875_v3  ;;  %v10626_v3 = vld [vmem:[#allocation28_spill] sm:$0xff] }
 0x2cd   :  { %v6631_v39 = vpop.eup %6630 }
 0x2ce   :  { %v6633_v45 = vpop.eup %6632  ;;  %v1880_v42 = vmul.f32 %v6631_v39, %v1878_v33  ;;  %v10627_v33 = vld [vmem:[#allocation29_spill] sm:$0xff]  ;;  %v10628_v39 = vld [vmem:[#allocation30_spill] sm:$0xff] }
 0x2cf   :  { %v1881_v53 = vmul.f32 %v6633_v45, %v1879_v12  ;;  %v10614_v45 = vld [vmem:[#allocation42_spill] sm:$0xff]  ;;  %v10629_v12 = vld [vmem:[#allocation31_spill] sm:$0xff] }
 0x2d0   :  { %v8958_v37 = vadd.f32 %v1887_v10, %v1880_v42  ;;  %v10616_v10 = vld [vmem:[#allocation20_spill] sm:$0xff] }
 0x2d1   :  { %v8960_v4 = vadd.f32 %v1888_v61, %v1881_v53  ;;  %v9006_v53 = vld [vmem:[%s10411_s3 + $0x128] sm:$0x3f] }
 0x2d2   :  { %v1893_v8 = vrot.slane %v8958_v37, 2  ;;  %10613 = vst [vmem:[#allocation40_spill] sm:$0xff] %v9006_v53  ;;  %v10618_v61 = vld [vmem:[#allocation21_spill] sm:$0xff]  ;;  %v10630_v42 = vld [vmem:[#allocation32_spill] sm:$0xff] }
 0x2d3   :  { %v1894_v27 = vrot.slane %v8960_v4, 2 }
 0x2d5   :  { %4898 = vmatprep.mubr.msk.f32.mxu0 %vm1229_vm10, %v1894_v27  ;;  %4901 = vmatprep.mubr.msk.f32.mxu1 %vm1229_vm10, %v1894_v27 }
 0x2d6   :  { %1963 = vmatmul.mubr.f32.vlgmr.msra.gmra.mrb[12].mxu0 %v1893_v8  ;;  %2034 = vmatmul.mubr.f32.vlgmr.msra.gmra.mrb[12].mxu1 %v1893_v8 }
 0x2d7   :  { %5692 = vmatpush1.bf16.msra.mxu0 %v8575_v15  ;;  %4904 = vmatprep.mubr.msk.f32.mxu0 %vm1229_vm10, %v1894_v27  ;;  %v10631_v27 = vld [vmem:[#allocation33_spill] sm:$0xff] }
 0x2d8   :  { %5694 = vmatprep.subr.bf16.mxu0 %v8578_v20  ;;  %5728 = vmatpush1.bf16.msra.mxu1 %v7987_v56 }
 0x2d9   :  { %5730 = vmatprep.subr.bf16.mxu1 %v8001_v58 }
 0x2db   :  { %5696 = vmatpush1.bf16.msra.mxu0 %v8598_v44 }
 0x2dc   :  { %5698 = vmatprep.subr.bf16.mxu0 %v8602_v40  ;;  %5732 = vmatpush1.bf16.msra.mxu1 %v8028_v25 }
 0x2dd   :  { %5734 = vmatprep.subr.bf16.mxu1 %v8040_v23 }
 0x2df   :  { %5700 = vmatpush1.bf16.msra.mxu0 %v8621_v36 }
 0x2e0   :  { %5702 = vmatprep.subr.bf16.mxu0 %v8625_v5  ;;  %5736 = vmatpush1.bf16.msra.mxu1 %v8063_v43 }
 0x2e1   :  { %5738 = vmatprep.subr.bf16.mxu1 %v8075_v63 }
 0x2e3   :  { %5704 = vmatpush1.bf16.msra.mxu0 %v8642_v14 }
 0x2e4   :  { %5706 = vmatprep.subr.bf16.mxu0 %v8646_v38  ;;  %5740 = vmatpush1.bf16.msra.mxu1 %v8095_v29 }
 0x2e5   :  { %5742 = vmatprep.subr.bf16.mxu1 %v8107_v7 }
 0x2e7   :  { %5708 = vmatpush1.bf16.msra.mxu0 %v8662_v48 }
 0x2e8   :  { %5710 = vmatprep.subr.bf16.mxu0 %v8666_v41  ;;  %5744 = vmatpush1.bf16.msra.mxu1 %v8125_v19 }
 0x2e9   :  { %5746 = vmatprep.subr.bf16.mxu1 %v8137_v57 }
 0x2eb   :  { %5712 = vmatpush1.bf16.msra.mxu0 %v10585_v0 }
 0x2ec   :  { %5714 = vmatprep.subr.bf16.mxu0 %v10586_v18  ;;  %5748 = vmatpush1.bf16.msra.mxu1 %v8155_v47 }
 0x2ed   :  { %5750 = vmatprep.subr.bf16.mxu1 %v8167_v26 }
 0x2ef   :  { %5716 = vmatpush1.bf16.msra.mxu0 %v8702_v54 }
 0x2f0   :  { %5718 = vmatprep.subr.bf16.mxu0 %v8706_v34  ;;  %5752 = vmatpush1.bf16.msra.mxu1 %v8185_v52 }
 0x2f1   :  { %5754 = vmatprep.subr.bf16.mxu1 %v8197_v28 }
 0x2f3   :  { %5720 = vmatpush1.bf16.msra.mxu0 %v8722_v60 }
 0x2f4   :  { %5722 = vmatprep.subr.bf16.mxu0 %v8726_v1  ;;  %5756 = vmatpush1.bf16.msra.mxu1 %v8215_v55 }
 0x2f5   :  { %5758 = vmatprep.subr.bf16.mxu1 %v8227_v30 }
 0x2f7   :  { %5724 = vmatpush1.bf16.msra.mxu0 %v8736_v49 }
 0x2f8   :  { %4902 = vmatprep.subr.msk.mxu0 %vm392_vm5, %v8743_v9  ;;  %5760 = vmatpush1.bf16.msra.mxu1 %v8239_v17 }
 0x2f9   :  { %4909 = vmatprep.subr.msk.mxu1 %vm392_vm5, %v9006_v53 }
 0x2fb   :  { %4903 = vmatpush1.msk.msra.mxu0 %vm392_vm5, %v10614_v45 }
 0x2fc   :  { %2105 = vmatmul.mubr.f32.vlgmr.msra.gmra.mrb[14].mxu0 %v1893_v8  ;;  %5762 = vmatprep.subr.bf16.mxu0 %v10615_v46  ;;  %v10632_v8 = vld [vmem:[#allocation34_spill] sm:$0xff] }
 0x2fd   :  { %5764 = vmatpush1.bf16.msra.mxu0 %v10616_v10  ;;  %4910 = vmatpush1.msk.msra.mxu1 %vm392_vm5, %v9017_v21  ;;  %v10640_v10 = vld [vmem:[#allocation48_spill] sm:$0xff] }
 0x2fe   :  { %5766 = vmatprep.subr.bf16.mxu0 %v10618_v61  ;;  %5798 = vmatprep.subr.bf16.mxu1 %v10619_v31 }
 0x301   :  { %5768 = vmatpush1.bf16.msra.mxu0 %v10620_v11 }
 0x302   :  { %5770 = vmatprep.subr.bf16.mxu0 %v10621_v13  ;;  %v10639_v13 = vld [vmem:[#allocation52_spill] sm:$0xff] }
 0x305   :  { %5772 = vmatpush1.bf16.msra.mxu0 %v10622_v59  ;;  %v10633_v59 = vld [vmem:[#allocation35_spill] sm:$0xff] }
 0x306   :  { %5774 = vmatprep.subr.bf16.mxu0 %v10623_v16  ;;  %v10634_v16 = vld [vmem:[#allocation36_spill] sm:$0xff] }
 0x309   :  { %5776 = vmatpush1.bf16.msra.mxu0 %v10624_v50  ;;  %v10635_v50 = vld [vmem:[#allocation37_spill] sm:$0xff] }
 0x30a   :  { %5778 = vmatprep.subr.bf16.mxu0 %v10625_v2  ;;  %v10638_v2 = vld [vmem:[#allocation47_spill] sm:$0xff] }
 0x30d   :  { %5780 = vmatpush1.bf16.msra.mxu0 %v10626_v3  ;;  %v10636_v3 = vld [vmem:[#allocation39_spill] sm:$0xff] }
 0x30e   :  { %5782 = vmatprep.subr.bf16.mxu0 %v10627_v33  ;;  %v10637_v33 = vld [vmem:[#allocation16_spill] sm:$0xff] }
 0x311   :  { %5784 = vmatpush1.bf16.msra.mxu0 %v10628_v39 }
 0x312   :  { %5786 = vmatprep.subr.bf16.mxu0 %v10629_v12 }
 0x315   :  { %5788 = vmatpush1.bf16.msra.mxu0 %v10630_v42 }
 0x316   :  { %5790 = vmatprep.subr.bf16.mxu0 %v10631_v27 }
 0x319   :  { %5792 = vmatpush1.bf16.msra.mxu0 %v10632_v8 }
 0x31a   :  { %5794 = vmatprep.subr.bf16.mxu0 %v10633_v59 }
 0x31d   :  { %5796 = vmatpush1.bf16.msra.mxu0 %v10634_v16 }
 0x31e   :  { %4912 = vmatprep.subr.msk.mxu0 %vm392_vm5, %v10635_v50 }
 0x321   :  { %4913 = vmatpush1.msk.msra.mxu0 %vm392_vm5, %v10636_v3 }
 0x322   :  { %5834 = vmatprep.subr.bf16.mxu0 %v10637_v33 }
 0x3a9   :  { %v1964_v39 = vpop.f32.mrb[12].mxu0  ;;  %v2035_v12 = vpop.f32.mrb[12].mxu1 }
 0x3aa   :  { %v1965_v42 = vadd.f32 %v1964_v39, %v10638_v2  ;;  %v2036_v27 = vadd.f32 %v2035_v12, %v10639_v13  ;;  %v1966_v11 = vpop.f32.mrb[13].mxu0  ;;  %v2037_v8 = vpop.f32.mrb[13].mxu1  ;;  %v10641_v39 = vld [vmem:[#allocation49_spill] sm:$0xff] }
 0x3ab   :  { %v1967_v59 = vadd.f32 %v1966_v11, %v8812_v35  ;;  %v2038_v16 = vadd.f32 %v2037_v8, %v8838_v22  ;;  %v2167_v8 = vrot.slane %v8958_v37, 6 }
 0x3ac   :  { %v2113_v31 = vrot.slane %v1965_v42, 4  ;;  %v2133_v61 = vrot.slane %v2036_v27, 4 }
 0x3ad   :  { %v2114_v50 = vrot.slane %v1967_v59, 4  ;;  %v2134_v21 = vrot.slane %v2038_v16, 4 }
 0x3ae   :  { %v2137_v3 = vadd.f32 %v8842_v51, %v2133_v61  ;;  %v2117_v46 = vadd.f32 %v10640_v10, %v2113_v31 }
 0x3af   :  { %v2138_v33 = vadd.f32 %v8844_v24, %v2134_v21  ;;  %v2118_v2 = vadd.f32 %v10641_v39, %v2114_v50  ;;  %v10642_v50 = vld [vmem:[#allocation53_spill] sm:$0xff] }
 0x3b0   :  { %v4907_v45 = vmul.f32 -1.442695, %v2137_v3  ;;  %v4905_v13 = vmul.f32 -1.442695, %v2117_v46 }
 0x3b1   :  { %v4908_v12 = vmul.f32 -1.442695, %v2138_v33  ;;  %v4906_v53 = vmul.f32 -1.442695, %v2118_v2 }
 0x3b2   :  { %6634 = vpow2.f32 %v4907_v45  ;;  %v2168_v45 = vrot.slane %v8960_v4, 6 }
 0x3b3   :  { %6636 = vpow2.f32 %v4908_v12 }
 0x3b4   :  { %6638 = vpow2.f32 %v4905_v13 }
 0x3b5   :  { %6640 = vpow2.f32 %v4906_v53 }
 0x3bc   :  { %v6635_v11 = vpop.eup %6634 }
 0x3bd   :  { %v2145_v42 = vadd.f32 1.0, %v6635_v11  ;;  %v6637_v59 = vpop.eup %6636 }
 0x3be   :  { %v2146_v16 = vadd.f32 1.0, %v6637_v59  ;;  %v6639_v61 = vpop.eup %6638 }
 0x3bf   :  { %6642 = vrcp.f32 %v2145_v42  ;;  %v6641_v21 = vpop.eup %6640  ;;  %v2125_v27 = vadd.f32 1.0, %v6639_v61 }
 0x3c0   :  { %6644 = vrcp.f32 %v2146_v16  ;;  %v2126_v31 = vadd.f32 1.0, %v6641_v21 }
 0x3c1   :  { %6646 = vrcp.f32 %v2125_v27 }
 0x3c2   :  { %6648 = vrcp.f32 %v2126_v31 }
 0x3c9   :  { %v6643_v33 = vpop.eup %6642 }
 0x3ca   :  { %v2171_v46 = vmul.f32 %v6643_v33, %v2167_v8  ;;  %v6645_v13 = vpop.eup %6644  ;;  %v2163_v4 = vsub.f32 1.0, %v6643_v33  ;;  %v10644_v33 = vld [vmem:[#allocation42_spill] sm:$0xff] }
 0x3cb   :  { %v2172_v53 = vmul.f32 %v6645_v13, %v2168_v45  ;;  %v6647_v59 = vpop.eup %6646  ;;  %v2164_v45 = vsub.f32 1.0, %v6645_v13  ;;  %v10646_v13 = vld [vmem:[#allocation20_spill] sm:$0xff] }
 0x3cc   :  { %v6649_v61 = vpop.eup %6648 }
 0x3cf   :  { %v2106_v2 = vpop.f32.mrb[14].mxu0 }
 0x3d0   :  { %v2107_v3 = vadd.f32 %v2106_v2, %v10642_v50  ;;  %v2108_v12 = vpop.f32.mrb[15].mxu0 }
 0x3d1   :  { %v2109_v11 = vadd.f32 %v2108_v12, %v10612_v62 }
 0x3d2   :  { %v2153_v42 = vrot.slane %v2107_v3, 4 }
 0x3d3   :  { %v2154_v16 = vrot.slane %v2109_v11, 4 }
 0x3d4   :  { %v2157_v21 = vmul.f32 %v6647_v59, %v2153_v42  ;;  %v10649_v42 = vld [vmem:[#allocation38_spill] sm:$0xff]  ;;  %v10651_v59 = vld [vmem:[#allocation23_spill] sm:$0xff] }
 0x3d5   :  { %v2158_v37 = vmul.f32 %v6649_v61, %v2154_v16  ;;  %v10652_v16 = vld [vmem:[#allocation24_spill] sm:$0xff]  ;;  %v10653_v61 = vld [vmem:[#allocation25_spill] sm:$0xff] }
 0x3d6   :  { %v2159_v27 = vadd.f32 %v8859_v32, %v2157_v21  ;;  %v10654_v21 = vld [vmem:[#allocation26_spill] sm:$0xff] }
 0x3d7   :  { %v2160_v31 = vadd.f32 %v8861_v6, %v2158_v37  ;;  %v10655_v37 = vld [vmem:[#allocation27_spill] sm:$0xff] }
 0x3d8   :  { %6650 = vtanh.f32 %v2159_v27  ;;  %v10656_v27 = vld [vmem:[#allocation28_spill] sm:$0xff] }
 0x3d9   :  { %6652 = vtanh.f32 %v2160_v31  ;;  %v10657_v31 = vld [vmem:[#allocation29_spill] sm:$0xff] }
 0x3e2   :  { %v6651_v8 = vpop.eup %6650 }
 0x3e3   :  { %v6653_v39 = vpop.eup %6652  ;;  %v2165_v2 = vmul.f32 %v6651_v8, %v2163_v4  ;;  %v10658_v4 = vld [vmem:[#allocation30_spill] sm:$0xff]  ;;  %v10659_v8 = vld [vmem:[#allocation31_spill] sm:$0xff] }
 0x3e4   :  { %v2166_v50 = vmul.f32 %v6653_v39, %v2164_v45  ;;  %v10643_v39 = vld [vmem:[#allocation40_spill] sm:$0xff] }
 0x3e5   :  { %v9057_v10 = vadd.f32 %v2171_v46, %v2165_v2  ;;  %v10645_v46 = vld [vmem:[#allocation19_spill] sm:$0xff]  ;;  %v10660_v45 = vld [vmem:[#allocation32_spill] sm:$0xff]  ;;  %v10661_v2 = vld [vmem:[#allocation33_spill] sm:$0xff] }
 0x3e6   :  { %v9059_v3 = vadd.f32 %v2172_v53, %v2166_v50  ;;  %v10647_v53 = vld [vmem:[#allocation41_spill] sm:$0xff] }
 0x3e7   :  { %v2177_v11 = vrot.slane %v9057_v10, 4  ;;  %v10648_v50 = vld [vmem:[#allocation21_spill] sm:$0xff] }
 0x3e8   :  { %v2178_v12 = vrot.slane %v9059_v3, 4 }
 0x3ea   :  { %4911 = vmatprep.mubr.msk.f32.mxu1 %vm1229_vm10, %v2178_v12  ;;  %4914 = vmatprep.mubr.msk.f32.mxu0 %vm1229_vm10, %v2178_v12 }
 0x3eb   :  { %2247 = vmatmul.mubr.f32.vlgmr.msra.gmra.mrb[14].mxu1 %v2177_v11  ;;  %2318 = vmatmul.mubr.f32.vlgmr.msra.gmra.mrb[16].mxu0 %v2177_v11 }
 0x3ec   :  { %5800 = vmatpush1.bf16.msra.mxu1 %v8575_v15  ;;  %4917 = vmatprep.mubr.msk.f32.mxu1 %vm1229_vm10, %v2178_v12  ;;  %v10662_v12 = vld [vmem:[#allocation34_spill] sm:$0xff] }
 0x3ed   :  { %5802 = vmatprep.subr.bf16.mxu1 %v8578_v20  ;;  %5836 = vmatpush1.bf16.msra.mxu0 %v7987_v56 }
 0x3ee   :  { %5838 = vmatprep.subr.bf16.mxu0 %v8001_v58 }
 0x3f0   :  { %5804 = vmatpush1.bf16.msra.mxu1 %v8598_v44 }
 0x3f1   :  { %5806 = vmatprep.subr.bf16.mxu1 %v8602_v40  ;;  %5840 = vmatpush1.bf16.msra.mxu0 %v8028_v25 }
 0x3f2   :  { %5842 = vmatprep.subr.bf16.mxu0 %v8040_v23 }
 0x3f4   :  { %5808 = vmatpush1.bf16.msra.mxu1 %v8621_v36 }
 0x3f5   :  { %5810 = vmatprep.subr.bf16.mxu1 %v8625_v5  ;;  %5844 = vmatpush1.bf16.msra.mxu0 %v8063_v43 }
 0x3f6   :  { %5846 = vmatprep.subr.bf16.mxu0 %v8075_v63 }
 0x3f8   :  { %5812 = vmatpush1.bf16.msra.mxu1 %v8642_v14 }
 0x3f9   :  { %5814 = vmatprep.subr.bf16.mxu1 %v8646_v38  ;;  %5848 = vmatpush1.bf16.msra.mxu0 %v8095_v29 }
 0x3fa   :  { %5850 = vmatprep.subr.bf16.mxu0 %v8107_v7 }
 0x3fc   :  { %5816 = vmatpush1.bf16.msra.mxu1 %v8662_v48 }
 0x3fd   :  { %5818 = vmatprep.subr.bf16.mxu1 %v8666_v41  ;;  %5852 = vmatpush1.bf16.msra.mxu0 %v8125_v19 }
 0x3fe   :  { %5854 = vmatprep.subr.bf16.mxu0 %v8137_v57 }
 0x400   :  { %5820 = vmatpush1.bf16.msra.mxu1 %v10585_v0 }
 0x401   :  { %5822 = vmatprep.subr.bf16.mxu1 %v10586_v18  ;;  %5856 = vmatpush1.bf16.msra.mxu0 %v8155_v47 }
 0x402   :  { %5858 = vmatprep.subr.bf16.mxu0 %v8167_v26 }
 0x404   :  { %5824 = vmatpush1.bf16.msra.mxu1 %v8702_v54 }
 0x405   :  { %5826 = vmatprep.subr.bf16.mxu1 %v8706_v34  ;;  %5860 = vmatpush1.bf16.msra.mxu0 %v8185_v52 }
 0x406   :  { %5862 = vmatprep.subr.bf16.mxu0 %v8197_v28 }
 0x408   :  { %5828 = vmatpush1.bf16.msra.mxu1 %v8722_v60 }
 0x409   :  { %5830 = vmatprep.subr.bf16.mxu1 %v8726_v1  ;;  %5864 = vmatpush1.bf16.msra.mxu0 %v8215_v55 }
 0x40a   :  { %5866 = vmatprep.subr.bf16.mxu0 %v8227_v30 }
 0x40c   :  { %5832 = vmatpush1.bf16.msra.mxu1 %v8736_v49 }
 0x40d   :  { %4915 = vmatprep.subr.msk.mxu1 %vm392_vm5, %v8743_v9  ;;  %5868 = vmatpush1.bf16.msra.mxu0 %v8239_v17  ;;  %v10650_v9 = vld [vmem:[#allocation22_spill] sm:$0xff] }
 0x40e   :  { %4922 = vmatprep.subr.msk.mxu0 %vm392_vm5, %v10643_v39 }
 0x410   :  { %4916 = vmatpush1.msk.msra.mxu1 %vm392_vm5, %v10644_v33  ;;  %v10664_v33 = vld [vmem:[#allocation36_spill] sm:$0xff] }
 0x411   :  { %2389 = vmatmul.mubr.f32.vlgmr.msra.gmra.mrb[16].mxu1 %v2177_v11  ;;  %5870 = vmatprep.subr.bf16.mxu1 %v10645_v46  ;;  %v10663_v11 = vld [vmem:[#allocation35_spill] sm:$0xff] }
 0x412   :  { %5872 = vmatpush1.bf16.msra.mxu1 %v10646_v13  ;;  %4923 = vmatpush1.msk.msra.mxu0 %vm392_vm5, %v10647_v53 }
 0x413   :  { %5874 = vmatprep.subr.bf16.mxu1 %v10648_v50  ;;  %5906 = vmatprep.subr.bf16.mxu0 %v10649_v42  ;;  %v10670_v50 = vld [vmem:[#allocation48_spill] sm:$0xff] }
 0x416   :  { %5876 = vmatpush1.bf16.msra.mxu1 %v10650_v9 }
 0x417   :  { %5878 = vmatprep.subr.bf16.mxu1 %v10651_v59 }
 0x41a   :  { %5880 = vmatpush1.bf16.msra.mxu1 %v10652_v16 }
 0x41b   :  { %5882 = vmatprep.subr.bf16.mxu1 %v10653_v61 }
 0x41e   :  { %5884 = vmatpush1.bf16.msra.mxu1 %v10654_v21 }
 0x41f   :  { %5886 = vmatprep.subr.bf16.mxu1 %v10655_v37 }
 0x422   :  { %5888 = vmatpush1.bf16.msra.mxu1 %v10656_v27  ;;  %v9130_v27 = vld [vmem:[%s10411_s3 + $0x258] sm:$0x3f] }
 0x423   :  { %5890 = vmatprep.subr.bf16.mxu1 %v10657_v31  ;;  %10665 = vst [vmem:[#allocation18_spill] sm:$0xff] %v9130_v27 }
 0x426   :  { %5892 = vmatpush1.bf16.msra.mxu1 %v10658_v4  ;;  %v10669_v4 = vld [vmem:[#allocation52_spill] sm:$0xff] }
 0x427   :  { %5894 = vmatprep.subr.bf16.mxu1 %v10659_v8 }
 0x42a   :  { %5896 = vmatpush1.bf16.msra.mxu1 %v10660_v45  ;;  %v9137_v45 = vld [vmem:[%s10411_s3 + $0x250] sm:$0x3f] }
 0x42b   :  { %5898 = vmatprep.subr.bf16.mxu1 %v10661_v2  ;;  %10666 = vst [vmem:[#allocation37_spill] sm:$0xff] %v9137_v45  ;;  %v10668_v2 = vld [vmem:[#allocation47_spill] sm:$0xff] }
 0x42e   :  { %5900 = vmatpush1.bf16.msra.mxu1 %v10662_v12  ;;  %v10667_v12 = vld [vmem:[#allocation16_spill] sm:$0xff] }
 0x42f   :  { %5902 = vmatprep.subr.bf16.mxu1 %v10663_v11 }
 0x432   :  { %5904 = vmatpush1.bf16.msra.mxu1 %v10664_v33 }
 0x433   :  { %4925 = vmatprep.subr.msk.mxu1 %vm392_vm5, %v9130_v27 }
 0x436   :  { %4926 = vmatpush1.msk.msra.mxu1 %vm392_vm5, %v9137_v45 }
 0x437   :  { %5942 = vmatprep.subr.bf16.mxu1 %v10667_v12 }
 0x4be   :  { %v2248_v11 = vpop.f32.mrb[14].mxu1  ;;  %v2319_v33 = vpop.f32.mrb[16].mxu0 }
 0x4bf   :  { %v2249_v8 = vadd.f32 %v2248_v11, %v10668_v2  ;;  %v2320_v31 = vadd.f32 %v2319_v33, %v10669_v4  ;;  %v2250_v37 = vpop.f32.mrb[15].mxu1  ;;  %v2321_v21 = vpop.f32.mrb[17].mxu0  ;;  %v10671_v11 = vld [vmem:[#allocation49_spill] sm:$0xff] }
 0x4c0   :  { %v2251_v27 = vadd.f32 %v2250_v37, %v8812_v35  ;;  %v2322_v61 = vadd.f32 %v2321_v21, %v8838_v22 }
 0x4c1   :  { %v2397_v16 = vrot.slane %v2249_v8, 2  ;;  %v2417_v59 = vrot.slane %v2320_v31, 2 }
 0x4c2   :  { %v2398_v9 = vrot.slane %v2251_v27, 2  ;;  %v2418_v42 = vrot.slane %v2322_v61, 2 }
 0x4c3   :  { %v2421_v45 = vadd.f32 %v8842_v51, %v2417_v59  ;;  %v2401_v53 = vadd.f32 %v10670_v50, %v2397_v16  ;;  %v2451_v59 = vrot.slane %v9057_v10, 6 }
 0x4c4   :  { %v2422_v12 = vadd.f32 %v8844_v24, %v2418_v42  ;;  %v2402_v2 = vadd.f32 %v10671_v11, %v2398_v9 }
 0x4c5   :  { %v4920_v13 = vmul.f32 -1.442695, %v2421_v45  ;;  %v4918_v4 = vmul.f32 -1.442695, %v2401_v53 }
 0x4c6   :  { %v4921_v33 = vmul.f32 -1.442695, %v2422_v12  ;;  %v4919_v46 = vmul.f32 -1.442695, %v2402_v2 }
 0x4c7   :  { %6654 = vpow2.f32 %v4920_v13  ;;  %v2452_v13 = vrot.slane %v9059_v3, 6 }
 0x4c8   :  { %6656 = vpow2.f32 %v4921_v33 }
 0x4c9   :  { %6658 = vpow2.f32 %v4918_v4  ;;  %v10672_v4 = vld [vmem:[#allocation53_spill] sm:$0xff] }
 0x4ca   :  { %6660 = vpow2.f32 %v4919_v46 }
 0x4d1   :  { %v6655_v21 = vpop.eup %6654 }
 0x4d2   :  { %v2429_v37 = vadd.f32 1.0, %v6655_v21  ;;  %v6657_v27 = vpop.eup %6656 }
 0x4d3   :  { %v2430_v61 = vadd.f32 1.0, %v6657_v27  ;;  %v6659_v51 = vpop.eup %6658 }
 0x4d4   :  { %6662 = vrcp.f32 %v2429_v37  ;;  %v6661_v24 = vpop.eup %6660  ;;  %v2409_v42 = vadd.f32 1.0, %v6659_v51 }
 0x4d5   :  { %6664 = vrcp.f32 %v2430_v61  ;;  %v2410_v50 = vadd.f32 1.0, %v6661_v24 }
 0x4d6   :  { %6666 = vrcp.f32 %v2409_v42 }
 0x4d7   :  { %6668 = vrcp.f32 %v2410_v50 }
 0x4de   :  { %v6663_v9 = vpop.eup %6662 }
 0x4df   :  { %v2455_v53 = vmul.f32 %v6663_v9, %v2451_v59  ;;  %v6665_v16 = vpop.eup %6664  ;;  %v2447_v3 = vsub.f32 1.0, %v6663_v9  ;;  %v10673_v9 = vld [vmem:[#allocation19_spill] sm:$0xff] }
 0x4e0   :  { %v2456_v46 = vmul.f32 %v6665_v16, %v2452_v13  ;;  %v6667_v11 = vpop.eup %6666  ;;  %v2448_v24 = vsub.f32 1.0, %v6665_v16  ;;  %v10675_v16 = vld [vmem:[#allocation41_spill] sm:$0xff] }
 0x4e1   :  { %v6669_v21 = vpop.eup %6668 }
 0x4e4   :  { %v2390_v31 = vpop.f32.mrb[16].mxu1 }
 0x4e5   :  { %v2391_v8 = vadd.f32 %v2390_v31, %v10672_v4  ;;  %v2392_v45 = vpop.f32.mrb[17].mxu1 }
 0x4e6   :  { %v2393_v2 = vadd.f32 %v2392_v45, %v10612_v62 }
 0x4e7   :  { %v2437_v12 = vrot.slane %v2391_v8, 2 }
 0x4e8   :  { %v2438_v33 = vrot.slane %v2393_v2, 2  ;;  %v10677_v2 = vld [vmem:[#allocation38_spill] sm:$0xff] }
 0x4e9   :  { %v2441_v37 = vmul.f32 %v6667_v11, %v2437_v12  ;;  %v10678_v12 = vld [vmem:[#allocation22_spill] sm:$0xff]  ;;  %v10679_v11 = vld [vmem:[#allocation23_spill] sm:$0xff] }
 0x4ea   :  { %v2442_v10 = vmul.f32 %v6669_v21, %v2438_v33  ;;  %v10680_v33 = vld [vmem:[#allocation24_spill] sm:$0xff]  ;;  %v10681_v21 = vld [vmem:[#allocation25_spill] sm:$0xff] }
 0x4eb   :  { %v2443_v27 = vadd.f32 %v8859_v32, %v2441_v37  ;;  %v9204_v32 = vld [vmem:[%s10411_s3 + $0x388] sm:$0x3f]  ;;  %v10682_v37 = vld [vmem:[#allocation26_spill] sm:$0xff] }
 0x4ec   :  { %v2444_v61 = vadd.f32 %v8861_v6, %v2442_v10  ;;  %v9214_v6 = vld [vmem:[%s10411_s3 + $0x380] sm:$0x3f] }
 0x4ed   :  { %6670 = vtanh.f32 %v2443_v27  ;;  %v10683_v10 = vld [vmem:[#allocation27_spill] sm:$0xff]  ;;  %v10684_v27 = vld [vmem:[#allocation28_spill] sm:$0xff] }
 0x4ee   :  { %6672 = vtanh.f32 %v2444_v61  ;;  %v10685_v61 = vld [vmem:[#allocation29_spill] sm:$0xff] }
 0x4f7   :  { %v6671_v51 = vpop.eup %6670 }
 0x4f8   :  { %v6673_v42 = vpop.eup %6672  ;;  %v2449_v50 = vmul.f32 %v6671_v51, %v2447_v3  ;;  %v10686_v3 = vld [vmem:[#allocation30_spill] sm:$0xff]  ;;  %v10687_v51 = vld [vmem:[#allocation31_spill] sm:$0xff] }
 0x4f9   :  { %v2450_v59 = vmul.f32 %v6673_v42, %v2448_v24  ;;  %v10688_v24 = vld [vmem:[#allocation32_spill] sm:$0xff]  ;;  %v10689_v42 = vld [vmem:[#allocation33_spill] sm:$0xff] }
 0x4fa   :  { %v2457_v13 = vadd.f32 %v2455_v53, %v2449_v50  ;;  %v10674_v53 = vld [vmem:[#allocation20_spill] sm:$0xff]  ;;  %v10690_v50 = vld [vmem:[#allocation34_spill] sm:$0xff] }
 0x4fb   :  { %v2458_v31 = vadd.f32 %v2456_v46, %v2450_v59  ;;  %v10676_v46 = vld [vmem:[#allocation21_spill] sm:$0xff]  ;;  %v10691_v59 = vld [vmem:[#allocation35_spill] sm:$0xff] }
 0x4fc   :  { %v9158_v45 = vrot.slane %v2457_v13, 6  ;;  %v10692_v13 = vld [vmem:[#allocation36_spill] sm:$0xff] }
 0x4fd   :  { %v9156_v8 = vrot.slane %v2458_v31, 6  ;;  %v10693_v31 = vld [vmem:[#allocation18_spill] sm:$0xff] }
 0x4ff   :  { %4924 = vmatprep.mubr.msk.f32.mxu0 %vm1229_vm10, %v9156_v8  ;;  %4927 = vmatprep.mubr.msk.f32.mxu1 %vm1229_vm10, %v9156_v8 }
 0x500   :  { %2531 = vmatmul.mubr.f32.vlgmr.msra.gmra.mrb[18].mxu0 %v9158_v45  ;;  %2602 = vmatmul.mubr.f32.vlgmr.msra.gmra.mrb[18].mxu1 %v9158_v45 }
 0x501   :  { %5908 = vmatpush1.bf16.msra.mxu0 %v8575_v15  ;;  %4930 = vmatprep.mubr.msk.f32.mxu0 %vm1229_vm10, %v9156_v8 }
 0x502   :  { %5910 = vmatprep.subr.bf16.mxu0 %v8578_v20  ;;  %5944 = vmatpush1.bf16.msra.mxu1 %v7987_v56 }
 0x503   :  { %5946 = vmatprep.subr.bf16.mxu1 %v8001_v58 }
 0x505   :  { %5912 = vmatpush1.bf16.msra.mxu0 %v8598_v44 }
 0x506   :  { %5914 = vmatprep.subr.bf16.mxu0 %v8602_v40  ;;  %5948 = vmatpush1.bf16.msra.mxu1 %v8028_v25 }
 0x507   :  { %5950 = vmatprep.subr.bf16.mxu1 %v8040_v23 }
 0x509   :  { %5916 = vmatpush1.bf16.msra.mxu0 %v8621_v36 }
 0x50a   :  { %5918 = vmatprep.subr.bf16.mxu0 %v8625_v5  ;;  %5952 = vmatpush1.bf16.msra.mxu1 %v8063_v43 }
 0x50b   :  { %5954 = vmatprep.subr.bf16.mxu1 %v8075_v63 }
 0x50d   :  { %5920 = vmatpush1.bf16.msra.mxu0 %v8642_v14 }
 0x50e   :  { %5922 = vmatprep.subr.bf16.mxu0 %v8646_v38  ;;  %5956 = vmatpush1.bf16.msra.mxu1 %v8095_v29 }
 0x50f   :  { %5958 = vmatprep.subr.bf16.mxu1 %v8107_v7 }
 0x511   :  { %5924 = vmatpush1.bf16.msra.mxu0 %v8662_v48 }
 0x512   :  { %5926 = vmatprep.subr.bf16.mxu0 %v8666_v41  ;;  %5960 = vmatpush1.bf16.msra.mxu1 %v8125_v19 }
 0x513   :  { %5962 = vmatprep.subr.bf16.mxu1 %v8137_v57 }
 0x515   :  { %5928 = vmatpush1.bf16.msra.mxu0 %v10585_v0 }
 0x516   :  { %5930 = vmatprep.subr.bf16.mxu0 %v10586_v18  ;;  %5964 = vmatpush1.bf16.msra.mxu1 %v8155_v47 }
 0x517   :  { %5966 = vmatprep.subr.bf16.mxu1 %v8167_v26 }
 0x519   :  { %5932 = vmatpush1.bf16.msra.mxu0 %v8702_v54 }
 0x51a   :  { %5934 = vmatprep.subr.bf16.mxu0 %v8706_v34  ;;  %5968 = vmatpush1.bf16.msra.mxu1 %v8185_v52 }
 0x51b   :  { %5970 = vmatprep.subr.bf16.mxu1 %v8197_v28 }
 0x51d   :  { %5936 = vmatpush1.bf16.msra.mxu0 %v8722_v60 }
 0x51e   :  { %5938 = vmatprep.subr.bf16.mxu0 %v8726_v1  ;;  %5972 = vmatpush1.bf16.msra.mxu1 %v8215_v55 }
 0x51f   :  { %5974 = vmatprep.subr.bf16.mxu1 %v8227_v30 }
 0x521   :  { %5940 = vmatpush1.bf16.msra.mxu0 %v8736_v49 }
 0x522   :  { %4928 = vmatprep.subr.msk.mxu0 %vm392_vm5, %v9204_v32  ;;  %5976 = vmatpush1.bf16.msra.mxu1 %v8239_v17 }
 0x523   :  { %4935 = vmatprep.subr.msk.mxu1 %vm392_vm5, %v10643_v39 }
 0x525   :  { %4929 = vmatpush1.msk.msra.mxu0 %vm392_vm5, %v9214_v6 }
 0x526   :  { %2673 = vmatmul.mubr.f32.vlgmr.msra.gmra.mrb[20].mxu0 %v9158_v45  ;;  %5978 = vmatprep.subr.bf16.mxu0 %v10673_v9 }
 0x527   :  { %5980 = vmatpush1.bf16.msra.mxu0 %v10674_v53  ;;  %4936 = vmatpush1.msk.msra.mxu1 %vm392_vm5, %v10675_v16  ;;  %v10701_v16 = vld [vmem:[#allocation46_spill] sm:$0xff] }
 0x528   :  { %5982 = vmatprep.subr.bf16.mxu0 %v10676_v46  ;;  %6014 = vmatprep.subr.bf16.mxu1 %v10677_v2 }
 0x52b   :  { %5984 = vmatpush1.bf16.msra.mxu0 %v10678_v12 }
 0x52c   :  { %5986 = vmatprep.subr.bf16.mxu0 %v10679_v11 }
 0x52f   :  { %5988 = vmatpush1.bf16.msra.mxu0 %v10680_v33  ;;  %v10698_v33 = vld [vmem:[#allocation44_spill] sm:$0xff] }
 0x530   :  { %5990 = vmatprep.subr.bf16.mxu0 %v10681_v21  ;;  %v10697_v21 = vld [vmem:[#allocation43_spill] sm:$0xff] }
 0x533   :  { %5992 = vmatpush1.bf16.msra.mxu0 %v10682_v37 }
 0x534   :  { %5994 = vmatprep.subr.bf16.mxu0 %v10683_v10  ;;  %v10696_v10 = vld [vmem:[#allocation47_spill] sm:$0xff] }
 0x537   :  { %5996 = vmatpush1.bf16.msra.mxu0 %v10684_v27  ;;  %v10694_v27 = vld [vmem:[#allocation37_spill] sm:$0xff] }
 0x538   :  { %5998 = vmatprep.subr.bf16.mxu0 %v10685_v61  ;;  %v10695_v61 = vld [vmem:[#allocation16_spill] sm:$0xff] }
 0x53b   :  { %6000 = vmatpush1.bf16.msra.mxu0 %v10686_v3 }
 0x53c   :  { %6002 = vmatprep.subr.bf16.mxu0 %v10687_v51 }
 0x53f   :  { %6004 = vmatpush1.bf16.msra.mxu0 %v10688_v24 }
 0x540   :  { %6006 = vmatprep.subr.bf16.mxu0 %v10689_v42 }
 0x543   :  { %6008 = vmatpush1.bf16.msra.mxu0 %v10690_v50 }
 0x544   :  { %6010 = vmatprep.subr.bf16.mxu0 %v10691_v59 }
 0x547   :  { %6012 = vmatpush1.bf16.msra.mxu0 %v10692_v13 }
 0x548   :  { %4938 = vmatprep.subr.msk.mxu0 %vm392_vm5, %v10693_v31  ;;  %v10699_v31 = vld [vmem:[#allocation52_spill] sm:$0xff] }
 0x54b   :  { %4939 = vmatpush1.msk.msra.mxu0 %vm392_vm5, %v10694_v27 }
 0x54c   :  { %6050 = vmatprep.subr.bf16.mxu0 %v10695_v61  ;;  %v10700_v61 = vld [vmem:[#allocation45_spill] sm:$0xff] }
 0x5d3   :  { %v2532_v3 = vpop.f32.mrb[18].mxu0  ;;  %v2603_v51 = vpop.f32.mrb[18].mxu1 }
 0x5d4   :  { %v2533_v24 = vadd.f32 %v2532_v3, %v10696_v10  ;;  %v2534_v37 = vpop.f32.mrb[19].mxu0  ;;  %v2605_v42 = vpop.f32.mrb[19].mxu1  ;;  %v2604_v2 = vadd.f32 %v2603_v51, %v10699_v31 }
 0x5d5   :  { %v2535_v50 = vadd.f32 %v2534_v37, %v8812_v35  ;;  %v2606_v27 = vadd.f32 %v2605_v42, %v8838_v22 }
 0x5d6   :  { %v2679_v59 = vadd.f32 %v10697_v21, %v2533_v24  ;;  %v2693_v46 = vadd.f32 %v10700_v61, %v2604_v2 }
 0x5d7   :  { %v2680_v13 = vadd.f32 %v10698_v33, %v2535_v50  ;;  %v2694_v3 = vadd.f32 %v10701_v16, %v2606_v27 }
 0x5d8   :  { %v4931_v11 = vmul.f32 -1.442695, %v2679_v59  ;;  %v4933_v10 = vmul.f32 -1.442695, %v2693_v46 }
 0x5d9   :  { %v4932_v12 = vmul.f32 -1.442695, %v2680_v13  ;;  %v4934_v53 = vmul.f32 -1.442695, %v2694_v3 }
 0x5da   :  { %6674 = vpow2.f32 %v4931_v11 }
 0x5db   :  { %6676 = vpow2.f32 %v4932_v12 }
 0x5dc   :  { %6678 = vpow2.f32 %v4933_v10 }
 0x5dd   :  { %6680 = vpow2.f32 %v4934_v53 }
 0x5e4   :  { %v6675_v9 = vpop.eup %6674 }
 0x5e5   :  { %v6677_v37 = vpop.eup %6676  ;;  %v2687_v24 = vadd.f32 1.0, %v6675_v9  ;;  %v10702_v9 = vld [vmem:[#allocation50_spill] sm:$0xff] }
 0x5e6   :  { %v2688_v50 = vadd.f32 1.0, %v6677_v37  ;;  %v6679_v59 = vpop.eup %6678  ;;  %v10703_v37 = vld [vmem:[#allocation51_spill] sm:$0xff] }
 0x5e7   :  { %6682 = vrcp.f32 %v2687_v24  ;;  %v6681_v51 = vpop.eup %6680  ;;  %v2701_v11 = vadd.f32 1.0, %v6679_v59 }
 0x5e8   :  { %6684 = vrcp.f32 %v2688_v50  ;;  %v2702_v13 = vadd.f32 1.0, %v6681_v51 }
 0x5e9   :  { %6686 = vrcp.f32 %v2701_v11 }
 0x5ea   :  { %6688 = vrcp.f32 %v2702_v13 }
 0x5f1   :  { %v6683_v33 = vpop.eup %6682 }
 0x5f2   :  { %v6685_v27 = vpop.eup %6684 }
 0x5f3   :  { %v6687_v50 = vpop.eup %6686 }
 0x5f4   :  { %v6689_v59 = vpop.eup %6688  ;;  %v2713_v51 = vsub.f32 1.0, %v6687_v50 }
 0x5f9   :  { %v2674_v42 = vpop.f32.mrb[20].mxu0 }
 0x5fa   :  { %v2675_v12 = vadd.f32 %v2674_v42, %v10672_v4  ;;  %v2676_v2 = vpop.f32.mrb[21].mxu0  ;;  %v2714_v42 = vsub.f32 1.0, %v6689_v59 }
 0x5fb   :  { %v2677_v46 = vadd.f32 %v2676_v2, %v10612_v62  ;;  %v2718_v2 = vmul.f32 %v6687_v50, %v9158_v45  ;;  %v10707_v45 = vld [vmem:[#allocation21_spill] sm:$0xff]  ;;  %v10718_v50 = vld [vmem:[#allocation31_spill] sm:$0xff] }
 0x5fc   :  { %v2707_v3 = vmul.f32 %v6683_v33, %v2675_v12  ;;  %v2719_v33 = vmul.f32 %v6689_v59, %v9156_v8  ;;  %v10706_v8 = vld [vmem:[#allocation41_spill] sm:$0xff]  ;;  %v10710_v12 = vld [vmem:[#allocation23_spill] sm:$0xff]  ;;  %v10719_v59 = vld [vmem:[#allocation32_spill] sm:$0xff] }
 0x5fd   :  { %v2708_v53 = vmul.f32 %v6685_v27, %v2677_v46  ;;  %v10712_v46 = vld [vmem:[#allocation25_spill] sm:$0xff]  ;;  %v10713_v27 = vld [vmem:[#allocation26_spill] sm:$0xff] }
 0x5fe   :  { %v2709_v10 = vadd.f32 %v10702_v9, %v2707_v3  ;;  %v10714_v3 = vld [vmem:[#allocation27_spill] sm:$0xff] }
 0x5ff   :  { %v2710_v24 = vadd.f32 %v10703_v37, %v2708_v53  ;;  %v10715_v53 = vld [vmem:[#allocation28_spill] sm:$0xff] }
 0x600   :  { %6690 = vtanh.f32 %v2709_v10  ;;  %v10716_v10 = vld [vmem:[#allocation29_spill] sm:$0xff] }
 0x601   :  { %6692 = vtanh.f32 %v2710_v24  ;;  %v10717_v24 = vld [vmem:[#allocation30_spill] sm:$0xff] }
 0x60a   :  { %v6691_v21 = vpop.eup %6690 }
 0x60b   :  { %v6693_v4 = vpop.eup %6692  ;;  %v2715_v16 = vmul.f32 %v6691_v21, %v2713_v51  ;;  %v10709_v21 = vld [vmem:[#allocation22_spill] sm:$0xff]  ;;  %v10720_v51 = vld [vmem:[#allocation33_spill] sm:$0xff] }
 0x60c   :  { %v2716_v62 = vmul.f32 %v6693_v4, %v2714_v42  ;;  %v10705_v4 = vld [vmem:[#allocation20_spill] sm:$0xff]  ;;  %v10721_v42 = vld [vmem:[#allocation34_spill] sm:$0xff] }
 0x60d   :  { %v9259_v11 = vadd.f32 %v2718_v2, %v2715_v16  ;;  %v10708_v16 = vld [vmem:[#allocation38_spill] sm:$0xff]  ;;  %v10722_v2 = vld [vmem:[#allocation35_spill] sm:$0xff] }
 0x60e   :  { %v9261_v13 = vadd.f32 %v2719_v33, %v2716_v62  ;;  %v10704_v62 = vld [vmem:[#allocation19_spill] sm:$0xff]  ;;  %v10723_v33 = vld [vmem:[#allocation36_spill] sm:$0xff] }
 0x610   :  { %4937 = vmatprep.mubr.msk.f32.mxu1 %vm1229_vm10, %v9261_v13  ;;  %4940 = vmatprep.mubr.msk.f32.mxu0 %vm1229_vm10, %v9261_v13 }
 0x611   :  { %2790 = vmatmul.mubr.f32.vlgmr.msra.gmra.mrb[20].mxu1 %v9259_v11  ;;  %2861 = vmatmul.mubr.f32.vlgmr.msra.gmra.mrb[22].mxu0 %v9259_v11 }
 0x612   :  { %6016 = vmatpush1.bf16.msra.mxu1 %v8575_v15  ;;  %4943 = vmatprep.mubr.msk.f32.mxu1 %vm1229_vm10, %v9261_v13 }
 0x613   :  { %6018 = vmatprep.subr.bf16.mxu1 %v8578_v20  ;;  %6052 = vmatpush1.bf16.msra.mxu0 %v7987_v56 }
 0x614   :  { %6054 = vmatprep.subr.bf16.mxu0 %v8001_v58 }
 0x616   :  { %6020 = vmatpush1.bf16.msra.mxu1 %v8598_v44 }
 0x617   :  { %6022 = vmatprep.subr.bf16.mxu1 %v8602_v40  ;;  %6056 = vmatpush1.bf16.msra.mxu0 %v8028_v25 }
 0x618   :  { %6058 = vmatprep.subr.bf16.mxu0 %v8040_v23 }
 0x61a   :  { %6024 = vmatpush1.bf16.msra.mxu1 %v8621_v36 }
 0x61b   :  { %6026 = vmatprep.subr.bf16.mxu1 %v8625_v5  ;;  %6060 = vmatpush1.bf16.msra.mxu0 %v8063_v43 }
 0x61c   :  { %6062 = vmatprep.subr.bf16.mxu0 %v8075_v63 }
 0x61e   :  { %6028 = vmatpush1.bf16.msra.mxu1 %v8642_v14 }
 0x61f   :  { %6030 = vmatprep.subr.bf16.mxu1 %v8646_v38  ;;  %6064 = vmatpush1.bf16.msra.mxu0 %v8095_v29 }
 0x620   :  { %6066 = vmatprep.subr.bf16.mxu0 %v8107_v7 }
 0x622   :  { %6032 = vmatpush1.bf16.msra.mxu1 %v8662_v48 }
 0x623   :  { %6034 = vmatprep.subr.bf16.mxu1 %v8666_v41  ;;  %6068 = vmatpush1.bf16.msra.mxu0 %v8125_v19 }
 0x624   :  { %6070 = vmatprep.subr.bf16.mxu0 %v8137_v57 }
 0x626   :  { %6036 = vmatpush1.bf16.msra.mxu1 %v10585_v0 }
 0x627   :  { %6038 = vmatprep.subr.bf16.mxu1 %v10586_v18  ;;  %6072 = vmatpush1.bf16.msra.mxu0 %v8155_v47 }
 0x628   :  { %6074 = vmatprep.subr.bf16.mxu0 %v8167_v26 }
 0x62a   :  { %6040 = vmatpush1.bf16.msra.mxu1 %v8702_v54 }
 0x62b   :  { %6042 = vmatprep.subr.bf16.mxu1 %v8706_v34  ;;  %6076 = vmatpush1.bf16.msra.mxu0 %v8185_v52 }
 0x62c   :  { %6078 = vmatprep.subr.bf16.mxu0 %v8197_v28 }
 0x62e   :  { %6044 = vmatpush1.bf16.msra.mxu1 %v8722_v60 }
 0x62f   :  { %6046 = vmatprep.subr.bf16.mxu1 %v8726_v1  ;;  %6080 = vmatpush1.bf16.msra.mxu0 %v8215_v55 }
 0x630   :  { %6082 = vmatprep.subr.bf16.mxu0 %v8227_v30 }
 0x632   :  { %6048 = vmatpush1.bf16.msra.mxu1 %v8736_v49 }
 0x633   :  { %4941 = vmatprep.subr.msk.mxu1 %vm392_vm5, %v9204_v32  ;;  %6084 = vmatpush1.bf16.msra.mxu0 %v8239_v17 }
 0x634   :  { %4948 = vmatprep.subr.msk.mxu0 %vm392_vm5, %v10643_v39  ;;  %v10711_v39 = vld [vmem:[#allocation24_spill] sm:$0xff] }
 0x636   :  { %4942 = vmatpush1.msk.msra.mxu1 %vm392_vm5, %v9214_v6 }
 0x637   :  { %2932 = vmatmul.mubr.f32.vlgmr.msra.gmra.mrb[22].mxu1 %v9259_v11  ;;  %6086 = vmatprep.subr.bf16.mxu1 %v10704_v62 }
 0x638   :  { %6088 = vmatpush1.bf16.msra.mxu1 %v10705_v4  ;;  %4949 = vmatpush1.msk.msra.mxu0 %vm392_vm5, %v10706_v8  ;;  %v10724_v8 = vld [vmem:[#allocation18_spill] sm:$0xff] }
 0x639   :  { %6090 = vmatprep.subr.bf16.mxu1 %v10707_v45  ;;  %6122 = vmatprep.subr.bf16.mxu0 %v10708_v16  ;;  %v10729_v16 = vld [vmem:[#allocation43_spill] sm:$0xff] }
 0x63c   :  { %6092 = vmatpush1.bf16.msra.mxu1 %v10709_v21  ;;  %v10728_v21 = vld [vmem:[#allocation46_spill] sm:$0xff] }
 0x63d   :  { %6094 = vmatprep.subr.bf16.mxu1 %v10710_v12 }
 0x640   :  { %6096 = vmatpush1.bf16.msra.mxu1 %v10711_v39 }
 0x641   :  { %6098 = vmatprep.subr.bf16.mxu1 %v10712_v46 }
 0x644   :  { %6100 = vmatpush1.bf16.msra.mxu1 %v10713_v27 }
 0x645   :  { %6102 = vmatprep.subr.bf16.mxu1 %v10714_v3  ;;  %v10727_v3 = vld [vmem:[#allocation47_spill] sm:$0xff] }
 0x648   :  { %6104 = vmatpush1.bf16.msra.mxu1 %v10715_v53  ;;  %v10725_v53 = vld [vmem:[#allocation37_spill] sm:$0xff] }
 0x649   :  { %6106 = vmatprep.subr.bf16.mxu1 %v10716_v10  ;;  %v10726_v10 = vld [vmem:[#allocation16_spill] sm:$0xff] }
 0x64c   :  { %6108 = vmatpush1.bf16.msra.mxu1 %v10717_v24 }
 0x64d   :  { %6110 = vmatprep.subr.bf16.mxu1 %v10718_v50 }
 0x650   :  { %6112 = vmatpush1.bf16.msra.mxu1 %v10719_v59 }
 0x651   :  { %6114 = vmatprep.subr.bf16.mxu1 %v10720_v51 }
 0x654   :  { %6116 = vmatpush1.bf16.msra.mxu1 %v10721_v42 }
 0x655   :  { %6118 = vmatprep.subr.bf16.mxu1 %v10722_v2 }
 0x658   :  { %6120 = vmatpush1.bf16.msra.mxu1 %v10723_v33 }
 0x659   :  { %4951 = vmatprep.subr.msk.mxu1 %vm392_vm5, %v10724_v8 }
 0x65c   :  { %4952 = vmatpush1.msk.msra.mxu1 %vm392_vm5, %v10725_v53 }
 0x65d   :  { %6158 = vmatprep.subr.bf16.mxu1 %v10726_v10 }
 0x6e4   :  { %v2791_v24 = vpop.f32.mrb[20].mxu1  ;;  %v2862_v50 = vpop.f32.mrb[22].mxu0 }
 0x6e5   :  { %v2792_v59 = vadd.f32 %v2791_v24, %v10727_v3  ;;  %v2863_v51 = vadd.f32 %v2862_v50, %v10699_v31  ;;  %v2793_v27 = vpop.f32.mrb[21].mxu1  ;;  %v2864_v42 = vpop.f32.mrb[23].mxu0  ;;  %v10730_v24 = vld [vmem:[#allocation44_spill] sm:$0xff] }
 0x6e6   :  { %v2794_v2 = vadd.f32 %v2793_v27, %v8812_v35  ;;  %v2865_v33 = vadd.f32 %v2864_v42, %v8838_v22 }
 0x6e7   :  { %v2940_v46 = vrot.slane %v2792_v59, 6  ;;  %v2960_v39 = vrot.slane %v2863_v51, 6 }
 0x6e8   :  { %v2941_v8 = vrot.slane %v2794_v2, 6  ;;  %v2961_v12 = vrot.slane %v2865_v33, 6 }
 0x6e9   :  { %v2964_v53 = vadd.f32 %v10700_v61, %v2960_v39  ;;  %v2944_v45 = vadd.f32 %v10729_v16, %v2940_v46 }
 0x6ea   :  { %v2965_v10 = vadd.f32 %v10728_v21, %v2961_v12  ;;  %v2945_v3 = vadd.f32 %v10730_v24, %v2941_v8  ;;  %v10731_v8 = vld [vmem:[#allocation53_spill] sm:$0xff] }
 0x6eb   :  { %v4946_v4 = vmul.f32 -1.442695, %v2964_v53  ;;  %v4944_v31 = vmul.f32 -1.442695, %v2944_v45  ;;  %v2995_v53 = vrot.slane %v9259_v11, 6 }
 0x6ec   :  { %v4947_v50 = vmul.f32 -1.442695, %v2965_v10  ;;  %v4945_v62 = vmul.f32 -1.442695, %v2945_v3 }
 0x6ed   :  { %6694 = vpow2.f32 %v4946_v4  ;;  %v2996_v4 = vrot.slane %v9261_v13, 6 }
 0x6ee   :  { %6696 = vpow2.f32 %v4947_v50 }
 0x6ef   :  { %6698 = vpow2.f32 %v4944_v31 }
 0x6f0   :  { %6700 = vpow2.f32 %v4945_v62 }
 0x6f7   :  { %v6695_v27 = vpop.eup %6694 }
 0x6f8   :  { %v2972_v59 = vadd.f32 1.0, %v6695_v27  ;;  %v6697_v51 = vpop.eup %6696  ;;  %v10732_v27 = vld [vmem:[#allocation54_spill] sm:$0xff] }
 0x6f9   :  { %v2973_v42 = vadd.f32 1.0, %v6697_v51  ;;  %v6699_v39 = vpop.eup %6698 }
 0x6fa   :  { %6702 = vrcp.f32 %v2972_v59  ;;  %v6701_v12 = vpop.eup %6700  ;;  %v2952_v2 = vadd.f32 1.0, %v6699_v39 }
 0x6fb   :  { %6704 = vrcp.f32 %v2973_v42  ;;  %v2953_v46 = vadd.f32 1.0, %v6701_v12 }
 0x6fc   :  { %6706 = vrcp.f32 %v2952_v2 }
 0x6fd   :  { %6708 = vrcp.f32 %v2953_v46 }
 0x704   :  { %v6703_v33 = vpop.eup %6702 }
 0x705   :  { %v2999_v45 = vmul.f32 %v6703_v33, %v2995_v53  ;;  %v6705_v31 = vpop.eup %6704  ;;  %v2990_v13 = vsub.f32 1.0, %v6703_v33  ;;  %v10750_v33 = vld [vmem:[#allocation35_spill] sm:$0xff] }
 0x706   :  { %v3000_v62 = vmul.f32 %v6705_v31, %v2996_v4  ;;  %v6707_v42 = vpop.eup %6706  ;;  %v2991_v4 = vsub.f32 1.0, %v6705_v31  ;;  %v10752_v31 = vld [vmem:[#allocation18_spill] sm:$0xff] }
 0x707   :  { %v6709_v12 = vpop.eup %6708 }
 0x70a   :  { %v2933_v3 = vpop.f32.mrb[22].mxu1 }
 0x70b   :  { %v2934_v10 = vadd.f32 %v2933_v3, %v10731_v8  ;;  %v2935_v50 = vpop.f32.mrb[23].mxu1 }
 0x70c   :  { %v2936_v59 = vadd.f32 %v2935_v50, %v10732_v27 }
 0x70d   :  { %v2980_v51 = vrot.slane %v2934_v10, 6 }
 0x70e   :  { %v2981_v39 = vrot.slane %v2936_v59, 6 }
 0x70f   :  { %v2984_v2 = vmul.f32 %v6707_v42, %v2980_v51  ;;  %v3574_v51 = vld [vmem:[%s10414_s6 + $0x18] sm:$0xff] }
 0x710   :  { %v2985_v24 = vmul.f32 %v6709_v12, %v2981_v39 }
 0x711   :  { %v2986_v11 = vadd.f32 %v10702_v9, %v2984_v2  ;;  %v10754_v2 = vld [vmem:[#allocation47_spill] sm:$0xff] }
 0x712   :  { %v2987_v46 = vadd.f32 %v10703_v37, %v2985_v24  ;;  %v10749_v24 = vld [vmem:[#allocation34_spill] sm:$0xff] }
 0x713   :  { %6710 = vtanh.f32 %v2986_v11 }
 0x714   :  { %6712 = vtanh.f32 %v2987_v46  ;;  %v10755_v46 = vld [vmem:[#allocation52_spill] sm:$0xff] }
 0x71d   :  { %v6711_v53 = vpop.eup %6710 }
 0x71e   :  { %v6713_v16 = vpop.eup %6712  ;;  %v2992_v3 = vmul.f32 %v6711_v53, %v2990_v13 }
 0x71f   :  { %v2993_v8 = vmul.f32 %v6713_v16, %v2991_v4  ;;  %v10748_v16 = vld [vmem:[#allocation33_spill] sm:$0xff] }
 0x720   :  { %v9352_v21 = vadd.f32 %v2999_v45, %v2992_v3  ;;  %v10751_v45 = vld [vmem:[#allocation36_spill] sm:$0xff] }
 0x721   :  { %v9354_v10 = vadd.f32 %v3000_v62, %v2993_v8  ;;  %v10753_v62 = vld [vmem:[#allocation37_spill] sm:$0xff] }
 0x722   :  { %v3005_v59 = vrot.slane %v9352_v21, 2  ;;  %v3572_v8 = vld [vmem:[%s10414_s6 + $0x8] sm:$0xff] }
 0x723   :  { %v3006_v50 = vrot.slane %v9354_v10, 2  ;;  %v6265_v42 = vpack.c.bf16 %v3574_v51, %v3572_v8  ;;  %v3280_v51 = vrot.slane %v9354_v10, 6 }
 0x725   :  { %4950 = vmatprep.mubr.msk.f32.mxu0 %vm1229_vm10, %v3006_v50  ;;  %4953 = vmatprep.mubr.msk.f32.mxu1 %vm1229_vm10, %v3006_v50 }
 0x726   :  { %3075 = vmatmul.mubr.f32.vlgmr.msra.gmra.mrb[24].mxu0 %v3005_v59  ;;  %3146 = vmatmul.mubr.f32.vlgmr.msra.gmra.mrb[24].mxu1 %v3005_v59 }
 0x727   :  { %6124 = vmatpush1.bf16.msra.mxu0 %v8575_v15  ;;  %4956 = vmatprep.mubr.msk.f32.mxu0 %vm1229_vm10, %v3006_v50 }
 0x728   :  { %6126 = vmatprep.subr.bf16.mxu0 %v8578_v20  ;;  %6160 = vmatpush1.bf16.msra.mxu1 %v7987_v56  ;;  %v6780_v56 = vld [vmem:[%s10411_s3 + $0x128] sm:$0x3f] }
 0x729   :  { %6162 = vmatprep.subr.bf16.mxu1 %v8001_v58  ;;  %v10733_v58 = vld [vmem:[#allocation19_spill] sm:$0xff] }
 0x72b   :  { %6128 = vmatpush1.bf16.msra.mxu0 %v8598_v44 }
 0x72c   :  { %6130 = vmatprep.subr.bf16.mxu0 %v8602_v40  ;;  %6164 = vmatpush1.bf16.msra.mxu1 %v8028_v25  ;;  %v10734_v25 = vld [vmem:[#allocation20_spill] sm:$0xff] }
 0x72d   :  { %6166 = vmatprep.subr.bf16.mxu1 %v8040_v23  ;;  %v6781_v23 = vld [vmem:[%s10411_s3 + $0x120] sm:$0x3f] }
 0x72f   :  { %6132 = vmatpush1.bf16.msra.mxu0 %v8621_v36 }
 0x730   :  { %6134 = vmatprep.subr.bf16.mxu0 %v8625_v5  ;;  %6168 = vmatpush1.bf16.msra.mxu1 %v8063_v43  ;;  %v10735_v43 = vld [vmem:[#allocation21_spill] sm:$0xff] }
 0x731   :  { %6170 = vmatprep.subr.bf16.mxu1 %v8075_v63  ;;  %v10736_v63 = vld [vmem:[#allocation38_spill] sm:$0xff] }
 0x733   :  { %6136 = vmatpush1.bf16.msra.mxu0 %v8642_v14 }
 0x734   :  { %6138 = vmatprep.subr.bf16.mxu0 %v8646_v38  ;;  %6172 = vmatpush1.bf16.msra.mxu1 %v8095_v29  ;;  %v10737_v29 = vld [vmem:[#allocation22_spill] sm:$0xff] }
 0x735   :  { %6174 = vmatprep.subr.bf16.mxu1 %v8107_v7  ;;  %v10738_v7 = vld [vmem:[#allocation23_spill] sm:$0xff] }
 0x737   :  { %6140 = vmatpush1.bf16.msra.mxu0 %v8662_v48 }
 0x738   :  { %6142 = vmatprep.subr.bf16.mxu0 %v8666_v41  ;;  %6176 = vmatpush1.bf16.msra.mxu1 %v8125_v19  ;;  %v10739_v19 = vld [vmem:[#allocation24_spill] sm:$0xff] }
 0x739   :  { %6178 = vmatprep.subr.bf16.mxu1 %v8137_v57  ;;  %v10740_v57 = vld [vmem:[#allocation25_spill] sm:$0xff] }
 0x73b   :  { %6144 = vmatpush1.bf16.msra.mxu0 %v10585_v0 }
 0x73c   :  { %6146 = vmatprep.subr.bf16.mxu0 %v10586_v18  ;;  %6180 = vmatpush1.bf16.msra.mxu1 %v8155_v47  ;;  %v10741_v47 = vld [vmem:[#allocation26_spill] sm:$0xff] }
 0x73d   :  { %6182 = vmatprep.subr.bf16.mxu1 %v8167_v26  ;;  %v10742_v26 = vld [vmem:[#allocation27_spill] sm:$0xff] }
 0x73f   :  { %6148 = vmatpush1.bf16.msra.mxu0 %v8702_v54 }
 0x740   :  { %6150 = vmatprep.subr.bf16.mxu0 %v8706_v34  ;;  %6184 = vmatpush1.bf16.msra.mxu1 %v8185_v52  ;;  %v10743_v52 = vld [vmem:[#allocation28_spill] sm:$0xff] }
 0x741   :  { %6186 = vmatprep.subr.bf16.mxu1 %v8197_v28  ;;  %v10744_v28 = vld [vmem:[#allocation29_spill] sm:$0xff] }
 0x743   :  { %6152 = vmatpush1.bf16.msra.mxu0 %v8722_v60 }
 0x744   :  { %6154 = vmatprep.subr.bf16.mxu0 %v8726_v1  ;;  %6188 = vmatpush1.bf16.msra.mxu1 %v8215_v55  ;;  %v10745_v55 = vld [vmem:[#allocation30_spill] sm:$0xff] }
 0x745   :  { %6190 = vmatprep.subr.bf16.mxu1 %v8227_v30  ;;  %v10746_v30 = vld [vmem:[#allocation31_spill] sm:$0xff] }
 0x747   :  { %6156 = vmatpush1.bf16.msra.mxu0 %v8736_v49 }
 0x748   :  { %4954 = vmatprep.subr.msk.mxu0 %vm392_vm5, %v9204_v32  ;;  %6192 = vmatpush1.bf16.msra.mxu1 %v8239_v17  ;;  %v10747_v17 = vld [vmem:[#allocation32_spill] sm:$0xff] }
 0x749   :  { %4961 = vmatprep.subr.msk.mxu1 %vm392_vm5, %v6780_v56 }
 0x74b   :  { %4955 = vmatpush1.msk.msra.mxu0 %vm392_vm5, %v9214_v6 }
 0x74c   :  { %3217 = vmatmul.mubr.f32.vlgmr.msra.gmra.mrb[26].mxu0 %v3005_v59  ;;  %6194 = vmatprep.subr.bf16.mxu0 %v10733_v58 }
 0x74d   :  { %6196 = vmatpush1.bf16.msra.mxu0 %v10734_v25  ;;  %4962 = vmatpush1.msk.msra.mxu1 %vm392_vm5, %v6781_v23 }
 0x74e   :  { %6198 = vmatprep.subr.bf16.mxu0 %v10735_v43  ;;  %6230 = vmatprep.subr.bf16.mxu1 %v10736_v63  ;;  %v10756_v43 = vld [vmem:[#allocation46_spill] sm:$0xff] }
 0x751   :  { %6200 = vmatpush1.bf16.msra.mxu0 %v10737_v29  ;;  %v10757_v29 = vld [vmem:[#allocation43_spill] sm:$0xff] }
 0x752   :  { %6202 = vmatprep.subr.bf16.mxu0 %v10738_v7 }
 0x755   :  { %6204 = vmatpush1.bf16.msra.mxu0 %v10739_v19 }
 0x756   :  { %6206 = vmatprep.subr.bf16.mxu0 %v10740_v57  ;;  %v10758_v57 = vld [vmem:[#allocation44_spill] sm:$0xff] }
 0x759   :  { %6208 = vmatpush1.bf16.msra.mxu0 %v10741_v47 }
 0x75a   :  { %6210 = vmatprep.subr.bf16.mxu0 %v10742_v26 }
 0x75d   :  { %6212 = vmatpush1.bf16.msra.mxu0 %v10743_v52 }
 0x75e   :  { %6214 = vmatprep.subr.bf16.mxu0 %v10744_v28 }
 0x761   :  { %6216 = vmatpush1.bf16.msra.mxu0 %v10745_v55 }
 0x762   :  { %6218 = vmatprep.subr.bf16.mxu0 %v10746_v30 }
 0x765   :  { %6220 = vmatpush1.bf16.msra.mxu0 %v10747_v17 }
 0x766   :  { %6222 = vmatprep.subr.bf16.mxu0 %v10748_v16 }
 0x769   :  { %6224 = vmatpush1.bf16.msra.mxu0 %v10749_v24 }
 0x76a   :  { %6226 = vmatprep.subr.bf16.mxu0 %v10750_v33 }
 0x76d   :  { %6228 = vmatpush1.bf16.msra.mxu0 %v10751_v45 }
 0x76e   :  { %4964 = vmatprep.subr.msk.mxu0 %vm392_vm5, %v10752_v31 }
 0x771   :  { %4965 = vmatpush1.msk.msra.mxu0 %vm392_vm5, %v10753_v62  ;;  %v3279_v62 = vrot.slane %v9352_v21, 6 }
 0x772   :  { %6266 = vmatprep.subr.bf16.mxu0 %v6265_v42 }
 0x7f9   :  { %v3076_v39 = vpop.f32.mrb[24].mxu0  ;;  %v3147_v12 = vpop.f32.mrb[24].mxu1 }
 0x7fa   :  { %v3077_v11 = vadd.f32 %v3076_v39, %v10754_v2  ;;  %v3148_v13 = vadd.f32 %v3147_v12, %v10755_v46  ;;  %v3078_v53 = vpop.f32.mrb[25].mxu0  ;;  %v3149_v4 = vpop.f32.mrb[25].mxu1 }
 0x7fb   :  { %v3079_v3 = vadd.f32 %v3078_v53, %v8812_v35  ;;  %v3150_v50 = vadd.f32 %v3149_v4, %v8838_v22 }
 0x7fc   :  { %v3225_v59 = vrot.slane %v3077_v11, 4  ;;  %v3245_v56 = vrot.slane %v3148_v13, 4  ;;  %v10759_v13 = vld [vmem:[#allocation53_spill] sm:$0xff] }
 0x7fd   :  { %v3226_v58 = vrot.slane %v3079_v3, 4  ;;  %v3246_v25 = vrot.slane %v3150_v50, 4 }
 0x7fe   :  { %v3249_v23 = vadd.f32 %v10700_v61, %v3245_v56  ;;  %v3229_v7 = vadd.f32 %v10757_v29, %v3225_v59 }
 0x7ff   :  { %v3250_v63 = vadd.f32 %v10756_v43, %v3246_v25  ;;  %v3230_v47 = vadd.f32 %v10758_v57, %v3226_v58 }
 0x800   :  { %v4959_v19 = vmul.f32 -1.442695, %v3249_v23  ;;  %v4957_v52 = vmul.f32 -1.442695, %v3229_v7 }
 0x801   :  { %v4960_v26 = vmul.f32 -1.442695, %v3250_v63  ;;  %v4958_v28 = vmul.f32 -1.442695, %v3230_v47 }
 0x802   :  { %6714 = vpow2.f32 %v4959_v19 }
 0x803   :  { %6716 = vpow2.f32 %v4960_v26 }
 0x804   :  { %6718 = vpow2.f32 %v4957_v52 }
 0x805   :  { %6720 = vpow2.f32 %v4958_v28 }
 0x80c   :  { %v6715_v55 = vpop.eup %6714 }
 0x80d   :  { %v3257_v30 = vadd.f32 1.0, %v6715_v55  ;;  %v6717_v17 = vpop.eup %6716  ;;  %v3571_v55 = vld [vmem:[%s10414_s6] sm:$0xff] }
 0x80e   :  { %v3258_v16 = vadd.f32 1.0, %v6717_v17  ;;  %v6719_v24 = vpop.eup %6718 }
 0x80f   :  { %6722 = vrcp.f32 %v3257_v30  ;;  %v6721_v33 = vpop.eup %6720  ;;  %v3237_v45 = vadd.f32 1.0, %v6719_v24  ;;  %v3573_v30 = vld [vmem:[%s10414_s6 + $0x10] sm:$0xff]  ;;  %v3578_v24 = vld [vmem:[%s10414_s6 + $0x38] sm:$0xff] }
 0x810   :  { %6724 = vrcp.f32 %v3258_v16  ;;  %v3238_v31 = vadd.f32 1.0, %v6721_v33  ;;  %v3576_v16 = vld [vmem:[%s10414_s6 + $0x28] sm:$0xff] }
 0x811   :  { %6726 = vrcp.f32 %v3237_v45  ;;  %v6267_v45 = vpack.c.bf16 %v3573_v30, %v3571_v55  ;;  %v3596_v55 = vld [vmem:[%s10414_s6 + $0xc8] sm:$0xff] }
 0x812   :  { %6728 = vrcp.f32 %v3238_v31 }
 0x819   :  { %v6723_v8 = vpop.eup %6722 }
 0x81a   :  { %v3283_v42 = vmul.f32 %v6723_v8, %v3279_v62  ;;  %v6725_v39 = vpop.eup %6724  ;;  %v3275_v10 = vsub.f32 1.0, %v6723_v8  ;;  %v3575_v62 = vld [vmem:[%s10414_s6 + $0x20] sm:$0xff]  ;;  %v3577_v8 = vld [vmem:[%s10414_s6 + $0x30] sm:$0xff] }
 0x81b   :  { %v3284_v12 = vmul.f32 %v6725_v39, %v3280_v51  ;;  %v6727_v59 = vpop.eup %6726  ;;  %v3276_v19 = vsub.f32 1.0, %v6725_v39  ;;  %v6269_v51 = vpack.c.bf16 %v3578_v24, %v3576_v16  ;;  %v3582_v39 = vld [vmem:[%s10414_s6 + $0x58] sm:$0xff]  ;;  %v3595_v16 = vld [vmem:[%s10414_s6 + $0xc0] sm:$0xff]  ;;  %v3597_v24 = vld [vmem:[%s10414_s6 + $0xd0] sm:$0xff] }
 0x81c   :  { %v6729_v58 = vpop.eup %6728 }
 0x81f   :  { %v3218_v11 = vpop.f32.mrb[26].mxu0 }
 0x820   :  { %v3219_v53 = vadd.f32 %v3218_v11, %v10759_v13  ;;  %v3220_v4 = vpop.f32.mrb[27].mxu0  ;;  %v10761_v11 = vld [vmem:[#allocation10_spill] sm:$0xff] }
 0x821   :  { %v3221_v3 = vadd.f32 %v3220_v4, %v10732_v27  ;;  %v6271_v4 = vpack.c.bf16 %v3577_v8, %v3575_v62  ;;  %v3599_v62 = vld [vmem:[%s10414_s6 + $0xe0] sm:$0xff]  ;;  %v3601_v8 = vld [vmem:[%s10414_s6 + $0xf0] sm:$0xff] }
 0x822   :  { %v3265_v50 = vrot.slane %v3219_v53, 4 }
 0x823   :  { %v3266_v56 = vrot.slane %v3221_v3, 4 }
 0x824   :  { %v3269_v25 = vmul.f32 %v6727_v59, %v3265_v50  ;;  %v3579_v50 = vld [vmem:[%s10414_s6 + $0x40] sm:$0xff]  ;;  %v3581_v59 = vld [vmem:[%s10414_s6 + $0x50] sm:$0xff] }
 0x825   :  { %v3270_v21 = vmul.f32 %v6729_v58, %v3266_v56  ;;  %v3586_v56 = vld [vmem:[%s10414_s6 + $0x78] sm:$0xff] }
 0x826   :  { %v3271_v23 = vadd.f32 %v10702_v9, %v3269_v25  ;;  %v3583_v25 = vld [vmem:[%s10414_s6 + $0x60] sm:$0xff] }
 0x827   :  { %v3272_v63 = vadd.f32 %v10703_v37, %v3270_v21  ;;  %v3585_v21 = vld [vmem:[%s10414_s6 + $0x70] sm:$0xff] }
 0x828   :  { %6730 = vtanh.f32 %v3271_v23  ;;  %v3588_v23 = vld [vmem:[%s10414_s6 + $0x88] sm:$0xff] }
 0x829   :  { %6732 = vtanh.f32 %v3272_v63 }
 0x832   :  { %v6731_v7 = vpop.eup %6730 }
 0x833   :  { %v6733_v47 = vpop.eup %6732  ;;  %v3277_v26 = vmul.f32 %v6731_v7, %v3275_v10  ;;  %v3587_v10 = vld [vmem:[%s10414_s6 + $0x80] sm:$0xff]  ;;  %v3589_v7 = vld [vmem:[%s10414_s6 + $0x90] sm:$0xff] }
 0x834   :  { %v3278_v52 = vmul.f32 %v6733_v47, %v3276_v19  ;;  %v3592_v19 = vld [vmem:[%s10414_s6 + $0xa8] sm:$0xff] }
 0x835   :  { %v9450_v28 = vadd.f32 %v3283_v42, %v3277_v26  ;;  %v3580_v42 = vld [vmem:[%s10414_s6 + $0x48] sm:$0xff]  ;;  %v3591_v26 = vld [vmem:[%s10414_s6 + $0xa0] sm:$0xff] }
 0x836   :  { %v9458_v17 = vadd.f32 %v3284_v12, %v3278_v52  ;;  %v10760_v12 = vld [vmem:[#allocation12_spill] sm:$0xff]  ;;  %v6273_v3 = vpack.c.bf16 %v3582_v39, %v3580_v42  ;;  %v3593_v52 = vld [vmem:[%s10414_s6 + $0xb0] sm:$0xff] }
 0x837   :  { %v9468_v31 = vrot.slane %v9450_v28, 4  ;;  %v9489_v53 = vsel %vm372_vm0, %v10761_v11, %v10760_v12  ;;  %v3603_v39 = vld [vmem:[%s10414_s6 + $0x100] sm:$0xff]  ;;  %v3605_v12 = vld [vmem:[%s10414_s6 + $0x110] sm:$0xff]  ;;  %v3608_v11 = vld [vmem:[%s10414_s6 + $0x128] sm:$0xff] }
 0x838   :  { %v3290_v33 = vrot.slane %v9458_v17, 4 }
 0x83a   :  { %4963 = vmatprep.mubr.msk.f32.mxu1 %vm1229_vm10, %v3290_v33  ;;  %4966 = vmatprep.mubr.msk.f32.mxu0 %vm1229_vm10, %v3290_v33 }
 0x83b   :  { %3359 = vmatmul.mubr.f32.vlgmr.msra.gmra.mrb[26].mxu1 %v9468_v31  ;;  %3430 = vmatmul.mubr.f32.vlgmr.msra.gmra.mrb[28].mxu0 %v9468_v31 }
 0x83c   :  { %6232 = vmatpush1.bf16.msra.mxu1 %v8575_v15  ;;  %6268 = vmatpush1.bf16.msra.mxu0 %v6267_v45  ;;  %v3584_v15 = vld [vmem:[%s10414_s6 + $0x68] sm:$0xff] }
 0x83d   :  { %4969 = vmatprep.mubr.msk.f32.mxu1 %vm1229_vm10, %v3290_v33  ;;  %6234 = vmatprep.subr.bf16.mxu1 %v8578_v20  ;;  %v6275_v20 = vpack.c.bf16 %v3581_v59, %v3579_v50  ;;  %v6277_v58 = vpack.c.bf16 %v3586_v56, %v3584_v15  ;;  %v3600_v33 = vld [vmem:[%s10414_s6 + $0xe8] sm:$0xff]  ;;  %v3609_v50 = vld [vmem:[%s10414_s6 + $0x130] sm:$0xff]  ;;  %v4980_v15 = vld [vmem:[%s10414_s6 + $0x278] sm:$0xff] }
 0x83e   :  { %6270 = vmatprep.subr.bf16.mxu0 %v6269_v51  ;;  %3732 = vmatprep.mubr.f32.mxu0 %v9489_v53  ;;  %v3604_v51 = vld [vmem:[%s10414_s6 + $0x108] sm:$0xff] }
 0x83f   :  { %v3612_v59 = vld [vmem:[%s10414_s6 + $0x148] sm:$0xff] }
 0x840   :  { %6236 = vmatpush1.bf16.msra.mxu1 %v8598_v44  ;;  %6272 = vmatpush1.bf16.msra.mxu0 %v6271_v4  ;;  %v3590_v44 = vld [vmem:[%s10414_s6 + $0x98] sm:$0xff] }
 0x841   :  { %6238 = vmatprep.subr.bf16.mxu1 %v8602_v40  ;;  %6274 = vmatprep.subr.bf16.mxu0 %v6273_v3  ;;  %v6279_v40 = vpack.c.bf16 %v3585_v21, %v3583_v25  ;;  %v6281_v63 = vpack.c.bf16 %v3590_v44, %v3588_v23  ;;  %v3607_v3 = vld [vmem:[%s10414_s6 + $0x120] sm:$0xff]  ;;  %v4979_v25 = vld [vmem:[%s10414_s6 + $0x270] sm:$0xff]  ;;  %v4982_v23 = vld [vmem:[%s10414_s6 + $0x288] sm:$0xff] }
 0x842   :  { %v6303_v56 = vpack.c.bf16 %v3609_v50, %v3607_v3  ;;  %v4984_v44 = vld [vmem:[%s10414_s6 + $0x298] sm:$0xff]  ;;  %v4994_v3 = vld [vmem:[%s10414_s6 + $0x2e8] sm:$0xff] }
 0x843   :  { %v4996_v50 = vld [vmem:[%s10414_s6 + $0x2f8] sm:$0xff] }
 0x844   :  { %6240 = vmatpush1.bf16.msra.mxu1 %v8621_v36  ;;  %6276 = vmatpush1.bf16.msra.mxu0 %v6275_v20  ;;  %v3594_v36 = vld [vmem:[%s10414_s6 + $0xb8] sm:$0xff]  ;;  %v3611_v20 = vld [vmem:[%s10414_s6 + $0x140] sm:$0xff] }
 0x845   :  { %6242 = vmatprep.subr.bf16.mxu1 %v8625_v5  ;;  %6278 = vmatprep.subr.bf16.mxu0 %v6277_v58  ;;  %v6283_v5 = vpack.c.bf16 %v3589_v7, %v3587_v10  ;;  %v6285_v47 = vpack.c.bf16 %v3594_v36, %v3592_v19  ;;  %v4977_v58 = vld [vmem:[%s10414_s6 + $0x260] sm:$0xff]  ;;  %v6347_v36 = vpack.c.bf16 %v4984_v44, %v4982_v23  ;;  %v4998_v23 = vld [vmem:[%s10414_s6 + $0x308] sm:$0xff]  ;;  %v5000_v44 = vld [vmem:[%s10414_s6 + $0x318] sm:$0xff] }
 0x846   :  { %v6345_v10 = vpack.c.bf16 %v4979_v25, %v4977_v58  ;;  %v3615_v19 = vld [vmem:[%s10414_s6 + $0x160] sm:$0xff]  ;;  %v4995_v25 = vld [vmem:[%s10414_s6 + $0x2f0] sm:$0xff] }
 0x847   :  { %v4993_v58 = vld [vmem:[%s10414_s6 + $0x2e0] sm:$0xff] }
 0x848   :  { %6244 = vmatpush1.bf16.msra.mxu1 %v8642_v14  ;;  %6280 = vmatpush1.bf16.msra.mxu0 %v6279_v40  ;;  %v3598_v14 = vld [vmem:[%s10414_s6 + $0xd8] sm:$0xff]  ;;  %v3616_v40 = vld [vmem:[%s10414_s6 + $0x168] sm:$0xff] }
 0x849   :  { %6246 = vmatprep.subr.bf16.mxu1 %v8646_v38  ;;  %6282 = vmatprep.subr.bf16.mxu0 %v6281_v63  ;;  %v6287_v38 = vpack.c.bf16 %v3593_v52, %v3591_v26  ;;  %v6289_v30 = vpack.c.bf16 %v3598_v14, %v3596_v55  ;;  %v4986_v52 = vld [vmem:[%s10414_s6 + $0x2a8] sm:$0xff]  ;;  %v4988_v55 = vld [vmem:[%s10414_s6 + $0x2b8] sm:$0xff] }
 0x84a   :  { %v3620_v14 = vld [vmem:[%s10414_s6 + $0x188] sm:$0xff] }
 0x84c   :  { %6248 = vmatpush1.bf16.msra.mxu1 %v8662_v48  ;;  %6284 = vmatpush1.bf16.msra.mxu0 %v6283_v5  ;;  %v3602_v48 = vld [vmem:[%s10414_s6 + $0xf8] sm:$0xff]  ;;  %v4981_v5 = vld [vmem:[%s10414_s6 + $0x280] sm:$0xff] }
 0x84d   :  { %6250 = vmatprep.subr.bf16.mxu1 %v8666_v41  ;;  %6286 = vmatprep.subr.bf16.mxu0 %v6285_v47  ;;  %v6291_v41 = vpack.c.bf16 %v3597_v24, %v3595_v16  ;;  %v6293_v45 = vpack.c.bf16 %v3602_v48, %v3600_v33  ;;  %v4983_v47 = vld [vmem:[%s10414_s6 + $0x290] sm:$0xff]  ;;  %v3619_v16 = vld [vmem:[%s10414_s6 + $0x180] sm:$0xff]  ;;  %v6351_v24 = vpack.c.bf16 %v4988_v55, %v4986_v52  ;;  %v5004_v52 = vld [vmem:[%s10414_s6 + $0x338] sm:$0xff] }
 0x84e   :  { %v4985_v33 = vld [vmem:[%s10414_s6 + $0x2a0] sm:$0xff]  ;;  %v4987_v48 = vld [vmem:[%s10414_s6 + $0x2b0] sm:$0xff]  ;;  %v3636_v55 = vld [vmem:[%s10414_s6 + $0x208] sm:$0xff] }
 0x850   :  { %6252 = vmatpush1.bf16.msra.mxu1 %v10585_v0  ;;  %6288 = vmatpush1.bf16.msra.mxu0 %v6287_v38  ;;  %v3606_v0 = vld [vmem:[%s10414_s6 + $0x118] sm:$0xff]  ;;  %v6349_v38 = vpack.c.bf16 %v4983_v47, %v4981_v5  ;;  %v4999_v5 = vld [vmem:[%s10414_s6 + $0x310] sm:$0xff] }
 0x851   :  { %6254 = vmatprep.subr.bf16.mxu1 %v10586_v18  ;;  %6290 = vmatprep.subr.bf16.mxu0 %v6289_v30  ;;  %v6295_v18 = vpack.c.bf16 %v3601_v8, %v3599_v62  ;;  %v6297_v42 = vpack.c.bf16 %v3606_v0, %v3604_v51  ;;  %v4990_v62 = vld [vmem:[%s10414_s6 + $0x2c8] sm:$0xff]  ;;  %v4992_v8 = vld [vmem:[%s10414_s6 + $0x2d8] sm:$0xff] }
 0x852   :  { %v3624_v51 = vld [vmem:[%s10414_s6 + $0x1a8] sm:$0xff]  ;;  %v3626_v0 = vld [vmem:[%s10414_s6 + $0x1b8] sm:$0xff] }
 0x854   :  { %6256 = vmatpush1.bf16.msra.mxu1 %v8702_v54  ;;  %6292 = vmatpush1.bf16.msra.mxu0 %v6291_v41  ;;  %v3610_v54 = vld [vmem:[%s10414_s6 + $0x138] sm:$0xff] }
 0x855   :  { %6258 = vmatprep.subr.bf16.mxu1 %v8706_v34  ;;  %6294 = vmatprep.subr.bf16.mxu0 %v6293_v45  ;;  %v6299_v34 = vpack.c.bf16 %v3605_v12, %v3603_v39  ;;  %v6301_v4 = vpack.c.bf16 %v3610_v54, %v3608_v11  ;;  %v3621_v45 = vld [vmem:[%s10414_s6 + $0x190] sm:$0xff]  ;;  %v3623_v39 = vld [vmem:[%s10414_s6 + $0x1a0] sm:$0xff]  ;;  %v6355_v12 = vpack.c.bf16 %v4992_v8, %v4990_v62  ;;  %v3642_v62 = vld [vmem:[%s10414_s6 + $0x238] sm:$0xff] }
 0x856   :  { %v4989_v11 = vld [vmem:[%s10414_s6 + $0x2c0] sm:$0xff]  ;;  %v4991_v54 = vld [vmem:[%s10414_s6 + $0x2d0] sm:$0xff]  ;;  %v5006_v8 = vld [vmem:[%s10414_s6 + $0x348] sm:$0xff] }
 0x858   :  { %6260 = vmatpush1.bf16.msra.mxu1 %v8722_v60  ;;  %6296 = vmatpush1.bf16.msra.mxu0 %v6295_v18  ;;  %v3614_v60 = vld [vmem:[%s10414_s6 + $0x158] sm:$0xff]  ;;  %v6353_v18 = vpack.c.bf16 %v4987_v48, %v4985_v33  ;;  %v3635_v48 = vld [vmem:[%s10414_s6 + $0x200] sm:$0xff] }
 0x859   :  { %6262 = vmatprep.subr.bf16.mxu1 %v8726_v1  ;;  %6298 = vmatprep.subr.bf16.mxu0 %v6297_v42  ;;  %v4978_v1 = vld [vmem:[%s10414_s6 + $0x268] sm:$0xff]  ;;  %v6305_v21 = vpack.c.bf16 %v3614_v60, %v3612_v59  ;;  %v6315_v42 = vpack.c.bf16 %v3621_v45, %v3619_v16  ;;  %v3630_v60 = vld [vmem:[%s10414_s6 + $0x1d8] sm:$0xff]  ;;  %v5001_v16 = vld [vmem:[%s10414_s6 + $0x320] sm:$0xff] }
 0x85a   :  { %v6343_v63 = vpack.c.bf16 %v4980_v15, %v4978_v1  ;;  %v3628_v59 = vld [vmem:[%s10414_s6 + $0x1c8] sm:$0xff]  ;;  %v6357_v1 = vpack.c.bf16 %v4991_v54, %v4989_v11  ;;  %v3639_v11 = vld [vmem:[%s10414_s6 + $0x220] sm:$0xff] }
 0x85b   :  { %v3640_v45 = vld [vmem:[%s10414_s6 + $0x228] sm:$0xff]  ;;  %v5005_v54 = vld [vmem:[%s10414_s6 + $0x340] sm:$0xff] }
 0x85c   :  { %6264 = vmatpush1.bf16.msra.mxu1 %v8736_v49  ;;  %6300 = vmatpush1.bf16.msra.mxu0 %v6299_v34  ;;  %v3613_v49 = vld [vmem:[%s10414_s6 + $0x150] sm:$0xff]  ;;  %v6317_v34 = vpack.c.bf16 %v3626_v0, %v3624_v51  ;;  %v5008_v51 = vld [vmem:[%s10414_s6 + $0x358] sm:$0xff] }
 0x85d   :  { %4967 = vmatprep.subr.msk.mxu1 %vm392_vm5, %v9204_v32  ;;  %6302 = vmatprep.subr.bf16.mxu0 %v6301_v4  ;;  %v3618_v32 = vld [vmem:[%s10414_s6 + $0x178] sm:$0xff]  ;;  %v6307_v7 = vpack.c.bf16 %v3613_v49, %v3611_v20  ;;  %v3625_v4 = vld [vmem:[%s10414_s6 + $0x1b0] sm:$0xff]  ;;  %v6359_v20 = vpack.c.bf16 %v4996_v50, %v4994_v3  ;;  %v6371_v50 = vpack.c.bf16 %v5008_v51, %v5006_v8  ;;  %v5017_v51 = vld [vmem:[%s10414_s6 + $0x3a0] sm:$0xff] }
 0x85e   :  { %v6309_v26 = vpack.c.bf16 %v3618_v32, %v3616_v40  ;;  %v6319_v15 = vpack.c.bf16 %v3625_v4, %v3623_v39  ;;  %v3629_v49 = vld [vmem:[%s10414_s6 + $0x1d0] sm:$0xff]  ;;  %v3632_v40 = vld [vmem:[%s10414_s6 + $0x1e8] sm:$0xff]  ;;  %v3634_v32 = vld [vmem:[%s10414_s6 + $0x1f8] sm:$0xff]  ;;  %v6333_v4 = vpack.c.bf16 %v3642_v62, %v3640_v45 }
 0x85f   :  { %v6325_v47 = vpack.c.bf16 %v3634_v32, %v3632_v40  ;;  %v3641_v3 = vld [vmem:[%s10414_s6 + $0x230] sm:$0xff]  ;;  %v5014_v32 = vld [vmem:[%s10414_s6 + $0x388] sm:$0xff]  ;;  %v5061_v62 = vld [vmem:[%s10414_s6 + $0x4e0] sm:$0xff] }
 0x860   :  { %4968 = vmatpush1.msk.msra.mxu1 %vm392_vm5, %v9214_v6  ;;  %6304 = vmatpush1.bf16.msra.mxu0 %v6303_v56  ;;  %v3617_v6 = vld [vmem:[%s10414_s6 + $0x170] sm:$0xff]  ;;  %v3627_v56 = vld [vmem:[%s10414_s6 + $0x1c0] sm:$0xff] }
 0x861   :  { %3501 = vmatmul.mubr.f32.vlgmr.msra.gmra.mrb[28].mxu1 %v9468_v31  ;;  %6306 = vmatprep.subr.bf16.mxu0 %v6305_v21  ;;  %v3622_v31 = vld [vmem:[%s10414_s6 + $0x198] sm:$0xff]  ;;  %v6311_v30 = vpack.c.bf16 %v3617_v6, %v3615_v19  ;;  %v6321_v21 = vpack.c.bf16 %v3630_v60, %v3628_v59  ;;  %v6363_v19 = vpack.c.bf16 %v5000_v44, %v4998_v23  ;;  %v5002_v6 = vld [vmem:[%s10414_s6 + $0x328] sm:$0xff]  ;;  %v5011_v23 = vld [vmem:[%s10414_s6 + $0x370] sm:$0xff] }
 0x862   :  { %6344 = vmatprep.subr.bf16.mxu1 %v6343_v63  ;;  %3970 = vmatprep.mubr.f32.mxu1 %v9489_v53  ;;  %v6313_v41 = vpack.c.bf16 %v3622_v31, %v3620_v14  ;;  %v6361_v63 = vpack.c.bf16 %v4995_v25, %v4993_v58  ;;  %v3638_v14 = vld [vmem:[%s10414_s6 + $0x218] sm:$0xff]  ;;  %v5010_v59 = vld [vmem:[%s10414_s6 + $0x368] sm:$0xff]  ;;  %v3643_v58 = vld [vmem:[%s10414_s6 + $0x240] sm:$0xff]  ;;  %v10764_v25 = vmov 0.0  }
 0x863   :  { %6346 = vmatpush1.bf16.msra.mxu1 %v6345_v10  ;;  %v6323_v10 = vpack.c.bf16 %v3629_v49, %v3627_v56  ;;  %v6329_v33 = vpack.c.bf16 %v3638_v14, %v3636_v55  ;;  %v5012_v60 = vld [vmem:[%s10414_s6 + $0x378] sm:$0xff]  ;;  %v5009_v49 = vld [vmem:[%s10414_s6 + $0x360] sm:$0xff]  ;;  %v3645_v40 = vld [vmem:[%s10414_s6 + $0x250] sm:$0xf] }
 0x864   :  { %6308 = vmatpush1.bf16.msra.mxu0 %v6307_v7  ;;  %6348 = vmatprep.subr.bf16.mxu1 %v6347_v36  ;;  %v3631_v7 = vld [vmem:[%s10414_s6 + $0x1e0] sm:$0xff]  ;;  %v5059_v14 = vld [vmem:[%s10414_s6 + $0x4d0] sm:$0xff] }
 0x865   :  { %6310 = vmatprep.subr.bf16.mxu0 %v6309_v26  ;;  %v4997_v36 = vld [vmem:[%s10414_s6 + $0x300] sm:$0xff]  ;;  %v3633_v26 = vld [vmem:[%s10414_s6 + $0x1f0] sm:$0xff] }
 0x866   :  { %v6365_v31 = vpack.c.bf16 %v4999_v5, %v4997_v36  ;;  %v6340_v36 = vpack.c.bf16 %v3645_v40, %v3643_v58  ;;  %v5057_v5 = vld [vmem:[%s10414_s6 + $0x4c0] sm:$0xff]  ;;  %v5028_v58 = vld [vmem:[%s10414_s6 + $0x3f8] sm:$0xff] }
 0x867   :  { %6350 = vmatpush1.bf16.msra.mxu1 %v6349_v38  ;;  %v6327_v38 = vpack.c.bf16 %v3633_v26, %v3631_v7  ;;  %v5060_v7 = vld [vmem:[%s10414_s6 + $0x4d8] sm:$0xff]  ;;  %v5013_v26 = vld [vmem:[%s10414_s6 + $0x380] sm:$0xff]  ;;  %v6423_v45 = vpack.c.bf16 %v5059_v14, %v5057_v5  ;;  %v5074_v5 = vld [vmem:[%s10414_s6 + $0x548] sm:$0xff] }
 0x868   :  { %6312 = vmatpush1.bf16.msra.mxu0 %v6311_v30  ;;  %6352 = vmatprep.subr.bf16.mxu1 %v6351_v24  ;;  %v6367_v30 = vpack.c.bf16 %v5004_v52, %v5002_v6  ;;  %v5003_v24 = vld [vmem:[%s10414_s6 + $0x330] sm:$0xff]  ;;  %v5069_v40 = vld [vmem:[%s10414_s6 + $0x520] sm:$0xff] }
 0x869   :  { %6314 = vmatprep.subr.bf16.mxu0 %v6313_v41  ;;  %v3637_v41 = vld [vmem:[%s10414_s6 + $0x210] sm:$0xff]  ;;  %v6369_v0 = vpack.c.bf16 %v5003_v24, %v5001_v16  ;;  %v5064_v16 = vld [vmem:[%s10414_s6 + $0x4f8] sm:$0xff] }
 0x86a   :  { %v5015_v6 = vld [vmem:[%s10414_s6 + $0x390] sm:$0xff] }
 0x86b   :  { %6354 = vmatpush1.bf16.msra.mxu1 %v6353_v18  ;;  %v10762_v18 = vld [vmem:[#allocation13_spill] sm:$0xff]  ;;  %v6381_v24 = vpack.c.bf16 %v5015_v6, %v5013_v26 }
 0x86c   :  { %6316 = vmatpush1.bf16.msra.mxu0 %v6315_v42  ;;  %6356 = vmatprep.subr.bf16.mxu1 %v6355_v12  ;;  %v10763_v42 = vld [vmem:[#allocation11_spill] sm:$0xff]  ;;  %v6331_v12 = vpack.c.bf16 %v3637_v41, %v3635_v48 }
 0x86d   :  { %6318 = vmatprep.subr.bf16.mxu0 %v6317_v34  ;;  %v9789_v39 = vsel %vm372_vm0, %v10763_v42, %v10762_v18  ;;  %v5007_v34 = vld [vmem:[%s10414_s6 + $0x350] sm:$0xff]  ;;  %v10767_v48 = vld [vmem:[#allocation15_spill] sm:$0xff] }
 0x86e   :  { %v6373_v56 = vpack.c.bf16 %v5007_v34, %v5005_v54  ;;  %v5063_v42 = vld [vmem:[%s10414_s6 + $0x4f0] sm:$0xff]  ;;  %v5066_v54 = vld [vmem:[%s10414_s6 + $0x508] sm:$0xff]  ;;  %v5068_v34 = vld [vmem:[%s10414_s6 + $0x518] sm:$0xff] }
 0x86f   :  { %6358 = vmatpush1.bf16.msra.mxu1 %v6357_v1  ;;  %v3644_v1 = vld [vmem:[%s10414_s6 + $0x248] sm:$0xff] }
 0x870   :  { %6320 = vmatpush1.bf16.msra.mxu0 %v6319_v15  ;;  %6360 = vmatprep.subr.bf16.mxu1 %v6359_v20  ;;  %v3646_v15 = vld [vmem:[%s10414_s6 + $0x258] sm:$0xf]  ;;  %v6335_v20 = vpack.c.bf16 %v3641_v3, %v3639_v11  ;;  %v6427_v3 = vpack.c.bf16 %v5063_v42, %v5061_v62  ;;  %v5035_v42 = vld [vmem:[%s10414_s6 + $0x430] sm:$0xff] }
 0x871   :  { %6322 = vmatprep.subr.bf16.mxu0 %v6321_v21  ;;  %v6375_v21 = vpack.c.bf16 %v5012_v60, %v5010_v59  ;;  %v6337_v44 = vpack.c.bf16 %v3646_v15, %v3644_v1  ;;  %v5024_v11 = vld [vmem:[%s10414_s6 + $0x3d8] sm:$0xff]  ;;  %v5021_v60 = vld [vmem:[%s10414_s6 + $0x3c0] sm:$0xff]  ;;  %v5023_v1 = vld [vmem:[%s10414_s6 + $0x3d0] sm:$0xff]  ;;  %v6429_v15 = vpack.c.bf16 %v5068_v34, %v5066_v54 }
 0x872   :  { %v5038_v54 = vld [vmem:[%s10414_s6 + $0x448] sm:$0xff]  ;;  %v5040_v34 = vld [vmem:[%s10414_s6 + $0x458] sm:$0xff] }
 0x873   :  { %6362 = vmatpush1.bf16.msra.mxu1 %v6361_v63  ;;  %v5016_v63 = vld [vmem:[%s10414_s6 + $0x398] sm:$0xff] }
 0x874   :  { %6324 = vmatpush1.bf16.msra.mxu0 %v6323_v10  ;;  %6364 = vmatprep.subr.bf16.mxu1 %v6363_v19  ;;  %v5058_v10 = vld [vmem:[%s10414_s6 + $0x4c8] sm:$0xff]  ;;  %v6377_v19 = vpack.c.bf16 %v5011_v23, %v5009_v49  ;;  %v5072_v49 = vld [vmem:[%s10414_s6 + $0x538] sm:$0xff]  ;;  %v6389_v23 = vpack.c.bf16 %v5023_v1, %v5021_v60  ;;  %v5081_v60 = vld [vmem:[%s10414_s6 + $0x580] sm:$0xff]  ;;  %v6403_v1 = vpack.c.bf16 %v5040_v34, %v5038_v54 }
 0x875   :  { %6326 = vmatprep.subr.bf16.mxu0 %v6325_v47  ;;  %v6379_v47 = vpack.c.bf16 %v5016_v63, %v5014_v32  ;;  %v6421_v55 = vpack.c.bf16 %v5060_v7, %v5058_v10  ;;  %v5027_v63 = vld [vmem:[%s10414_s6 + $0x3f0] sm:$0xff]  ;;  %v5093_v54 = vld [vmem:[%s10414_s6 + $0x5e0] sm:$0xff] }
 0x876   :  { %v5071_v7 = vld [vmem:[%s10414_s6 + $0x530] sm:$0xff] }
 0x877   :  { %6366 = vmatpush1.bf16.msra.mxu1 %v6365_v31  ;;  %v5018_v31 = vld [vmem:[%s10414_s6 + $0x3a8] sm:$0xff]  ;;  %v6435_v6 = vpack.c.bf16 %v5071_v7, %v5069_v40  ;;  %v5043_v7 = vld [vmem:[%s10414_s6 + $0x470] sm:$0xff] }
 0x878   :  { %6328 = vmatpush1.bf16.msra.mxu0 %v6327_v38  ;;  %6368 = vmatprep.subr.bf16.mxu1 %v6367_v30  ;;  %v5020_v38 = vld [vmem:[%s10414_s6 + $0x3b8] sm:$0xff]  ;;  %v5062_v30 = vld [vmem:[%s10414_s6 + $0x4e8] sm:$0xff]  ;;  %v5095_v34 = vld [vmem:[%s10414_s6 + $0x5f0] sm:$0xff] }
 0x879   :  { %6330 = vmatprep.subr.bf16.mxu0 %v6329_v33  ;;  %v10766_v33 = vld [vmem:[#allocation17_spill] sm:$0xff]  ;;  %v6383_v8 = vpack.c.bf16 %v5020_v38, %v5018_v31  ;;  %v6425_v18 = vpack.c.bf16 %v5064_v16, %v5062_v30  ;;  %v5029_v31 = vld [vmem:[%s10414_s6 + $0x400] sm:$0xff] }
 0x87a   :  { %v9872_v41 = vsel %vm372_vm0, %v10767_v48, %v10766_v33  ;;  %v5031_v38 = vld [vmem:[%s10414_s6 + $0x410] sm:$0xff]  ;;  %v5036_v33 = vld [vmem:[%s10414_s6 + $0x438] sm:$0xff]  ;;  %v5078_v48 = vld [vmem:[%s10414_s6 + $0x568] sm:$0xff] }
 0x87b   :  { %3733 = vmatmul.mubr.f32.vlgmr.msra.gmra.mrb[30].mxu0 %v9789_v39  ;;  %6370 = vmatpush1.bf16.msra.mxu1 %v6369_v0  ;;  %v5019_v0 = vld [vmem:[%s10414_s6 + $0x3b0] sm:$0xff]  ;;  %v6397_v62 = vpack.c.bf16 %v5031_v38, %v5029_v31  ;;  %v5089_v31 = vld [vmem:[%s10414_s6 + $0x5c0] sm:$0xff] }
 0x87c   :  { %6332 = vmatpush1.bf16.msra.mxu0 %v6331_v12  ;;  %3803 = vmatprep.mubr.f32.mxu0 %v10764_v25  ;;  %v5022_v12 = vld [vmem:[%s10414_s6 + $0x3c8] sm:$0xff]  ;;  %v5075_v16 = vld [vmem:[%s10414_s6 + $0x550] sm:$0xff] }
 0x87d   :  { %6334 = vmatprep.subr.bf16.mxu0 %v6333_v4  ;;  %6372 = vmatprep.subr.bf16.mxu1 %v6371_v50  ;;  %v6385_v4 = vpack.c.bf16 %v5019_v0, %v5017_v51  ;;  %v5065_v50 = vld [vmem:[%s10414_s6 + $0x500] sm:$0xff]  ;;  %v6387_v59 = vpack.c.bf16 %v5024_v11, %v5022_v12  ;;  %v5079_v11 = vld [vmem:[%s10414_s6 + $0x570] sm:$0xff] }
 0x87e   :  { %v5077_v51 = vld [vmem:[%s10414_s6 + $0x560] sm:$0xff] }
 0x87f   :  { %6374 = vmatpush1.bf16.msra.mxu1 %v6373_v56  ;;  %v5067_v56 = vld [vmem:[%s10414_s6 + $0x510] sm:$0xff] }
 0x880   :  { %6336 = vmatpush1.bf16.msra.mxu0 %v6335_v20  ;;  %6376 = vmatprep.subr.bf16.mxu1 %v6375_v21  ;;  %v5026_v20 = vld [vmem:[%s10414_s6 + $0x3e8] sm:$0xff] }
 0x881   :  { %6339 = vmatprep.subr.msk.bf16.mxu0 %vm7912_vm8, %v6337_v44  ;;  %v5070_v21 = vld [vmem:[%s10414_s6 + $0x528] sm:$0xff]  ;;  %v6431_v44 = vpack.c.bf16 %v5067_v56, %v5065_v50  ;;  %v6391_v32 = vpack.c.bf16 %v5028_v58, %v5026_v20  ;;  %v5039_v56 = vld [vmem:[%s10414_s6 + $0x450] sm:$0xff] }
 0x882   :  { %v6433_v10 = vpack.c.bf16 %v5072_v49, %v5070_v21  ;;  %v5083_v58 = vld [vmem:[%s10414_s6 + $0x590] sm:$0xff]  ;;  %v5042_v21 = vld [vmem:[%s10414_s6 + $0x468] sm:$0xff]  ;;  %v5044_v49 = vld [vmem:[%s10414_s6 + $0x478] sm:$0xff] }
 0x883   :  { %6378 = vmatpush1.bf16.msra.mxu1 %v6377_v19  ;;  %v5030_v19 = vld [vmem:[%s10414_s6 + $0x408] sm:$0xff] }
 0x884   :  { %6342 = vmatpush1.bf16.msk.msra.mxu0 %vm7912_vm8, %v6340_v36  ;;  %6380 = vmatprep.subr.bf16.mxu1 %v6379_v47  ;;  %v5032_v36 = vld [vmem:[%s10414_s6 + $0x418] sm:$0xff] }
 0x885   :  { %6422 = vmatprep.subr.bf16.mxu0 %v6421_v55  ;;  %v5076_v47 = vld [vmem:[%s10414_s6 + $0x558] sm:$0xff]  ;;  %v5073_v55 = vld [vmem:[%s10414_s6 + $0x540] sm:$0xff]  ;;  %v6395_v14 = vpack.c.bf16 %v5032_v36, %v5030_v19  ;;  %v5087_v36 = vld [vmem:[%s10414_s6 + $0x5b0] sm:$0xff] }
 0x886   :  { %v6437_v30 = vpack.c.bf16 %v5076_v47, %v5074_v5  ;;  %v5046_v5 = vld [vmem:[%s10414_s6 + $0x488] sm:$0xff]  ;;  %v5048_v47 = vld [vmem:[%s10414_s6 + $0x498] sm:$0xff] }
 0x887   :  { %4976 = vmatmul.mubr.msk.f32.vlgmr.msra.gmra.mrb[30].mxu0 %vm512_vm9, %v9872_v41  ;;  %6382 = vmatpush1.bf16.msra.mxu1 %v6381_v24  ;;  %v5034_v24 = vld [vmem:[%s10414_s6 + $0x428] sm:$0xff]  ;;  %v6411_v38 = vpack.c.bf16 %v5048_v47, %v5046_v5  ;;  %v5109_v47 = vld [vmem:[%s10414_s6 + $0x660] sm:$0xff] }
 0x888   :  { %6424 = vmatpush1.bf16.msra.mxu0 %v6423_v45  ;;  %6384 = vmatprep.subr.bf16.mxu1 %v6383_v8  ;;  %v5080_v45 = vld [vmem:[%s10414_s6 + $0x578] sm:$0xff]  ;;  %v6439_v8 = vpack.c.bf16 %v5075_v16, %v5073_v55  ;;  %v6399_v0 = vpack.c.bf16 %v5036_v33, %v5034_v24  ;;  %v5047_v16 = vld [vmem:[%s10414_s6 + $0x490] sm:$0xff] }
 0x889   :  { %6426 = vmatprep.subr.bf16.mxu0 %v6425_v18  ;;  %4208 = vmatprep.mubr.f32.mxu0 %v9489_v53  ;;  %v5025_v53 = vld [vmem:[%s10414_s6 + $0x3e0] sm:$0xff]  ;;  %v6441_v12 = vpack.c.bf16 %v5080_v45, %v5078_v48  ;;  %v5091_v33 = vld [vmem:[%s10414_s6 + $0x5d0] sm:$0xff]  ;;  %v5050_v48 = vld [vmem:[%s10414_s6 + $0x4a8] sm:$0xff] }
 0x88a   :  { %v6393_v26 = vpack.c.bf16 %v5027_v63, %v5025_v53  ;;  %v5033_v18 = vld [vmem:[%s10414_s6 + $0x420] sm:$0xff]  ;;  %v6407_v63 = vpack.c.bf16 %v5044_v49, %v5042_v21  ;;  %v5052_v45 = vld [vmem:[%s10414_s6 + $0x4b8] sm:$0xf] }
 0x88b   :  { %6386 = vmatpush1.bf16.msra.mxu1 %v6385_v4  ;;  %v5082_v4 = vld [vmem:[%s10414_s6 + $0x588] sm:$0xff]  ;;  %v6401_v50 = vpack.c.bf16 %v5035_v42, %v5033_v18  ;;  %v5085_v53 = vld [vmem:[%s10414_s6 + $0x5a0] sm:$0xff]  ;;  %v6415_v18 = vpack.c.bf16 %v5052_v45, %v5050_v48 }
 0x88c   :  { %6428 = vmatpush1.bf16.msra.mxu0 %v6427_v3  ;;  %6388 = vmatprep.subr.bf16.mxu1 %v6387_v59  ;;  %v5084_v3 = vld [vmem:[%s10414_s6 + $0x598] sm:$0xff]  ;;  %v6443_v59 = vpack.c.bf16 %v5079_v11, %v5077_v51  ;;  %v5049_v42 = vld [vmem:[%s10414_s6 + $0x4a0] sm:$0xff] }
 0x88d   :  { %6430 = vmatprep.subr.bf16.mxu0 %v6429_v15  ;;  %v5037_v15 = vld [vmem:[%s10414_s6 + $0x440] sm:$0xff]  ;;  %v6445_v20 = vpack.c.bf16 %v5084_v3, %v5082_v4  ;;  %v5098_v4 = vld [vmem:[%s10414_s6 + $0x608] sm:$0xff]  ;;  %v5100_v3 = vld [vmem:[%s10414_s6 + $0x618] sm:$0xff] }
 0x88e   :  { %v6405_v40 = vpack.c.bf16 %v5039_v56, %v5037_v15  ;;  %v5099_v15 = vld [vmem:[%s10414_s6 + $0x610] sm:$0xff]  ;;  %v5102_v56 = vld [vmem:[%s10414_s6 + $0x628] sm:$0xff]  ;;  %v5101_v49 = vld [vmem:[%s10414_s6 + $0x620] sm:$0xff] }
 0x88f   :  { %6390 = vmatpush1.bf16.msra.mxu1 %v6389_v23  ;;  %v5086_v23 = vld [vmem:[%s10414_s6 + $0x5a8] sm:$0xff]  ;;  %v5117_v45 = vld [vmem:[%s10414_s6 + $0x6a0] sm:$0xff] }
 0x890   :  { %6432 = vmatpush1.bf16.msra.mxu0 %v6431_v44  ;;  %6392 = vmatprep.subr.bf16.mxu1 %v6391_v32  ;;  %v5088_v44 = vld [vmem:[%s10414_s6 + $0x5b8] sm:$0xff]  ;;  %v6447_v32 = vpack.c.bf16 %v5083_v58, %v5081_v60  ;;  %v6461_v60 = vpack.c.bf16 %v5100_v3, %v5098_v4  ;;  %v5125_v3 = vld [vmem:[%s10414_s6 + $0x6e0] sm:$0xff] }
 0x891   :  { %6434 = vmatprep.subr.bf16.mxu0 %v6433_v10  ;;  %v5041_v10 = vld [vmem:[%s10414_s6 + $0x460] sm:$0xff]  ;;  %v6449_v19 = vpack.c.bf16 %v5088_v44, %v5086_v23  ;;  %v5103_v23 = vld [vmem:[%s10414_s6 + $0x630] sm:$0xff]  ;;  %v5106_v44 = vld [vmem:[%s10414_s6 + $0x648] sm:$0xff] }
 0x892   :  { %v6409_v55 = vpack.c.bf16 %v5043_v7, %v5041_v10  ;;  %v5107_v10 = vld [vmem:[%s10414_s6 + $0x650] sm:$0xff]  ;;  %v5110_v7 = vld [vmem:[%s10414_s6 + $0x668] sm:$0xff] }
 0x893   :  { %6394 = vmatpush1.bf16.msra.mxu1 %v6393_v26  ;;  %v5090_v26 = vld [vmem:[%s10414_s6 + $0x5c8] sm:$0xff] }
 0x894   :  { %6436 = vmatpush1.bf16.msra.mxu0 %v6435_v6  ;;  %6396 = vmatprep.subr.bf16.mxu1 %v6395_v14  ;;  %v5092_v6 = vld [vmem:[%s10414_s6 + $0x5d8] sm:$0xff]  ;;  %v6451_v14 = vpack.c.bf16 %v5087_v36, %v5085_v53 }
 0x895   :  { %6438 = vmatprep.subr.bf16.mxu0 %v6437_v30  ;;  %v5045_v30 = vld [vmem:[%s10414_s6 + $0x480] sm:$0xff]  ;;  %v6453_v24 = vpack.c.bf16 %v5092_v6, %v5090_v26  ;;  %v5111_v26 = vld [vmem:[%s10414_s6 + $0x670] sm:$0xff]  ;;  %v5114_v6 = vld [vmem:[%s10414_s6 + $0x688] sm:$0xff] }
 0x896   :  { %v6413_v51 = vpack.c.bf16 %v5047_v16, %v5045_v30  ;;  %v5115_v30 = vld [vmem:[%s10414_s6 + $0x690] sm:$0xff]  ;;  %v5118_v16 = vld [vmem:[%s10414_s6 + $0x6a8] sm:$0xff] }
 0x897   :  { %6398 = vmatpush1.bf16.msra.mxu1 %v6397_v62  ;;  %v5094_v62 = vld [vmem:[%s10414_s6 + $0x5e8] sm:$0xff] }
 0x898   :  { %6440 = vmatpush1.bf16.msra.mxu0 %v6439_v8  ;;  %6400 = vmatprep.subr.bf16.mxu1 %v6399_v0  ;;  %v5096_v8 = vld [vmem:[%s10414_s6 + $0x5f8] sm:$0xff]  ;;  %v6455_v0 = vpack.c.bf16 %v5091_v33, %v5089_v31 }
 0x899   :  { %6442 = vmatprep.subr.bf16.mxu0 %v6441_v12  ;;  %v5051_v12 = vld [vmem:[%s10414_s6 + $0x4b0] sm:$0xf]  ;;  %v6457_v11 = vpack.c.bf16 %v5096_v8, %v5094_v62  ;;  %v5122_v8 = vld [vmem:[%s10414_s6 + $0x6c8] sm:$0xff] }
 0x89a   :  { %v5119_v62 = vld [vmem:[%s10414_s6 + $0x6b0] sm:$0xff] }
 0x89b   :  { %6402 = vmatpush1.bf16.msra.mxu1 %v6401_v50  ;;  %v6418_v50 = vpack.c.bf16 %v5051_v12, %v5049_v42  ;;  %v5121_v42 = vld [vmem:[%s10414_s6 + $0x6c0] sm:$0xff]  ;;  %v5123_v12 = vld [vmem:[%s10414_s6 + $0x6d0] sm:$0xff] }
 0x89c   :  { %6444 = vmatpush1.bf16.msra.mxu0 %v6443_v59  ;;  %6404 = vmatprep.subr.bf16.mxu1 %v6403_v1  ;;  %v6459_v59 = vpack.c.bf16 %v5095_v34, %v5093_v54  ;;  %v5097_v1 = vld [vmem:[%s10414_s6 + $0x600] sm:$0xff]  ;;  %v5128_v54 = vld [vmem:[%s10414_s6 + $0x6f8] sm:$0xff]  ;;  %v6487_v34 = vpack.c.bf16 %v5123_v12, %v5121_v42 }
 0x89d   :  { %6446 = vmatprep.subr.bf16.mxu0 %v6445_v20  ;;  %v5104_v20 = vld [vmem:[%s10414_s6 + $0x638] sm:$0xff]  ;;  %v6463_v58 = vpack.c.bf16 %v5099_v15, %v5097_v1 }
 0x89e   :  { %v6465_v21 = vpack.c.bf16 %v5104_v20, %v5102_v56  ;;  %v5129_v56 = vld [vmem:[%s10414_s6 + $0x700] sm:$0xff]  ;;  %v5131_v20 = vld [vmem:[%s10414_s6 + $0x710] sm:$0xf] }
 0x89f   :  { %6406 = vmatpush1.bf16.msra.mxu1 %v6405_v40  ;;  %v5108_v40 = vld [vmem:[%s10414_s6 + $0x658] sm:$0xff] }
 0x8a0   :  { %6448 = vmatpush1.bf16.msra.mxu0 %v6447_v32  ;;  %6408 = vmatprep.subr.bf16.mxu1 %v6407_v63  ;;  %v6467_v32 = vpack.c.bf16 %v5103_v23, %v5101_v49  ;;  %v6469_v53 = vpack.c.bf16 %v5108_v40, %v5106_v44  ;;  %v5105_v63 = vld [vmem:[%s10414_s6 + $0x640] sm:$0xff] }
 0x8a1   :  { %6450 = vmatprep.subr.bf16.mxu0 %v6449_v19  ;;  %v5112_v19 = vld [vmem:[%s10414_s6 + $0x678] sm:$0xff]  ;;  %v6471_v36 = vpack.c.bf16 %v5107_v10, %v5105_v63 }
 0x8a2   :  { %3971 = vmatmul.mubr.f32.vlgmr.msra.gmra.mrb[30].mxu1 %v9789_v39  ;;  %v6473_v5 = vpack.c.bf16 %v5112_v19, %v5110_v7 }
 0x8a3   :  { %6410 = vmatpush1.bf16.msra.mxu1 %v6409_v55  ;;  %4041 = vmatprep.mubr.f32.mxu1 %v10764_v25  ;;  %v5116_v55 = vld [vmem:[%s10414_s6 + $0x698] sm:$0xff] }
 0x8a4   :  { %6452 = vmatpush1.bf16.msra.mxu0 %v6451_v14  ;;  %6412 = vmatprep.subr.bf16.mxu1 %v6411_v38  ;;  %v6475_v14 = vpack.c.bf16 %v5111_v26, %v5109_v47  ;;  %v6477_v31 = vpack.c.bf16 %v5116_v55, %v5114_v6  ;;  %v5113_v38 = vld [vmem:[%s10414_s6 + $0x680] sm:$0xff]  ;;  %v5145_v6 = vld [vmem:[%s10417_s9 + $0xa8] sm:$0xff] }
 0x8a5   :  { %6454 = vmatprep.subr.bf16.mxu0 %v6453_v24  ;;  %v5120_v24 = vld [vmem:[%s10414_s6 + $0x6b8] sm:$0xff]  ;;  %v6479_v33 = vpack.c.bf16 %v5115_v30, %v5113_v38  ;;  %v5149_v38 = vld [vmem:[%s10417_s9 + $0xc8] sm:$0xff]  ;;  %v5150_v30 = vld [vmem:[%s10417_s9 + $0xd0] sm:$0xff] }
 0x8a6   :  { %v6481_v48 = vpack.c.bf16 %v5120_v24, %v5118_v16  ;;  %v6509_v16 = vpack.c.bf16 %v5150_v30, %v5149_v38  ;;  %v5151_v24 = vld [vmem:[%s10417_s9 + $0xd8] sm:$0xff] }
 0x8a7   :  { %6414 = vmatpush1.bf16.msra.mxu1 %v6413_v51  ;;  %v5124_v51 = vld [vmem:[%s10414_s6 + $0x6d8] sm:$0xff] }
 0x8a8   :  { %6456 = vmatpush1.bf16.msra.mxu0 %v6455_v0  ;;  %6417 = vmatprep.subr.msk.bf16.mxu1 %vm7912_vm8, %v6415_v18  ;;  %v6483_v0 = vpack.c.bf16 %v5119_v62, %v5117_v45  ;;  %v6485_v18 = vpack.c.bf16 %v5124_v51, %v5122_v8 }
 0x8a9   :  { %6458 = vmatprep.subr.bf16.mxu0 %v6457_v11  ;;  %v5126_v11 = vld [vmem:[%s10414_s6 + $0x6e8] sm:$0xff] }
 0x8aa   :  { %v6489_v4 = vpack.c.bf16 %v5128_v54, %v5126_v11 }
 0x8ab   :  { %6420 = vmatpush1.bf16.msk.msra.mxu1 %vm7912_vm8, %v6418_v50  ;;  %v5127_v50 = vld [vmem:[%s10414_s6 + $0x6f0] sm:$0xff] }
 0x8ac   :  { %6460 = vmatpush1.bf16.msra.mxu0 %v6459_v59  ;;  %v5130_v59 = vld [vmem:[%s10414_s6 + $0x708] sm:$0xff]  ;;  %v6491_v1 = vpack.c.bf16 %v5127_v50, %v5125_v3 }
 0x8ad   :  { %6462 = vmatprep.subr.bf16.mxu0 %v6461_v60  ;;  %v5132_v60 = vld [vmem:[%s10414_s6 + $0x718] sm:$0xf] }
 0x8ae   :  { %5056 = vmatmul.mubr.msk.f32.vlgmr.msra.gmra.mrb[30].mxu1 %vm512_vm9, %v9872_v41  ;;  %v6493_v15 = vpack.c.bf16 %v5132_v60, %v5130_v59  ;;  %v5157_v59 = vld [vmem:[%s10417_s9 + $0x108] sm:$0xff]  ;;  %v5158_v60 = vld [vmem:[%s10417_s9 + $0x110] sm:$0xff] }
 0x8b0   :  { %6464 = vmatpush1.bf16.msra.mxu0 %v6463_v58  ;;  %v6496_v58 = vpack.c.bf16 %v5131_v20, %v5129_v56  ;;  %v5159_v56 = vld [vmem:[%s10417_s9 + $0x118] sm:$0xff]  ;;  %v5160_v20 = vld [vmem:[%s10417_s9 + $0x120] sm:$0xff] }
 0x8b1   :  { %6466 = vmatprep.subr.bf16.mxu0 %v6465_v21 }
 0x8b4   :  { %6468 = vmatpush1.bf16.msra.mxu0 %v6467_v32 }
 0x8b5   :  { %6470 = vmatprep.subr.bf16.mxu0 %v6469_v53 }
 0x8b8   :  { %6472 = vmatpush1.bf16.msra.mxu0 %v6471_v36 }
 0x8b9   :  { %6474 = vmatprep.subr.bf16.mxu0 %v6473_v5 }
 0x8bc   :  { %6476 = vmatpush1.bf16.msra.mxu0 %v6475_v14 }
 0x8bd   :  { %6478 = vmatprep.subr.bf16.mxu0 %v6477_v31 }
 0x8c0   :  { %6480 = vmatpush1.bf16.msra.mxu0 %v6479_v33  ;;  %v5152_v33 = vld [vmem:[%s10417_s9 + $0xe0] sm:$0xff] }
 0x8c1   :  { %6482 = vmatprep.subr.bf16.mxu0 %v6481_v48  ;;  %v6512_v48 = vpack.c.bf16 %v5152_v33, %v5151_v24 }
 0x8c4   :  { %6484 = vmatpush1.bf16.msra.mxu0 %v6483_v0  ;;  %v5153_v0 = vld [vmem:[%s10417_s9 + $0xe8] sm:$0xff] }
 0x8c5   :  { %6486 = vmatprep.subr.bf16.mxu0 %v6485_v18  ;;  %v5154_v18 = vld [vmem:[%s10417_s9 + $0xf0] sm:$0xff] }
 0x8c6   :  { %v6515_v12 = vpack.c.bf16 %v5154_v18, %v5153_v0  ;;  %v5139_v18 = vld [vmem:[%s10770_s25 + $0x2] sm:$0x3] }
 0x8c7   :  { %4209 = vmatmul.mubr.f32.vlgmr.msra.gmra.mrb[32].mxu0 %v9789_v39 }
 0x8c8   :  { %6488 = vmatpush1.bf16.msra.mxu0 %v6487_v34  ;;  %4279 = vmatprep.mubr.f32.mxu0 %v10764_v25  ;;  %v5155_v34 = vld [vmem:[%s10417_s9 + $0xf8] sm:$0xff] }
 0x8c9   :  { %6490 = vmatprep.subr.bf16.mxu0 %v6489_v4  ;;  %v5156_v4 = vld [vmem:[%s10417_s9 + $0x100] sm:$0xff] }
 0x8ca   :  { %v6518_v50 = vpack.c.bf16 %v5156_v4, %v5155_v34 }
 0x8cc   :  { %6492 = vmatpush1.bf16.msra.mxu0 %v6491_v1  ;;  %v6521_v1 = vpack.c.bf16 %v5158_v60, %v5157_v59 }
 0x8cd   :  { %6495 = vmatprep.subr.msk.bf16.mxu0 %vm7912_vm8, %v6493_v15  ;;  %v3563_v15 = vrot.slane %v9450_v28, 6 }
 0x8d0   :  { %6498 = vmatpush1.bf16.msk.msra.mxu0 %vm7912_vm8, %v6496_v58 }
 0x8d3   :  { %5136 = vmatmul.mubr.msk.f32.vlgmr.msra.gmra.mrb[32].mxu0 %vm512_vm9, %v9872_v41  ;;  %v5143_v41 = vld [vmem:[%s10417_s9 + $0x98] sm:$0xff] }
 0x90e   :  { %v3360_v39 = vpop.f32.mrb[26].mxu1  ;;  %v3431_v21 = vpop.f32.mrb[28].mxu0 }
 0x90f   :  { %v3361_v49 = vadd.f32 %v3360_v39, %v10754_v2  ;;  %v3432_v23 = vadd.f32 %v3431_v21, %v10755_v46  ;;  %v3362_v44 = vpop.f32.mrb[27].mxu1  ;;  %v3433_v40 = vpop.f32.mrb[29].mxu0  ;;  %v5144_v2 = vld [vmem:[%s10417_s9 + $0xa0] sm:$0xff]  ;;  %v3564_v39 = vrot.slane %v9458_v17, 6  ;;  %v5161_v17 = vld [vmem:[%s10417_s9 + $0x128] sm:$0x3f] }
 0x910   :  { %v3363_v32 = vadd.f32 %v3362_v44, %v8812_v35  ;;  %v3434_v53 = vadd.f32 %v3433_v40, %v8838_v22  ;;  %v6500_v19 = vpack.c.bf16 %v5144_v2, %v5143_v41  ;;  %v6823_v35 = vmov 0.0|0.0  }
 0x911   :  { %v3509_v63 = vrot.slane %v3361_v49, 2  ;;  %v3529_v10 = vrot.slane %v3432_v23, 2  ;;  %6499 = vmatprep.subr.bf16.mxu1 %v6823_v35  ;;  %v6524_v23 = vpack.c.bf16 %v5160_v20, %v5159_v56 }
 0x912   :  { %v3510_v7 = vrot.slane %v3363_v32, 2  ;;  %v3530_v52 = vrot.slane %v3434_v53, 2  ;;  %6501 = vmatpush1.bf16.msra.mxu1 %v6500_v19 }
 0x913   :  { %v3533_v46 = vadd.f32 %v10700_v61, %v3529_v10  ;;  %v3513_v22 = vadd.f32 %v10757_v29, %v3509_v63  ;;  %6502 = vmatprep.subr.bf16.mxu1 %v6823_v35  ;;  %v5146_v61 = vld [vmem:[%s10417_s9 + $0xb0] sm:$0xff]  ;;  %v5147_v29 = vld [vmem:[%s10417_s9 + $0xb8] sm:$0xff] }
 0x914   :  { %v3534_v36 = vadd.f32 %v10756_v43, %v3530_v52  ;;  %v3514_v47 = vadd.f32 %v10758_v57, %v3510_v7  ;;  %v6503_v43 = vpack.c.bf16 %v5146_v61, %v5145_v6  ;;  %v5148_v57 = vld [vmem:[%s10417_s9 + $0xc0] sm:$0xff] }
 0x915   :  { %v4972_v5 = vmul.f32 -1.442695, %v3533_v46  ;;  %v4970_v55 = vmul.f32 -1.442695, %v3513_v22  ;;  %v6506_v14 = vpack.c.bf16 %v5148_v57, %v5147_v29  ;;  %v10769_v29 = vld [vmem:[#allocation8_spill] sm:$0xff] }
 0x916   :  { %v4973_v26 = vmul.f32 -1.442695, %v3534_v36  ;;  %6504 = vmatpush1.bf16.msra.mxu1 %v6503_v43  ;;  %v4971_v31 = vmul.f32 -1.442695, %v3514_v47  ;;  %v4286_v57 = vld [vmem:[%s10770_s25] sm:$0x3] }
 0x917   :  { %6734 = vpow2.f32 %v4972_v5  ;;  %6505 = vmatprep.subr.bf16.mxu1 %v6823_v35  ;;  %v4291_v38 = vrot.slane %v4286_v57, %v10769_v29 }
 0x918   :  { %6736 = vpow2.f32 %v4973_v26 }
 0x919   :  { %6738 = vpow2.f32 %v4970_v55  ;;  %v10771_v55 = vld [vmem:[#allocation9_spill] sm:$0xff] }
 0x91a   :  { %6507 = vmatpush1.bf16.msra.mxu1 %v6506_v14  ;;  %6740 = vpow2.f32 %v4971_v31  ;;  %v4322_v34 = vrot.slane %v5139_v18, %v10771_v55 }
 0x91b   :  { %6508 = vmatprep.subr.bf16.mxu1 %v6823_v35 }
 0x91e   :  { %6510 = vmatpush1.bf16.msra.mxu1 %v6509_v16  ;;  %v4295_v16 = vrot.slane %v4286_v57, %v10771_v55  ;;  %v4364_v57 = vld [vmem:[%s10417_s9 + $0x10] sm:$0xff] }
 0x91f   :  { %6511 = vmatprep.subr.bf16.mxu1 %v6823_v35 }
 0x921   :  { %v6735_v45 = vpop.eup %6734 }
 0x922   :  { %v3541_v62 = vadd.f32 1.0, %v6735_v45  ;;  %v6737_v8 = vpop.eup %6736  ;;  %6513 = vmatpush1.bf16.msra.mxu1 %v6512_v48 }
 0x923   :  { %v3542_v51 = vadd.f32 1.0, %v6737_v8  ;;  %6514 = vmatprep.subr.bf16.mxu1 %v6823_v35  ;;  %v6739_v42 = vpop.eup %6738 }
 0x924   :  { %6742 = vrcp.f32 %v3541_v62  ;;  %v6741_v11 = vpop.eup %6740  ;;  %v3521_v54 = vadd.f32 1.0, %v6739_v42  ;;  %v5053_v62 = vld [vmem:[%s10768_s15 + $0x2] sm:$0x3] }
 0x925   :  { %6744 = vrcp.f32 %v3542_v51  ;;  %v3522_v3 = vadd.f32 1.0, %v6741_v11  ;;  %v3893_v0 = vrot.slane %v5053_v62, %v10769_v29  ;;  %v3897_v42 = vrot.slane %v5053_v62, %v10771_v55 }
 0x926   :  { %6516 = vmatpush1.bf16.msra.mxu1 %v6515_v12  ;;  %6746 = vrcp.f32 %v3521_v54  ;;  %v4318_v11 = vrot.slane %v5139_v18, %v10769_v29  ;;  %v4374_v18 = vld [vmem:[%s10417_s9 + $0x60] sm:$0xff] }
 0x927   :  { %6517 = vmatprep.subr.bf16.mxu1 %v6823_v35  ;;  %6748 = vrcp.f32 %v3522_v3 }
 0x92a   :  { %6519 = vmatpush1.bf16.msra.mxu1 %v6518_v50 }
 0x92b   :  { %6520 = vmatprep.subr.bf16.mxu1 %v6823_v35 }
 0x92e   :  { %v6743_v58 = vpop.eup %6742  ;;  %6522 = vmatpush1.bf16.msra.mxu1 %v6521_v1 }
 0x92f   :  { %v3567_v21 = vmul.f32 %v6743_v58, %v3563_v15  ;;  %v6745_v49 = vpop.eup %6744  ;;  %6523 = vmatprep.subr.bf16.mxu1 %v6823_v35  ;;  %v3559_v46 = vsub.f32 1.0, %v6743_v58  ;;  %v5133_v58 = vld [vmem:[%s10768_s15 + $0x4] sm:$0x3] }
 0x930   :  { %v3568_v28 = vmul.f32 %v6745_v49, %v3564_v39  ;;  %v6747_v10 = vpop.eup %6746  ;;  %v3560_v36 = vsub.f32 1.0, %v6745_v49  ;;  %v5142_v39 = vld [vmem:[%s10770_s25 + $0x4] sm:$0x3] }
 0x931   :  { %v6749_v52 = vpop.eup %6748 }
 0x932   :  { %6525 = vmatpush1.bf16.msra.mxu1 %v6524_v23  ;;  %v4131_v23 = vrot.slane %v5133_v58, %v10769_v29 }
 0x933   :  { %4443 = vmatprep.subr.mxu1 %v10764_v25 }
 0x934   :  { %v3502_v44 = vpop.f32.mrb[28].mxu1 }
 0x935   :  { %v3503_v40 = vadd.f32 %v3502_v44, %v10759_v13  ;;  %v3504_v32 = vpop.f32.mrb[29].mxu1 }
 0x936   :  { %v3505_v53 = vadd.f32 %v3504_v32, %v10732_v27  ;;  %5162 = vmatpush1.msk.msra.mxu1 %vm392_vm5, %v5161_v17  ;;  %v4135_v32 = vrot.slane %v5133_v58, %v10771_v55 }
 0x937   :  { %v3549_v63 = vrot.slane %v3503_v40, 2  ;;  %6526 = vmatprep.subr.bf16.mxu1 %v6823_v35 }
 0x938   :  { %v3550_v7 = vrot.slane %v3505_v53, 2  ;;  %v4349_v53 = vrot.slane %v5142_v39, %v10771_v55 }
 0x939   :  { %v3553_v41 = vmul.f32 %v6747_v10, %v3549_v63 }
 0x93a   :  { %v3554_v2 = vmul.f32 %v6749_v52, %v3550_v7 }
 0x93b   :  { %v3555_v13 = vadd.f32 %v10702_v9, %v3553_v41  ;;  %v3647_v9 = vld [vmem:[%s10768_s15] sm:$0x3] }
 0x93c   :  { %v3556_v27 = vadd.f32 %v10703_v37, %v3554_v2  ;;  %v3652_v37 = vrot.slane %v3647_v9, %v10769_v29  ;;  %v3656_v14 = vrot.slane %v3647_v9, %v10771_v55  ;;  %v4365_v55 = vld [vmem:[%s10417_s9 + $0x18] sm:$0xff] }
 0x93d   :  { %6750 = vtanh.f32 %v3555_v13 }
 0x93e   :  { %6752 = vtanh.f32 %v3556_v27 }
 0x947   :  { %v6751_v19 = vpop.eup %6750 }
 0x948   :  { %v6753_v22 = vpop.eup %6752  ;;  %v3561_v5 = vmul.f32 %v6751_v19, %v3559_v46 }
 0x949   :  { %v3562_v47 = vmul.f32 %v6753_v22, %v3560_v36  ;;  %v4362_v22 = vld [vmem:[%s10417_s9] sm:$0xff] }
 0x94a   :  { %v10288_v26 = vadd.f32 %v3567_v21, %v3561_v5  ;;  %v4363_v5 = vld [vmem:[%s10417_s9 + $0x8] sm:$0xff] }
 0x94b   :  { %v10290_v6 = vadd.f32 %v3568_v28, %v3562_v47  ;;  %v4345_v28 = vrot.slane %v5142_v39, %v10769_v29 }
 0x95a   :  { %v3805_v61 = vpop.f32.mrb[30].mxu0 }
 0x95b   :  { %v3807_v43 = vpop.f32.mrb[31].mxu0  ;;  %v6565_v31 = vadd.f32 %v3805_v61, %v3652_v37  ;;  %v6527_v37 = vpack.c.bf16 %v4363_v5, %v4362_v22 }
 0x95c   :  { %v6566_v30 = vadd.f32 %v3807_v43, %v3656_v14  ;;  %v4480_v14 = vrot.slane %v10290_v6, 6  ;;  %v4368_v6 = vld [vmem:[%s10417_s9 + $0x30] sm:$0xff] }
 0x95d   :  { %v4298_v24 = vadd.f32 %v6565_v31, %v4291_v38  ;;  %v6530_v31 = vpack.c.bf16 %v4365_v55, %v4364_v57  ;;  %v4366_v38 = vld [vmem:[%s10417_s9 + $0x20] sm:$0xff] }
 0x95e   :  { %v4299_v48 = vadd.f32 %v6566_v30, %v4295_v16  ;;  %v4367_v30 = vld [vmem:[%s10417_s9 + $0x28] sm:$0xff] }
 0x95f   :  { %v5137_v8 = vmul.f32 -1.442695, %v4298_v24  ;;  %v6533_v16 = vpack.c.bf16 %v4367_v30, %v4366_v38  ;;  %v4369_v24 = vld [vmem:[%s10417_s9 + $0x38] sm:$0xff] }
 0x960   :  { %v5138_v51 = vmul.f32 -1.442695, %v4299_v48  ;;  %v4370_v48 = vld [vmem:[%s10417_s9 + $0x40] sm:$0xff] }
 0x961   :  { %6754 = vpow2.f32 %v5137_v8  ;;  %v4372_v8 = vld [vmem:[%s10417_s9 + $0x50] sm:$0xff] }
 0x962   :  { %6756 = vpow2.f32 %v5138_v51  ;;  %v4373_v51 = vld [vmem:[%s10417_s9 + $0x58] sm:$0xff] }
 0x96b   :  { %v6755_v59 = vpop.eup %6754 }
 0x96c   :  { %v6757_v1 = vpop.eup %6756  ;;  %v4306_v15 = vadd.f32 1.0, %v6755_v59  ;;  %v4380_v59 = vld [vmem:[%s10417_s9 + $0x90] sm:$0x3f] }
 0x96d   :  { %v4307_v56 = vadd.f32 1.0, %v6757_v1 }
 0x981   :  { %v4043_v33 = vpop.f32.mrb[30].mxu1 }
 0x982   :  { %v4045_v45 = vpop.f32.mrb[31].mxu1  ;;  %v6567_v12 = vadd.f32 %v4043_v33, %v3893_v0  ;;  %v6536_v33 = vpack.c.bf16 %v4369_v24, %v4368_v6  ;;  %v6542_v0 = vpack.c.bf16 %v4373_v51, %v4372_v8 }
 0x983   :  { %v6568_v54 = vadd.f32 %v4045_v45, %v3897_v42  ;;  %v4371_v45 = vld [vmem:[%s10417_s9 + $0x48] sm:$0xff] }
 0x984   :  { %v4325_v4 = vadd.f32 %v6567_v12, %v4318_v11  ;;  %v6539_v62 = vpack.c.bf16 %v4371_v45, %v4370_v48  ;;  %v4375_v42 = vld [vmem:[%s10417_s9 + $0x68] sm:$0xff]  ;;  %v4376_v11 = vld [vmem:[%s10417_s9 + $0x70] sm:$0xff] }
 0x985   :  { %v4326_v3 = vadd.f32 %v6568_v54, %v4322_v34  ;;  %v6545_v12 = vpack.c.bf16 %v4375_v42, %v4374_v18  ;;  %v4377_v54 = vld [vmem:[%s10417_s9 + $0x78] sm:$0xff] }
 0x986   :  { %v5140_v50 = vmul.f32 -1.442695, %v4325_v4  ;;  %v6548_v34 = vpack.c.bf16 %v4377_v54, %v4376_v11  ;;  %v4378_v4 = vld [vmem:[%s10417_s9 + $0x80] sm:$0xff] }
 0x987   :  { %v5141_v60 = vmul.f32 -1.442695, %v4326_v3  ;;  %v4379_v3 = vld [vmem:[%s10417_s9 + $0x88] sm:$0xff]  ;;  %s6794_s9 = scalar_lea.vmem %s4574_s7, 32 }
 0x988   :  { %6758 = vpow2.f32 %v5140_v50  ;;  %v6551_v50 = vpack.c.bf16 %v4379_v3, %v4378_v4  ;;  %p6795_p5 = scmp.ne.s32.totalorder %s4574_s7, %s6794_s9  ;;  %p6800_p7 = scmp.lt.s32.totalorder %s6794_s9, %s6794_s9 }
 0x989   :  { %6760 = vpow2.f32 %v5141_v60  ;;  %v4479_v60 = vrot.slane %v10288_v26, 6 }
 0x98a   :  { %6762 = vrcp.f32 %v4306_v15  ;;  %p6801_p8 = por %p6800_p7, %p6799_p6 }
 0x98b   :  { %6764 = vrcp.f32 %v4307_v56 }
 0x98c   :  { %p6802_p9 = pnand %p6801_p8, %p6795_p5 }
 0x992   :  { %v6759_v20 = vpop.eup %6758 }
 0x993   :  { %v6761_v21 = vpop.eup %6760  ;;  %v4333_v49 = vadd.f32 1.0, %v6759_v20  ;;  %v5166_v20 = vld [vmem:[%s10772_s21] ss:$0 sm:$0xff] }
 0x994   :  { %v6763_v44 = vpop.eup %6762  ;;  %v4334_v40 = vadd.f32 1.0, %v6761_v21 }
 0x995   :  { %v6765_v17 = vpop.eup %6764  ;;  %6766 = vrcp.f32 %v4333_v49  ;;  %v4352_v7 = vmul.f32 %v6763_v44, %v4345_v28 }
 0x996   :  { %6768 = vrcp.f32 %v4334_v40  ;;  %v4353_v2 = vmul.f32 %v6765_v17, %v4349_v53 }
 0x99f   :  { %v6767_v46 = vpop.eup %6766 }
 0x9a0   :  { %v6769_v19 = vpop.eup %6768  ;;  %v4358_v36 = vsub.f32 1.0, %v6767_v46 }
 0x9a1   :  { %v4359_v61 = vsub.f32 1.0, %v6769_v19 }
 0x9a6   :  { %v4281_v63 = vpop.f32.mrb[32].mxu0 }
 0x9a7   :  { %v6569_v10 = vadd.f32 %v4281_v63, %v4131_v23  ;;  %v4283_v52 = vpop.f32.mrb[33].mxu0 }
 0x9a8   :  { %v6570_v41 = vadd.f32 %v4283_v52, %v4135_v32 }
 0x9a9   :  { %v4354_v13 = vadd.f32 %v6569_v10, %v4352_v7 }
 0x9aa   :  { %v4355_v27 = vadd.f32 %v6570_v41, %v4353_v2 }
 0x9ab   :  { %6770 = vtanh.f32 %v4354_v13 }
 0x9ac   :  { %6772 = vtanh.f32 %v4355_v27 }
 0x9b5   :  { %v6771_v47 = vpop.eup %6770 }
 0x9b6   :  { %v6773_v43 = vpop.eup %6772  ;;  %v4360_v9 = vmul.f32 %v6771_v47, %v4358_v36 }
 0x9b7   :  { %v4361_v29 = vmul.f32 %v6773_v43, %v4359_v61 }
 0x9b9   :  { %5163 = vmatprep.mubr.msk.f32.mxu1 %vm1229_vm10, %v4361_v29 }
 0x9ba   :  { %4472 = vmatmul.mubr.f32.vlgmr.msra.gmra.mrb[32].mxu1 %v4360_v9 }
 0x9bb   :  { %6528 = vmatpush1.bf16.msra.mxu1 %v6527_v37  ;;  %5165 = vmatprep.mubr.msk.f32.mxu1 %vm1229_vm10, %v4480_v14 }
 0x9bc   :  { %6529 = vmatprep.subr.bf16.mxu1 %v6823_v35 }
 0x9bf   :  { %6531 = vmatpush1.bf16.msra.mxu1 %v6530_v31 }
 0x9c0   :  { %6532 = vmatprep.subr.bf16.mxu1 %v6823_v35 }
 0x9c3   :  { %6534 = vmatpush1.bf16.msra.mxu1 %v6533_v16 }
 0x9c4   :  { %6535 = vmatprep.subr.bf16.mxu1 %v6823_v35 }
 0x9c7   :  { %6537 = vmatpush1.bf16.msra.mxu1 %v6536_v33 }
 0x9c8   :  { %6538 = vmatprep.subr.bf16.mxu1 %v6823_v35 }
 0x9cb   :  { %6540 = vmatpush1.bf16.msra.mxu1 %v6539_v62 }
 0x9cc   :  { %6541 = vmatprep.subr.bf16.mxu1 %v6823_v35 }
 0x9cf   :  { %6543 = vmatpush1.bf16.msra.mxu1 %v6542_v0 }
 0x9d0   :  { %6544 = vmatprep.subr.bf16.mxu1 %v6823_v35 }
 0x9d3   :  { %6546 = vmatpush1.bf16.msra.mxu1 %v6545_v12 }
 0x9d4   :  { %6547 = vmatprep.subr.bf16.mxu1 %v6823_v35 }
 0x9d7   :  { %6549 = vmatpush1.bf16.msra.mxu1 %v6548_v34 }
 0x9d8   :  { %6550 = vmatprep.subr.bf16.mxu1 %v6823_v35 }
 0x9db   :  { %6552 = vmatpush1.bf16.msra.mxu1 %v6551_v50 }
 0x9dc   :  { %4523 = vmatprep.subr.mxu1 %v10764_v25 }
 0x9df   :  { %5164 = vmatpush1.msk.msra.mxu1 %vm392_vm5, %v4380_v59 }
 0x9e0   :  { %4552 = vmatmul.mubr.f32.vlgmr.msra.gmra.mrb[34].mxu1 %v4479_v60 }
 0xa8d   :  { %v4473_v1 = vpop.f32.mrb[32].mxu1 }
 0xa8e   :  { %v4475_v15 = vpop.f32.mrb[33].mxu1 }
 0xab3   :  { %v4553_v56 = vpop.f32.mrb[34].mxu1 }
 0xab4   :  { %v4554_v35 = vadd.f32 %v4553_v56, %v4473_v1  ;;  %v4555_v25 = vpop.f32.mrb[35].mxu1 }
 0xab6   :  { %v4564_v58 = vadd.f32 %v5166_v20, %v4554_v35 }
 0xab8   :  { %4566 = vst.msk [vmem:[#allocation5] sm:$0x3] %vm4565_vm11, %v4564_v58 }
 0xab9   :  { %6805 = shalt.err (!%p6802_p9)
}
 0xaba   :  { %s10773_s30 = sld [smem:[#allocation58_spill]] }
 0xac0   :  { %s6806_s16 = scalar_lea.hbm %s10773_s30, 32 }
 0xac1   :  { %p6807_p10 = scmp.ne.s32.totalorder %s10773_s30, %s6806_s16  ;;  %p6810_p11 = scmp.lt.u32.totalorder %s6806_s16, %s10773_s30 }
 0xac3   :  { %p6812_p12 = pnand %p6810_p11, %p6807_p10 }
 0xac5   :  { %6815 = shalt.err (!%p6812_p12)
}
 0xac6   :  { %4576 = dma.vmem_to_hbm [thread:$0]  %s4574_s7, 32, %s10773_s30, [#allocation3]  }
 0xac7   :  { %6818 = dma.done.wait [#allocation3], 32  }
 0xac8   :  { %6819 = vsyncadd [#allocation3], 4294967264 }
 0xac9   :  { %4580 = vsyncpa [#allocation3], 1 }
 0xaca   :  { %4581 = vsyncpa [#allocation4], 1 }

</bundles_post_ra>
